<compile_context>
chip_gen: v7x
topology: tpu7x:2x2x1
jax: 0.10.0
libtpu: 0.0.40
codegen_flags: <defaults>
</compile_context>

<pallas_src>
import functools

import jax
import jax.numpy as jnp
from jax.experimental import pallas as pl
from jax.experimental.pallas import tpu as pltpu


# ---------------------------------------------------------------------------
# Small helpers
# ---------------------------------------------------------------------------

def _round_up(x, m):
    return (x + m - 1) // m * m


def _pad2(m, rows, cols):
    r, c = m.shape
    return jnp.pad(m, ((0, rows - r), (0, cols - c)))


# ---------------------------------------------------------------------------
# Pallas kernels
# ---------------------------------------------------------------------------

def _matmul_bias_act_kernel(a_ref, b_ref, bias_ref, o_ref, acc_ref, *, activation):
    k = pl.program_id(2)

    @pl.when(k == 0)
    def _():
        acc_ref[...] = jnp.zeros_like(acc_ref)

    acc_ref[...] += jnp.dot(a_ref[...], b_ref[...],
                            preferred_element_type=jnp.float32)

    @pl.when(k == pl.num_programs(2) - 1)
    def _():
        y = acc_ref[...] + bias_ref[...]
        if activation == "relu":
            y = jnp.maximum(y, 0.0)
        elif activation == "sigmoid":
            y = jax.nn.sigmoid(y)
        o_ref[...] = y.astype(o_ref.dtype)


def matmul_bias_act(a, w_p, bias_p, n_out, activation="none"):
    """y = act(a @ w + bias)[:M, :n_out].

    a:      (M, K)   f32/bf16 activations (padded + cast to bf16 here)
    w_p:    (Kp, Np) bf16, pre-padded to multiples of 128 at init time
    bias_p: (1, Np)  f32, pre-padded at init time
    """
    M, K = a.shape
    Kp, Np = w_p.shape

    # --- adaptive tile selection ------------------------------------------
    Mp = _round_up(max(M, 8), 8)
    tm = min(Mp, 128)
    Mp = _round_up(Mp, tm)

    tn = 256 if (Np % 256 == 0) else 128

    # Small-M layers: collapse the reduction grid to (near) one step.
    cap = 2048 if Mp <= 128 else 512
    if Kp <= cap:
        tk = Kp
    else:
        tk = 128
        for cand in range(cap, 127, -128):
            if Kp % cand == 0:
                tk = cand
                break

    a_p = jnp.pad(a.astype(jnp.bfloat16), ((0, Mp - M), (0, Kp - K)))

    grid = (Mp // tm, Np // tn, Kp // tk)
    out = pl.pallas_call(
        functools.partial(_matmul_bias_act_kernel, activation=activation),
        out_shape=jax.ShapeDtypeStruct((Mp, Np), jnp.float32),
        grid_spec=pltpu.PrefetchScalarGridSpec(
            num_scalar_prefetch=0,
            grid=grid,
            in_specs=[
                pl.BlockSpec((tm, tk), lambda i, j, k: (i, k)),
                pl.BlockSpec((tk, tn), lambda i, j, k: (k, j)),
                pl.BlockSpec((1, tn), lambda i, j, k: (0, j)),
            ],
            out_specs=pl.BlockSpec((tm, tn), lambda i, j, k: (i, j)),
            scratch_shapes=[pltpu.VMEM((tm, tn), jnp.float32)],
        ),
        compiler_params=pltpu.CompilerParams(
            dimension_semantics=("parallel", "parallel", "arbitrary")),
    )(a_p, w_p, bias_p)
    return out[:M, :n_out]


def _latent_kernel(flat_ref, w_ref, b_ref, eps_ref, mu_ref, ls_ref, z_ref):
    """Fused fc_mu + fc_logsigma + reparameterization (single MXU call).

    w packs mu weights in lanes [0:latent] and logsigma weights in lanes
    [128:128+latent]; padded lanes are zero so z's padded lanes stay zero.
    """
    y = jnp.dot(flat_ref[...], w_ref[...],
                preferred_element_type=jnp.float32) + b_ref[...]
    mu = y[:, :128]
    ls = y[:, 128:]
    mu_ref[...] = mu
    ls_ref[...] = ls
    z_ref[...] = eps_ref[...] * jnp.exp(ls) + mu


def latent_block(flat, layer, eps, latent):
    Nb = flat.shape[0]
    BP = _round_up(max(Nb, 8), 8)
    flat_p = jnp.pad(flat.astype(jnp.bfloat16), ((0, BP - Nb), (0, 0)))
    eps_p = jnp.pad(eps, ((0, BP - Nb), (0, 128 - latent)))
    mu_p, ls_p, z_p = pl.pallas_call(
        _latent_kernel,
        out_shape=(jax.ShapeDtypeStruct((BP, 128), jnp.float32),) * 3,
    )(flat_p, layer["w"], layer["b"], eps_p)
    return mu_p[:Nb, :latent], ls_p[:Nb, :latent], z_p[:Nb, :latent]


# ---------------------------------------------------------------------------
# Conv / ConvTranspose glue (NHWC, plain JAX; matmuls run in Pallas)
# ---------------------------------------------------------------------------

def _im2col_nhwc(x, kh, kw, stride):
    """x: (N, H, W, C) -> (N*OH*OW, kh*kw*C), column order (i, j, c)."""
    N, H, W, C = x.shape
    OH = (H - kh) // stride + 1
    OW = (W - kw) // stride + 1
    cols = []
    for i in range(kh):
        for j in range(kw):
            cols.append(x[:, i:i + stride * (OH - 1) + 1:stride,
                          j:j + stride * (OW - 1) + 1:stride, :])
    patches = jnp.concatenate(cols, axis=-1)          # (N, OH, OW, kh*kw*C)
    return patches.reshape(N * OH * OW, kh * kw * C), (N, OH, OW)


def conv2d_nhwc(x, layer, cout, ksize, stride, activation):
    """PyTorch Conv2d (no padding), NHWC activations, bias+act fused in kernel."""
    a, (N, OH, OW) = _im2col_nhwc(x, ksize, ksize, stride)
    y = matmul_bias_act(a, layer["w"], layer["b"], cout, activation)
    return y.reshape(N, OH, OW, cout)


def _col2im_overlap_add(y, N, H, W, c_out, kh, kw, stride):
    """y: (N*H*W, c_out*kh*kw) -> (N, OH, OW, c_out) overlap-add (no bias)."""
    s = stride
    OH = (H - 1) * s + kh
    OW = (W - 1) * s + kw
    y6 = y.reshape(N, H, W, c_out, kh, kw)
    out = jnp.zeros((N, OH, OW, c_out), y.dtype)
    for i in range(kh):
        for j in range(kw):
            contrib = y6[:, :, :, :, i, j]            # (N, H, W, c_out)
            # dilate by s along H, W via pad+reshape (no scatter)
            d = contrib[:, :, None, :, None, :]
            d = jnp.pad(d, ((0, 0), (0, 0), (0, s - 1),
                            (0, 0), (0, s - 1), (0, 0)))
            d = d.reshape(N, H * s, W * s, c_out)
            d = d[:, :s * (H - 1) + 1, :s * (W - 1) + 1, :]
            out = out + jnp.pad(
                d, ((0, 0), (i, kh - 1 - i), (j, kw - 1 - j), (0, 0)))
    return out


def conv_transpose2d_nhwc(x, layer, cout, ksize, stride, activation):
    """PyTorch ConvTranspose2d (no padding) as dense matmul + col2im add."""
    N, H, W, C = x.shape
    a = x.reshape(N * H * W, C)
    if H == 1 and W == 1:
        # Every output pixel gets exactly one contribution: fuse bias + act
        # into the matmul epilogue and skip the overlap-add entirely.
        y = matmul_bias_act(a, layer["w"], layer["b_tiled"],
                            cout * ksize * ksize, activation)
        return y.reshape(N, cout, ksize, ksize).transpose(0, 2, 3, 1)
    y = matmul_bias_act(a, layer["w"], layer["b0"],
                        cout * ksize * ksize, "none")
    out = _col2im_overlap_add(y, N, H, W, cout, ksize, ksize, stride)
    out = out + layer["b"][None, None, None, :]
    if activation == "relu":
        out = jnp.maximum(out, 0.0)
    elif activation == "sigmoid":
        out = jax.nn.sigmoid(out)
    return out


# ---------------------------------------------------------------------------
# Parameter packing (done ONCE, outside the jitted forward)
# ---------------------------------------------------------------------------

def _pack_conv(w, b):
    """Conv2d weight (out, in, kh, kw) -> (kh*kw*in, out) bf16, tile-padded."""
    o, c, kh, kw = w.shape
    K = kh * kw * c
    Kp, Np = _round_up(K, 128), _round_up(o, 128)
    wm = w.transpose(2, 3, 1, 0).reshape(K, o)
    return {"w": _pad2(wm, Kp, Np).astype(jnp.bfloat16),
            "b": _pad2(b.reshape(1, o), 1, Np).astype(jnp.float32)}


def _pack_deconv(w, b):
    """ConvTranspose2d weight (in, out, kh, kw) -> (in, out*kh*kw) bf16."""
    ci, co, kh, kw = w.shape
    Nc = co * kh * kw
    Kp, Np = _round_up(ci, 128), _round_up(Nc, 128)
    wm = w.reshape(ci, Nc)
    # Column order is (co, kh, kw): tiled bias repeats each channel kh*kw times
    # (used only when the spatial input is 1x1 and bias can be fused).
    b_tiled = jnp.repeat(b.astype(jnp.float32), kh * kw).reshape(1, Nc)
    return {"w": _pad2(wm, Kp, Np).astype(jnp.bfloat16),
            "b0": jnp.zeros((1, Np), jnp.float32),          # bias-free matmul
            "b_tiled": _pad2(b_tiled, 1, Np),                # fused-bias matmul
            "b": b.astype(jnp.float32)}                      # added after col2im


def _pack_fc(w, b):
    """Linear weight (out, in) -> (in, out) bf16, tile-padded."""
    o, i = w.shape
    Kp, Np = _round_up(i, 128), _round_up(o, 128)
    return {"w": _pad2(w.T, Kp, Np).astype(jnp.bfloat16),
            "b": _pad2(b.reshape(1, o), 1, Np).astype(jnp.float32)}


def _pack_latent(mu_w, mu_b, ls_w, ls_b):
    """Concatenate fc_mu / fc_logsigma into one (1024, 256) matrix.

    Columns are reordered from PyTorch's NCHW flatten (c,h,w) to our NHWC
    flatten (h,w,c).  mu occupies lanes [0:latent], logsigma [128:128+latent].
    """
    latent, feat = mu_w.shape                       # (latent, 2*2*256)
    assert latent <= 128, "latent_size > 128 not supported by fused kernel"

    def reorder(w):
        return w.reshape(latent, 256, 2, 2).transpose(0, 2, 3, 1).reshape(latent, feat)

    w = jnp.zeros((feat, 256), jnp.float32)
    w = w.at[:, :latent].set(reorder(mu_w).T)
    w = w.at[:, 128:128 + latent].set(reorder(ls_w).T)
    b = jnp.zeros((1, 256), jnp.float32)
    b = b.at[0, :latent].set(mu_b).at[0, 128:128 + latent].set(ls_b)
    return {"w": w.astype(jnp.bfloat16), "b": b}


def prepare_params(raw):
    return {
        "conv1": _pack_conv(raw["conv1_w"], raw["conv1_b"]),
        "conv2": _pack_conv(raw["conv2_w"], raw["conv2_b"]),
        "conv3": _pack_conv(raw["conv3_w"], raw["conv3_b"]),
        "conv4": _pack_conv(raw["conv4_w"], raw["conv4_b"]),
        "latent": _pack_latent(raw["fc_mu_w"], raw["fc_mu_b"],
                               raw["fc_logsigma_w"], raw["fc_logsigma_b"]),
        "fc1": _pack_fc(raw["fc1_w"], raw["fc1_b"]),
        "deconv1": _pack_deconv(raw["deconv1_w"], raw["deconv1_b"]),
        "deconv2": _pack_deconv(raw["deconv2_w"], raw["deconv2_b"]),
        "deconv3": _pack_deconv(raw["deconv3_w"], raw["deconv3_b"]),
        "deconv4": _pack_deconv(raw["deconv4_w"], raw["deconv4_b"]),
    }


# ---------------------------------------------------------------------------
# VAE forward pass (architecture fixed by the PyTorch module)
# ---------------------------------------------------------------------------

def vae_forward(params, x, eps):
    p = params
    latent = eps.shape[1]
    img_channels = x.shape[1]

    xh = jnp.transpose(x, (0, 2, 3, 1))              # NCHW -> NHWC, once

    # Encoder
    h = conv2d_nhwc(xh, p["conv1"], 32, 4, 2, "relu")
    h = conv2d_nhwc(h, p["conv2"], 64, 4, 2, "relu")
    h = conv2d_nhwc(h, p["conv3"], 128, 4, 2, "relu")
    h = conv2d_nhwc(h, p["conv4"], 256, 4, 2, "relu")
    flat = h.reshape(h.shape[0], -1)                 # (N, 2*2*256) NHWC order

    # Fused fc_mu + fc_logsigma + reparameterization (one Pallas call)
    mu, logsigma, z = latent_block(flat, p["latent"], eps, latent)

    # Decoder
    d = matmul_bias_act(z, p["fc1"]["w"], p["fc1"]["b"], 1024, "relu")
    d = d.reshape(d.shape[0], 1, 1, 1024)            # NHWC with 1x1 spatial
    d = conv_transpose2d_nhwc(d, p["deconv1"], 128, 5, 2, "relu")
    d = conv_transpose2d_nhwc(d, p["deconv2"], 64, 5, 2, "relu")
    d = conv_transpose2d_nhwc(d, p["deconv3"], 32, 6, 2, "relu")
    r = conv_transpose2d_nhwc(d, p["deconv4"], img_channels, 6, 2, "sigmoid")

    recon = jnp.transpose(r, (0, 3, 1, 2))           # back to NCHW
    return recon, mu, logsigma


# ---------------------------------------------------------------------------
# Parameter init (PyTorch layouts), then packed once
# ---------------------------------------------------------------------------

def init_params(key, img_channels, latent_size):
    ks = jax.random.split(key, 22)
    n = lambda k, shape: (jax.random.normal(k, shape, jnp.float32) * 0.05)
    return {
        # Encoder
        "conv1_w": n(ks[0], (32, img_channels, 4, 4)),  "conv1_b": n(ks[1], (32,)),
        "conv2_w": n(ks[2], (64, 32, 4, 4)),            "conv2_b": n(ks[3], (64,)),
        "conv3_w": n(ks[4], (128, 64, 4, 4)),           "conv3_b": n(ks[5], (128,)),
        "conv4_w": n(ks[6], (256, 128, 4, 4)),          "conv4_b": n(ks[7], (256,)),
        "fc_mu_w": n(ks[8], (latent_size, 1024)),       "fc_mu_b": n(ks[9], (latent_size,)),
        "fc_logsigma_w": n(ks[10], (latent_size, 1024)),
        "fc_logsigma_b": n(ks[11], (latent_size,)),
        # Decoder
        "fc1_w": n(ks[12], (1024, latent_size)),        "fc1_b": n(ks[13], (1024,)),
        "deconv1_w": n(ks[14], (1024, 128, 5, 5)),      "deconv1_b": n(ks[15], (128,)),
        "deconv2_w": n(ks[16], (128, 64, 5, 5)),        "deconv2_b": n(ks[17], (64,)),
        "deconv3_w": n(ks[18], (64, 32, 6, 6)),         "deconv3_b": n(ks[19], (32,)),
        "deconv4_w": n(ks[20], (32, img_channels, 6, 6)),
        "deconv4_b": n(ks[21], (img_channels,)),
    }


if __name__ == "__main__":
    # The module's fc layers (2*2*256) force a 64x64 spatial input.
    batch, img_channels, latent_size = 2, 3, 32
    key = jax.random.PRNGKey(0)
    kx, keps, kp = jax.random.split(key, 3)

    x = jax.random.normal(kx, (batch, img_channels, 64, 64), jnp.float32)
    # TODO(synk): torch.randn_like inside forward is supplied as an explicit
    # deterministic `eps` input here (same reparameterization math).
    eps = jax.random.normal(keps, (batch, latent_size), jnp.float32)

    raw = init_params(kp, img_channels, latent_size)
    params = prepare_params(raw)      # weight packing / padding hoisted to init

    fwd = jax.jit(vae_forward)
    recon, mu, logsigma = fwd(params, x, eps)
    jax.block_until_ready((recon, mu, logsigma))

    assert recon.shape == (batch, img_channels, 64, 64), recon.shape
    assert mu.shape == (batch, latent_size), mu.shape
    assert logsigma.shape == (batch, latent_size), logsigma.shape
    assert bool(jnp.all(jnp.isfinite(recon)))
    assert bool(jnp.all(jnp.isfinite(mu))) and bool(jnp.all(jnp.isfinite(logsigma)))
    print("KERNEL_OK")
</pallas_src>

<mosaic_0001>
module attributes {stable_mosaic.version = 11 : i64} {
  func.func @_matmul_bias_act_kernel(%arg0: i32, %arg1: i32, %arg2: i32, %arg3: memref<128x128xbf16, #tpu.memory_space<vmem>>, %arg4: memref<128x128xbf16, #tpu.memory_space<vmem>>, %arg5: memref<1x128xf32, #tpu.memory_space<vmem>>, %arg6: memref<128x128xf32, #tpu.memory_space<vmem>>, %arg7: memref<128x128xf32, #tpu.memory_space<vmem>>) attributes {dimension_semantics = [#tpu.dimension_semantics<parallel>, #tpu.dimension_semantics<parallel>, #tpu.dimension_semantics<arbitrary>], iteration_bounds = array<i64: 16, 1, 1>, scalar_prefetch = 0 : i64, scratch_operands = 1 : i64, tpu.core_type = #tpu.core_type<tc>, window_params = [{transform_indices = @transform_0, window_bounds = array<i64: 128, 128>}, {transform_indices = @transform_1, window_bounds = array<i64: 128, 128>}, {transform_indices = @transform_2, window_bounds = array<i64: 1, 128>}, {transform_indices = @transform_3, window_bounds = array<i64: 128, 128>}]} {
    %c0_i32 = arith.constant 0 : i32
    %0 = arith.cmpi eq, %arg2, %c0_i32 : i32
    %1 = arith.extui %0 : i1 to i32
    %c0_i32_0 = arith.constant 0 : i32
    %2 = arith.cmpi ne, %1, %c0_i32_0 : i32
    scf.if %2 {
      %cst_10 = arith.constant 0.000000e+00 : f32
      %12 = vector.broadcast %cst_10 : f32 to vector<128x128xf32>
      %c0_11 = arith.constant 0 : index
      %c0_12 = arith.constant 0 : index
      %13 = vector.load %arg7[%c0_11, %c0_12] : memref<128x128xf32, #tpu.memory_space<vmem>>, vector<128x128xf32>
      tpu.vector_store %arg7[%c0_11, %c0_12], %12 {strides = array<i32>} : memref<128x128xf32, #tpu.memory_space<vmem>>, vector<128x128xf32>,
    } else {
    }
    %c0 = arith.constant 0 : index
    %c0_1 = arith.constant 0 : index
    %3 = vector.load %arg7[%c0, %c0_1] : memref<128x128xf32, #tpu.memory_space<vmem>>, vector<128x128xf32>
    %c0_2 = arith.constant 0 : index
    %c0_3 = arith.constant 0 : index
    %4 = vector.load %arg3[%c0_2, %c0_3] : memref<128x128xbf16, #tpu.memory_space<vmem>>, vector<128x128xbf16>
    %c0_4 = arith.constant 0 : index
    %c0_5 = arith.constant 0 : index
    %5 = vector.load %arg4[%c0_4, %c0_5] : memref<128x128xbf16, #tpu.memory_space<vmem>>, vector<128x128xbf16>
    %cst = arith.constant dense<0.000000e+00> : vector<128x128xf32>
    %6 = tpu.matmul %4, %5, %cst {dimension_numbers = #tpu.dot_dimension_numbers<[1], [0], [0], [1], [0, 0, 1, 1], [], []>} : vector<128x128xbf16>, vector<128x128xbf16>, vector<128x128xf32> -> vector<128x128xf32>
    %7 = arith.addf %3, %6 : vector<128x128xf32>
    %c0_6 = arith.constant 0 : index
    %c0_7 = arith.constant 0 : index
    %8 = vector.load %arg7[%c0_6, %c0_7] : memref<128x128xf32, #tpu.memory_space<vmem>>, vector<128x128xf32>
    tpu.vector_store %arg7[%c0_6, %c0_7], %7 {strides = array<i32>} : memref<128x128xf32, #tpu.memory_space<vmem>>, vector<128x128xf32>,
    %c0_i32_8 = arith.constant 0 : i32
    %9 = arith.cmpi eq, %arg2, %c0_i32_8 : i32
    %10 = arith.extui %9 : i1 to i32
    %c0_i32_9 = arith.constant 0 : i32
    %11 = arith.cmpi ne, %10, %c0_i32_9 : i32
    scf.if %11 {
      %c0_10 = arith.constant 0 : index
      %c0_11 = arith.constant 0 : index
      %12 = vector.load %arg7[%c0_10, %c0_11] : memref<128x128xf32, #tpu.memory_space<vmem>>, vector<128x128xf32>
      %c0_12 = arith.constant 0 : index
      %c0_13 = arith.constant 0 : index
      %13 = vector.load %arg5[%c0_12, %c0_13] : memref<1x128xf32, #tpu.memory_space<vmem>>, vector<1x128xf32>
      %14 = vector.broadcast %13 : vector<1x128xf32> to vector<128x128xf32>
      %15 = arith.addf %12, %14 : vector<128x128xf32>
      %cst_14 = arith.constant 0.000000e+00 : f32
      %16 = vector.broadcast %cst_14 : f32 to vector<128x128xf32>
      %17 = arith.maximumf %15, %16 : vector<128x128xf32>
      %c0_15 = arith.constant 0 : index
      %c0_16 = arith.constant 0 : index
      %18 = vector.load %arg6[%c0_15, %c0_16] : memref<128x128xf32, #tpu.memory_space<vmem>>, vector<128x128xf32>
      tpu.vector_store %arg6[%c0_15, %c0_16], %17 {strides = array<i32>} : memref<128x128xf32, #tpu.memory_space<vmem>>, vector<128x128xf32>,
    } else {
    }
    return
  }
  func.func @transform_0(%arg0: i32, %arg1: i32, %arg2: i32) -> (i32, i32) {
    %c0_i32 = arith.constant 0 : i32
    return %arg0, %arg2 : i32, i32
  }
  func.func @transform_1(%arg0: i32, %arg1: i32, %arg2: i32) -> (i32, i32) {
    %c0_i32 = arith.constant 0 : i32
    return %arg2, %arg1 : i32, i32
  }
  func.func @transform_2(%arg0: i32, %arg1: i32, %arg2: i32) -> (i32, i32) {
    %c0_i32 = arith.constant 0 : i32
    %c0_i32_0 = arith.constant 0 : i32
    return %c0_i32, %arg1 : i32, i32
  }
  func.func @transform_3(%arg0: i32, %arg1: i32, %arg2: i32) -> (i32, i32) {
    %c0_i32 = arith.constant 0 : i32
    return %arg0, %arg1 : i32, i32
  }
}

module attributes {stable_mosaic.version = 11 : i64} {
  func.func @_matmul_bias_act_kernel(%arg0: i32, %arg1: i32, %arg2: i32, %arg3: memref<128x512xbf16, #tpu.memory_space<vmem>>, %arg4: memref<512x128xbf16, #tpu.memory_space<vmem>>, %arg5: memref<1x128xf32, #tpu.memory_space<vmem>>, %arg6: memref<128x128xf32, #tpu.memory_space<vmem>>, %arg7: memref<128x128xf32, #tpu.memory_space<vmem>>) attributes {dimension_semantics = [#tpu.dimension_semantics<parallel>, #tpu.dimension_semantics<parallel>, #tpu.dimension_semantics<arbitrary>], iteration_bounds = array<i64: 4, 1, 1>, scalar_prefetch = 0 : i64, scratch_operands = 1 : i64, tpu.core_type = #tpu.core_type<tc>, window_params = [{transform_indices = @transform_0, window_bounds = array<i64: 128, 512>}, {transform_indices = @transform_1, window_bounds = array<i64: 512, 128>}, {transform_indices = @transform_2, window_bounds = array<i64: 1, 128>}, {transform_indices = @transform_3, window_bounds = array<i64: 128, 128>}]} {
    %c0_i32 = arith.constant 0 : i32
    %0 = arith.cmpi eq, %arg2, %c0_i32 : i32
    %1 = arith.extui %0 : i1 to i32
    %c0_i32_0 = arith.constant 0 : i32
    %2 = arith.cmpi ne, %1, %c0_i32_0 : i32
    scf.if %2 {
      %cst_10 = arith.constant 0.000000e+00 : f32
      %12 = vector.broadcast %cst_10 : f32 to vector<128x128xf32>
      %c0_11 = arith.constant 0 : index
      %c0_12 = arith.constant 0 : index
      %13 = vector.load %arg7[%c0_11, %c0_12] : memref<128x128xf32, #tpu.memory_space<vmem>>, vector<128x128xf32>
      tpu.vector_store %arg7[%c0_11, %c0_12], %12 {strides = array<i32>} : memref<128x128xf32, #tpu.memory_space<vmem>>, vector<128x128xf32>,
    } else {
    }
    %c0 = arith.constant 0 : index
    %c0_1 = arith.constant 0 : index
    %3 = vector.load %arg7[%c0, %c0_1] : memref<128x128xf32, #tpu.memory_space<vmem>>, vector<128x128xf32>
    %c0_2 = arith.constant 0 : index
    %c0_3 = arith.constant 0 : index
    %4 = vector.load %arg3[%c0_2, %c0_3] : memref<128x512xbf16, #tpu.memory_space<vmem>>, vector<128x512xbf16>
    %c0_4 = arith.constant 0 : index
    %c0_5 = arith.constant 0 : index
    %5 = vector.load %arg4[%c0_4, %c0_5] : memref<512x128xbf16, #tpu.memory_space<vmem>>, vector<512x128xbf16>
    %cst = arith.constant dense<0.000000e+00> : vector<128x128xf32>
    %6 = tpu.matmul %4, %5, %cst {dimension_numbers = #tpu.dot_dimension_numbers<[1], [0], [0], [1], [0, 0, 1, 1], [], []>} : vector<128x512xbf16>, vector<512x128xbf16>, vector<128x128xf32> -> vector<128x128xf32>
    %7 = arith.addf %3, %6 : vector<128x128xf32>
    %c0_6 = arith.constant 0 : index
    %c0_7 = arith.constant 0 : index
    %8 = vector.load %arg7[%c0_6, %c0_7] : memref<128x128xf32, #tpu.memory_space<vmem>>, vector<128x128xf32>
    tpu.vector_store %arg7[%c0_6, %c0_7], %7 {strides = array<i32>} : memref<128x128xf32, #tpu.memory_space<vmem>>, vector<128x128xf32>,
    %c0_i32_8 = arith.constant 0 : i32
    %9 = arith.cmpi eq, %arg2, %c0_i32_8 : i32
    %10 = arith.extui %9 : i1 to i32
    %c0_i32_9 = arith.constant 0 : i32
    %11 = arith.cmpi ne, %10, %c0_i32_9 : i32
    scf.if %11 {
      %c0_10 = arith.constant 0 : index
      %c0_11 = arith.constant 0 : index
      %12 = vector.load %arg7[%c0_10, %c0_11] : memref<128x128xf32, #tpu.memory_space<vmem>>, vector<128x128xf32>
      %c0_12 = arith.constant 0 : index
      %c0_13 = arith.constant 0 : index
      %13 = vector.load %arg5[%c0_12, %c0_13] : memref<1x128xf32, #tpu.memory_space<vmem>>, vector<1x128xf32>
      %14 = vector.broadcast %13 : vector<1x128xf32> to vector<128x128xf32>
      %15 = arith.addf %12, %14 : vector<128x128xf32>
      %cst_14 = arith.constant 0.000000e+00 : f32
      %16 = vector.broadcast %cst_14 : f32 to vector<128x128xf32>
      %17 = arith.maximumf %15, %16 : vector<128x128xf32>
      %c0_15 = arith.constant 0 : index
      %c0_16 = arith.constant 0 : index
      %18 = vector.load %arg6[%c0_15, %c0_16] : memref<128x128xf32, #tpu.memory_space<vmem>>, vector<128x128xf32>
      tpu.vector_store %arg6[%c0_15, %c0_16], %17 {strides = array<i32>} : memref<128x128xf32, #tpu.memory_space<vmem>>, vector<128x128xf32>,
    } else {
    }
    return
  }
  func.func @transform_0(%arg0: i32, %arg1: i32, %arg2: i32) -> (i32, i32) {
    %c0_i32 = arith.constant 0 : i32
    return %arg0, %arg2 : i32, i32
  }
  func.func @transform_1(%arg0: i32, %arg1: i32, %arg2: i32) -> (i32, i32) {
    %c0_i32 = arith.constant 0 : i32
    return %arg2, %arg1 : i32, i32
  }
  func.func @transform_2(%arg0: i32, %arg1: i32, %arg2: i32) -> (i32, i32) {
    %c0_i32 = arith.constant 0 : i32
    %c0_i32_0 = arith.constant 0 : i32
    return %c0_i32, %arg1 : i32, i32
  }
  func.func @transform_3(%arg0: i32, %arg1: i32, %arg2: i32) -> (i32, i32) {
    %c0_i32 = arith.constant 0 : i32
    return %arg0, %arg1 : i32, i32
  }
}

module attributes {stable_mosaic.version = 11 : i64} {
  func.func @_matmul_bias_act_kernel(%arg0: i32, %arg1: i32, %arg2: i32, %arg3: memref<72x1024xbf16, #tpu.memory_space<vmem>>, %arg4: memref<1024x128xbf16, #tpu.memory_space<vmem>>, %arg5: memref<1x128xf32, #tpu.memory_space<vmem>>, %arg6: memref<72x128xf32, #tpu.memory_space<vmem>>, %arg7: memref<72x128xf32, #tpu.memory_space<vmem>>) attributes {dimension_semantics = [#tpu.dimension_semantics<parallel>, #tpu.dimension_semantics<parallel>, #tpu.dimension_semantics<arbitrary>], iteration_bounds = array<i64: 1, 1, 1>, scalar_prefetch = 0 : i64, scratch_operands = 1 : i64, tpu.core_type = #tpu.core_type<tc>, window_params = [{transform_indices = @transform_0, window_bounds = array<i64: 72, 1024>}, {transform_indices = @transform_1, window_bounds = array<i64: 1024, 128>}, {transform_indices = @transform_2, window_bounds = array<i64: 1, 128>}, {transform_indices = @transform_3, window_bounds = array<i64: 72, 128>}]} {
    %c0_i32 = arith.constant 0 : i32
    %0 = arith.cmpi eq, %arg2, %c0_i32 : i32
    %1 = arith.extui %0 : i1 to i32
    %c0_i32_0 = arith.constant 0 : i32
    %2 = arith.cmpi ne, %1, %c0_i32_0 : i32
    scf.if %2 {
      %cst_10 = arith.constant 0.000000e+00 : f32
      %12 = vector.broadcast %cst_10 : f32 to vector<72x128xf32>
      %c0_11 = arith.constant 0 : index
      %c0_12 = arith.constant 0 : index
      %13 = vector.load %arg7[%c0_11, %c0_12] : memref<72x128xf32, #tpu.memory_space<vmem>>, vector<72x128xf32>
      tpu.vector_store %arg7[%c0_11, %c0_12], %12 {strides = array<i32>} : memref<72x128xf32, #tpu.memory_space<vmem>>, vector<72x128xf32>,
    } else {
    }
    %c0 = arith.constant 0 : index
    %c0_1 = arith.constant 0 : index
    %3 = vector.load %arg7[%c0, %c0_1] : memref<72x128xf32, #tpu.memory_space<vmem>>, vector<72x128xf32>
    %c0_2 = arith.constant 0 : index
    %c0_3 = arith.constant 0 : index
    %4 = vector.load %arg3[%c0_2, %c0_3] : memref<72x1024xbf16, #tpu.memory_space<vmem>>, vector<72x1024xbf16>
    %c0_4 = arith.constant 0 : index
    %c0_5 = arith.constant 0 : index
    %5 = vector.load %arg4[%c0_4, %c0_5] : memref<1024x128xbf16, #tpu.memory_space<vmem>>, vector<1024x128xbf16>
    %cst = arith.constant dense<0.000000e+00> : vector<72x128xf32>
    %6 = tpu.matmul %4, %5, %cst {dimension_numbers = #tpu.dot_dimension_numbers<[1], [0], [0], [1], [0, 0, 1, 1], [], []>} : vector<72x1024xbf16>, vector<1024x128xbf16>, vector<72x128xf32> -> vector<72x128xf32>
    %7 = arith.addf %3, %6 : vector<72x128xf32>
    %c0_6 = arith.constant 0 : index
    %c0_7 = arith.constant 0 : index
    %8 = vector.load %arg7[%c0_6, %c0_7] : memref<72x128xf32, #tpu.memory_space<vmem>>, vector<72x128xf32>
    tpu.vector_store %arg7[%c0_6, %c0_7], %7 {strides = array<i32>} : memref<72x128xf32, #tpu.memory_space<vmem>>, vector<72x128xf32>,
    %c0_i32_8 = arith.constant 0 : i32
    %9 = arith.cmpi eq, %arg2, %c0_i32_8 : i32
    %10 = arith.extui %9 : i1 to i32
    %c0_i32_9 = arith.constant 0 : i32
    %11 = arith.cmpi ne, %10, %c0_i32_9 : i32
    scf.if %11 {
      %c0_10 = arith.constant 0 : index
      %c0_11 = arith.constant 0 : index
      %12 = vector.load %arg7[%c0_10, %c0_11] : memref<72x128xf32, #tpu.memory_space<vmem>>, vector<72x128xf32>
      %c0_12 = arith.constant 0 : index
      %c0_13 = arith.constant 0 : index
      %13 = vector.load %arg5[%c0_12, %c0_13] : memref<1x128xf32, #tpu.memory_space<vmem>>, vector<1x128xf32>
      %14 = vector.broadcast %13 : vector<1x128xf32> to vector<72x128xf32>
      %15 = arith.addf %12, %14 : vector<72x128xf32>
      %cst_14 = arith.constant 0.000000e+00 : f32
      %16 = vector.broadcast %cst_14 : f32 to vector<72x128xf32>
      %17 = arith.maximumf %15, %16 : vector<72x128xf32>
      %c0_15 = arith.constant 0 : index
      %c0_16 = arith.constant 0 : index
      %18 = vector.load %arg6[%c0_15, %c0_16] : memref<72x128xf32, #tpu.memory_space<vmem>>, vector<72x128xf32>
      tpu.vector_store %arg6[%c0_15, %c0_16], %17 {strides = array<i32>} : memref<72x128xf32, #tpu.memory_space<vmem>>, vector<72x128xf32>,
    } else {
    }
    return
  }
  func.func @transform_0(%arg0: i32, %arg1: i32, %arg2: i32) -> (i32, i32) {
    %c0_i32 = arith.constant 0 : i32
    return %arg0, %arg2 : i32, i32
  }
  func.func @transform_1(%arg0: i32, %arg1: i32, %arg2: i32) -> (i32, i32) {
    %c0_i32 = arith.constant 0 : i32
    return %arg2, %arg1 : i32, i32
  }
  func.func @transform_2(%arg0: i32, %arg1: i32, %arg2: i32) -> (i32, i32) {
    %c0_i32 = arith.constant 0 : i32
    %c0_i32_0 = arith.constant 0 : i32
    return %c0_i32, %arg1 : i32, i32
  }
  func.func @transform_3(%arg0: i32, %arg1: i32, %arg2: i32) -> (i32, i32) {
    %c0_i32 = arith.constant 0 : i32
    return %arg0, %arg1 : i32, i32
  }
}

module attributes {stable_mosaic.version = 11 : i64} {
  func.func @_matmul_bias_act_kernel(%arg0: i32, %arg1: i32, %arg2: i32, %arg3: memref<8x2048xbf16, #tpu.memory_space<vmem>>, %arg4: memref<2048x256xbf16, #tpu.memory_space<vmem>>, %arg5: memref<1x256xf32, #tpu.memory_space<vmem>>, %arg6: memref<8x256xf32, #tpu.memory_space<vmem>>, %arg7: memref<8x256xf32, #tpu.memory_space<vmem>>) attributes {dimension_semantics = [#tpu.dimension_semantics<parallel>, #tpu.dimension_semantics<parallel>, #tpu.dimension_semantics<arbitrary>], iteration_bounds = array<i64: 1, 1, 1>, scalar_prefetch = 0 : i64, scratch_operands = 1 : i64, tpu.core_type = #tpu.core_type<tc>, window_params = [{transform_indices = @transform_0, window_bounds = array<i64: 8, 2048>}, {transform_indices = @transform_1, window_bounds = array<i64: 2048, 256>}, {transform_indices = @transform_2, window_bounds = array<i64: 1, 256>}, {transform_indices = @transform_3, window_bounds = array<i64: 8, 256>}]} {
    %c0_i32 = arith.constant 0 : i32
    %0 = arith.cmpi eq, %arg2, %c0_i32 : i32
    %1 = arith.extui %0 : i1 to i32
    %c0_i32_0 = arith.constant 0 : i32
    %2 = arith.cmpi ne, %1, %c0_i32_0 : i32
    scf.if %2 {
      %cst_10 = arith.constant 0.000000e+00 : f32
      %12 = vector.broadcast %cst_10 : f32 to vector<8x256xf32>
      %c0_11 = arith.constant 0 : index
      %c0_12 = arith.constant 0 : index
      %13 = vector.load %arg7[%c0_11, %c0_12] : memref<8x256xf32, #tpu.memory_space<vmem>>, vector<8x256xf32>
      tpu.vector_store %arg7[%c0_11, %c0_12], %12 {strides = array<i32>} : memref<8x256xf32, #tpu.memory_space<vmem>>, vector<8x256xf32>,
    } else {
    }
    %c0 = arith.constant 0 : index
    %c0_1 = arith.constant 0 : index
    %3 = vector.load %arg7[%c0, %c0_1] : memref<8x256xf32, #tpu.memory_space<vmem>>, vector<8x256xf32>
    %c0_2 = arith.constant 0 : index
    %c0_3 = arith.constant 0 : index
    %4 = vector.load %arg3[%c0_2, %c0_3] : memref<8x2048xbf16, #tpu.memory_space<vmem>>, vector<8x2048xbf16>
    %c0_4 = arith.constant 0 : index
    %c0_5 = arith.constant 0 : index
    %5 = vector.load %arg4[%c0_4, %c0_5] : memref<2048x256xbf16, #tpu.memory_space<vmem>>, vector<2048x256xbf16>
    %cst = arith.constant dense<0.000000e+00> : vector<8x256xf32>
    %6 = tpu.matmul %4, %5, %cst {dimension_numbers = #tpu.dot_dimension_numbers<[1], [0], [0], [1], [0, 0, 1, 1], [], []>} : vector<8x2048xbf16>, vector<2048x256xbf16>, vector<8x256xf32> -> vector<8x256xf32>
    %7 = arith.addf %3, %6 : vector<8x256xf32>
    %c0_6 = arith.constant 0 : index
    %c0_7 = arith.constant 0 : index
    %8 = vector.load %arg7[%c0_6, %c0_7] : memref<8x256xf32, #tpu.memory_space<vmem>>, vector<8x256xf32>
    tpu.vector_store %arg7[%c0_6, %c0_7], %7 {strides = array<i32>} : memref<8x256xf32, #tpu.memory_space<vmem>>, vector<8x256xf32>,
    %c0_i32_8 = arith.constant 0 : i32
    %9 = arith.cmpi eq, %arg2, %c0_i32_8 : i32
    %10 = arith.extui %9 : i1 to i32
    %c0_i32_9 = arith.constant 0 : i32
    %11 = arith.cmpi ne, %10, %c0_i32_9 : i32
    scf.if %11 {
      %c0_10 = arith.constant 0 : index
      %c0_11 = arith.constant 0 : index
      %12 = vector.load %arg7[%c0_10, %c0_11] : memref<8x256xf32, #tpu.memory_space<vmem>>, vector<8x256xf32>
      %c0_12 = arith.constant 0 : index
      %c0_13 = arith.constant 0 : index
      %13 = vector.load %arg5[%c0_12, %c0_13] : memref<1x256xf32, #tpu.memory_space<vmem>>, vector<1x256xf32>
      %14 = vector.broadcast %13 : vector<1x256xf32> to vector<8x256xf32>
      %15 = arith.addf %12, %14 : vector<8x256xf32>
      %cst_14 = arith.constant 0.000000e+00 : f32
      %16 = vector.broadcast %cst_14 : f32 to vector<8x256xf32>
      %17 = arith.maximumf %15, %16 : vector<8x256xf32>
      %c0_15 = arith.constant 0 : index
      %c0_16 = arith.constant 0 : index
      %18 = vector.load %arg6[%c0_15, %c0_16] : memref<8x256xf32, #tpu.memory_space<vmem>>, vector<8x256xf32>
      tpu.vector_store %arg6[%c0_15, %c0_16], %17 {strides = array<i32>} : memref<8x256xf32, #tpu.memory_space<vmem>>, vector<8x256xf32>,
    } else {
    }
    return
  }
  func.func @transform_0(%arg0: i32, %arg1: i32, %arg2: i32) -> (i32, i32) {
    %c0_i32 = arith.constant 0 : i32
    return %arg0, %arg2 : i32, i32
  }
  func.func @transform_1(%arg0: i32, %arg1: i32, %arg2: i32) -> (i32, i32) {
    %c0_i32 = arith.constant 0 : i32
    return %arg2, %arg1 : i32, i32
  }
  func.func @transform_2(%arg0: i32, %arg1: i32, %arg2: i32) -> (i32, i32) {
    %c0_i32 = arith.constant 0 : i32
    %c0_i32_0 = arith.constant 0 : i32
    return %c0_i32, %arg1 : i32, i32
  }
  func.func @transform_3(%arg0: i32, %arg1: i32, %arg2: i32) -> (i32, i32) {
    %c0_i32 = arith.constant 0 : i32
    return %arg0, %arg1 : i32, i32
  }
}

module attributes {stable_mosaic.version = 11 : i64} {
  func.func @_latent_kernel(%arg0: memref<8x1024xbf16, #tpu.memory_space<vmem>>, %arg1: memref<1024x256xbf16, #tpu.memory_space<vmem>>, %arg2: memref<1x256xf32, #tpu.memory_space<vmem>>, %arg3: memref<8x128xf32, #tpu.memory_space<vmem>>, %arg4: memref<8x128xf32, #tpu.memory_space<vmem>>, %arg5: memref<8x128xf32, #tpu.memory_space<vmem>>, %arg6: memref<8x128xf32, #tpu.memory_space<vmem>>) attributes {dimension_semantics = [], scalar_prefetch = 0 : i64, scratch_operands = 0 : i64, tpu.core_type = #tpu.core_type<tc>} {
    %c0 = arith.constant 0 : index
    %c0_0 = arith.constant 0 : index
    %0 = vector.load %arg0[%c0, %c0_0] : memref<8x1024xbf16, #tpu.memory_space<vmem>>, vector<8x1024xbf16>
    %c0_1 = arith.constant 0 : index
    %c0_2 = arith.constant 0 : index
    %1 = vector.load %arg1[%c0_1, %c0_2] : memref<1024x256xbf16, #tpu.memory_space<vmem>>, vector<1024x256xbf16>
    %cst = arith.constant dense<0.000000e+00> : vector<8x256xf32>
    %2 = tpu.matmul %0, %1, %cst {dimension_numbers = #tpu.dot_dimension_numbers<[1], [0], [0], [1], [0, 0, 1, 1], [], []>} : vector<8x1024xbf16>, vector<1024x256xbf16>, vector<8x256xf32> -> vector<8x256xf32>
    %c0_3 = arith.constant 0 : index
    %c0_4 = arith.constant 0 : index
    %3 = vector.load %arg2[%c0_3, %c0_4] : memref<1x256xf32, #tpu.memory_space<vmem>>, vector<1x256xf32>
    %4 = vector.broadcast %3 : vector<1x256xf32> to vector<8x256xf32>
    %5 = arith.addf %2, %4 : vector<8x256xf32>
    %6 = vector.extract_strided_slice %5 {offsets = [0, 0], sizes = [8, 128], strides = [1, 1]} : vector<8x256xf32> to vector<8x128xf32>
    %7 = vector.extract_strided_slice %5 {offsets = [0, 128], sizes = [8, 128], strides = [1, 1]} : vector<8x256xf32> to vector<8x128xf32>
    %c0_5 = arith.constant 0 : index
    %c0_6 = arith.constant 0 : index
    %8 = vector.load %arg4[%c0_5, %c0_6] : memref<8x128xf32, #tpu.memory_space<vmem>>, vector<8x128xf32>
    tpu.vector_store %arg4[%c0_5, %c0_6], %6 {strides = array<i32>} : memref<8x128xf32, #tpu.memory_space<vmem>>, vector<8x128xf32>,
    %c0_7 = arith.constant 0 : index
    %c0_8 = arith.constant 0 : index
    %9 = vector.load %arg5[%c0_7, %c0_8] : memref<8x128xf32, #tpu.memory_space<vmem>>, vector<8x128xf32>
    tpu.vector_store %arg5[%c0_7, %c0_8], %7 {strides = array<i32>} : memref<8x128xf32, #tpu.memory_space<vmem>>, vector<8x128xf32>,
    %c0_9 = arith.constant 0 : index
    %c0_10 = arith.constant 0 : index
    %10 = vector.load %arg3[%c0_9, %c0_10] : memref<8x128xf32, #tpu.memory_space<vmem>>, vector<8x128xf32>
    %11 = math.exp %7 : vector<8x128xf32>
    %12 = arith.mulf %10, %11 : vector<8x128xf32>
    %13 = arith.addf %12, %6 : vector<8x128xf32>
    %c0_11 = arith.constant 0 : index
    %c0_12 = arith.constant 0 : index
    %14 = vector.load %arg6[%c0_11, %c0_12] : memref<8x128xf32, #tpu.memory_space<vmem>>, vector<8x128xf32>
    tpu.vector_store %arg6[%c0_11, %c0_12], %13 {strides = array<i32>} : memref<8x128xf32, #tpu.memory_space<vmem>>, vector<8x128xf32>,
    return
  }
}

module attributes {stable_mosaic.version = 11 : i64} {
  func.func @_matmul_bias_act_kernel(%arg0: i32, %arg1: i32, %arg2: i32, %arg3: memref<8x128xbf16, #tpu.memory_space<vmem>>, %arg4: memref<128x256xbf16, #tpu.memory_space<vmem>>, %arg5: memref<1x256xf32, #tpu.memory_space<vmem>>, %arg6: memref<8x256xf32, #tpu.memory_space<vmem>>, %arg7: memref<8x256xf32, #tpu.memory_space<vmem>>) attributes {dimension_semantics = [#tpu.dimension_semantics<parallel>, #tpu.dimension_semantics<parallel>, #tpu.dimension_semantics<arbitrary>], iteration_bounds = array<i64: 1, 4, 1>, scalar_prefetch = 0 : i64, scratch_operands = 1 : i64, tpu.core_type = #tpu.core_type<tc>, window_params = [{transform_indices = @transform_0, window_bounds = array<i64: 8, 128>}, {transform_indices = @transform_1, window_bounds = array<i64: 128, 256>}, {transform_indices = @transform_2, window_bounds = array<i64: 1, 256>}, {transform_indices = @transform_3, window_bounds = array<i64: 8, 256>}]} {
    %c0_i32 = arith.constant 0 : i32
    %0 = arith.cmpi eq, %arg2, %c0_i32 : i32
    %1 = arith.extui %0 : i1 to i32
    %c0_i32_0 = arith.constant 0 : i32
    %2 = arith.cmpi ne, %1, %c0_i32_0 : i32
    scf.if %2 {
      %cst_10 = arith.constant 0.000000e+00 : f32
      %12 = vector.broadcast %cst_10 : f32 to vector<8x256xf32>
      %c0_11 = arith.constant 0 : index
      %c0_12 = arith.constant 0 : index
      %13 = vector.load %arg7[%c0_11, %c0_12] : memref<8x256xf32, #tpu.memory_space<vmem>>, vector<8x256xf32>
      tpu.vector_store %arg7[%c0_11, %c0_12], %12 {strides = array<i32>} : memref<8x256xf32, #tpu.memory_space<vmem>>, vector<8x256xf32>,
    } else {
    }
    %c0 = arith.constant 0 : index
    %c0_1 = arith.constant 0 : index
    %3 = vector.load %arg7[%c0, %c0_1] : memref<8x256xf32, #tpu.memory_space<vmem>>, vector<8x256xf32>
    %c0_2 = arith.constant 0 : index
    %c0_3 = arith.constant 0 : index
    %4 = vector.load %arg3[%c0_2, %c0_3] : memref<8x128xbf16, #tpu.memory_space<vmem>>, vector<8x128xbf16>
    %c0_4 = arith.constant 0 : index
    %c0_5 = arith.constant 0 : index
    %5 = vector.load %arg4[%c0_4, %c0_5] : memref<128x256xbf16, #tpu.memory_space<vmem>>, vector<128x256xbf16>
    %cst = arith.constant dense<0.000000e+00> : vector<8x256xf32>
    %6 = tpu.matmul %4, %5, %cst {dimension_numbers = #tpu.dot_dimension_numbers<[1], [0], [0], [1], [0, 0, 1, 1], [], []>} : vector<8x128xbf16>, vector<128x256xbf16>, vector<8x256xf32> -> vector<8x256xf32>
    %7 = arith.addf %3, %6 : vector<8x256xf32>
    %c0_6 = arith.constant 0 : index
    %c0_7 = arith.constant 0 : index
    %8 = vector.load %arg7[%c0_6, %c0_7] : memref<8x256xf32, #tpu.memory_space<vmem>>, vector<8x256xf32>
    tpu.vector_store %arg7[%c0_6, %c0_7], %7 {strides = array<i32>} : memref<8x256xf32, #tpu.memory_space<vmem>>, vector<8x256xf32>,
    %c0_i32_8 = arith.constant 0 : i32
    %9 = arith.cmpi eq, %arg2, %c0_i32_8 : i32
    %10 = arith.extui %9 : i1 to i32
    %c0_i32_9 = arith.constant 0 : i32
    %11 = arith.cmpi ne, %10, %c0_i32_9 : i32
    scf.if %11 {
      %c0_10 = arith.constant 0 : index
      %c0_11 = arith.constant 0 : index
      %12 = vector.load %arg7[%c0_10, %c0_11] : memref<8x256xf32, #tpu.memory_space<vmem>>, vector<8x256xf32>
      %c0_12 = arith.constant 0 : index
      %c0_13 = arith.constant 0 : index
      %13 = vector.load %arg5[%c0_12, %c0_13] : memref<1x256xf32, #tpu.memory_space<vmem>>, vector<1x256xf32>
      %14 = vector.broadcast %13 : vector<1x256xf32> to vector<8x256xf32>
      %15 = arith.addf %12, %14 : vector<8x256xf32>
      %cst_14 = arith.constant 0.000000e+00 : f32
      %16 = vector.broadcast %cst_14 : f32 to vector<8x256xf32>
      %17 = arith.maximumf %15, %16 : vector<8x256xf32>
      %c0_15 = arith.constant 0 : index
      %c0_16 = arith.constant 0 : index
      %18 = vector.load %arg6[%c0_15, %c0_16] : memref<8x256xf32, #tpu.memory_space<vmem>>, vector<8x256xf32>
      tpu.vector_store %arg6[%c0_15, %c0_16], %17 {strides = array<i32>} : memref<8x256xf32, #tpu.memory_space<vmem>>, vector<8x256xf32>,
    } else {
    }
    return
  }
  func.func @transform_0(%arg0: i32, %arg1: i32, %arg2: i32) -> (i32, i32) {
    %c0_i32 = arith.constant 0 : i32
    return %arg0, %arg2 : i32, i32
  }
  func.func @transform_1(%arg0: i32, %arg1: i32, %arg2: i32) -> (i32, i32) {
    %c0_i32 = arith.constant 0 : i32
    return %arg2, %arg1 : i32, i32
  }
  func.func @transform_2(%arg0: i32, %arg1: i32, %arg2: i32) -> (i32, i32) {
    %c0_i32 = arith.constant 0 : i32
    %c0_i32_0 = arith.constant 0 : i32
    return %c0_i32, %arg1 : i32, i32
  }
  func.func @transform_3(%arg0: i32, %arg1: i32, %arg2: i32) -> (i32, i32) {
    %c0_i32 = arith.constant 0 : i32
    return %arg0, %arg1 : i32, i32
  }
}

module attributes {stable_mosaic.version = 11 : i64} {
  func.func @_matmul_bias_act_kernel(%arg0: i32, %arg1: i32, %arg2: i32, %arg3: memref<8x1024xbf16, #tpu.memory_space<vmem>>, %arg4: memref<1024x128xbf16, #tpu.memory_space<vmem>>, %arg5: memref<1x128xf32, #tpu.memory_space<vmem>>, %arg6: memref<8x128xf32, #tpu.memory_space<vmem>>, %arg7: memref<8x128xf32, #tpu.memory_space<vmem>>) attributes {dimension_semantics = [#tpu.dimension_semantics<parallel>, #tpu.dimension_semantics<parallel>, #tpu.dimension_semantics<arbitrary>], iteration_bounds = array<i64: 1, 25, 1>, scalar_prefetch = 0 : i64, scratch_operands = 1 : i64, tpu.core_type = #tpu.core_type<tc>, window_params = [{transform_indices = @transform_0, window_bounds = array<i64: 8, 1024>}, {transform_indices = @transform_1, window_bounds = array<i64: 1024, 128>}, {transform_indices = @transform_2, window_bounds = array<i64: 1, 128>}, {transform_indices = @transform_3, window_bounds = array<i64: 8, 128>}]} {
    %c0_i32 = arith.constant 0 : i32
    %0 = arith.cmpi eq, %arg2, %c0_i32 : i32
    %1 = arith.extui %0 : i1 to i32
    %c0_i32_0 = arith.constant 0 : i32
    %2 = arith.cmpi ne, %1, %c0_i32_0 : i32
    scf.if %2 {
      %cst_10 = arith.constant 0.000000e+00 : f32
      %12 = vector.broadcast %cst_10 : f32 to vector<8x128xf32>
      %c0_11 = arith.constant 0 : index
      %c0_12 = arith.constant 0 : index
      %13 = vector.load %arg7[%c0_11, %c0_12] : memref<8x128xf32, #tpu.memory_space<vmem>>, vector<8x128xf32>
      tpu.vector_store %arg7[%c0_11, %c0_12], %12 {strides = array<i32>} : memref<8x128xf32, #tpu.memory_space<vmem>>, vector<8x128xf32>,
    } else {
    }
    %c0 = arith.constant 0 : index
    %c0_1 = arith.constant 0 : index
    %3 = vector.load %arg7[%c0, %c0_1] : memref<8x128xf32, #tpu.memory_space<vmem>>, vector<8x128xf32>
    %c0_2 = arith.constant 0 : index
    %c0_3 = arith.constant 0 : index
    %4 = vector.load %arg3[%c0_2, %c0_3] : memref<8x1024xbf16, #tpu.memory_space<vmem>>, vector<8x1024xbf16>
    %c0_4 = arith.constant 0 : index
    %c0_5 = arith.constant 0 : index
    %5 = vector.load %arg4[%c0_4, %c0_5] : memref<1024x128xbf16, #tpu.memory_space<vmem>>, vector<1024x128xbf16>
    %cst = arith.constant dense<0.000000e+00> : vector<8x128xf32>
    %6 = tpu.matmul %4, %5, %cst {dimension_numbers = #tpu.dot_dimension_numbers<[1], [0], [0], [1], [0, 0, 1, 1], [], []>} : vector<8x1024xbf16>, vector<1024x128xbf16>, vector<8x128xf32> -> vector<8x128xf32>
    %7 = arith.addf %3, %6 : vector<8x128xf32>
    %c0_6 = arith.constant 0 : index
    %c0_7 = arith.constant 0 : index
    %8 = vector.load %arg7[%c0_6, %c0_7] : memref<8x128xf32, #tpu.memory_space<vmem>>, vector<8x128xf32>
    tpu.vector_store %arg7[%c0_6, %c0_7], %7 {strides = array<i32>} : memref<8x128xf32, #tpu.memory_space<vmem>>, vector<8x128xf32>,
    %c0_i32_8 = arith.constant 0 : i32
    %9 = arith.cmpi eq, %arg2, %c0_i32_8 : i32
    %10 = arith.extui %9 : i1 to i32
    %c0_i32_9 = arith.constant 0 : i32
    %11 = arith.cmpi ne, %10, %c0_i32_9 : i32
    scf.if %11 {
      %c0_10 = arith.constant 0 : index
      %c0_11 = arith.constant 0 : index
      %12 = vector.load %arg7[%c0_10, %c0_11] : memref<8x128xf32, #tpu.memory_space<vmem>>, vector<8x128xf32>
      %c0_12 = arith.constant 0 : index
      %c0_13 = arith.constant 0 : index
      %13 = vector.load %arg5[%c0_12, %c0_13] : memref<1x128xf32, #tpu.memory_space<vmem>>, vector<1x128xf32>
      %14 = vector.broadcast %13 : vector<1x128xf32> to vector<8x128xf32>
      %15 = arith.addf %12, %14 : vector<8x128xf32>
      %cst_14 = arith.constant 0.000000e+00 : f32
      %16 = vector.broadcast %cst_14 : f32 to vector<8x128xf32>
      %17 = arith.maximumf %15, %16 : vector<8x128xf32>
      %c0_15 = arith.constant 0 : index
      %c0_16 = arith.constant 0 : index
      %18 = vector.load %arg6[%c0_15, %c0_16] : memref<8x128xf32, #tpu.memory_space<vmem>>, vector<8x128xf32>
      tpu.vector_store %arg6[%c0_15, %c0_16], %17 {strides = array<i32>} : memref<8x128xf32, #tpu.memory_space<vmem>>, vector<8x128xf32>,
    } else {
    }
    return
  }
  func.func @transform_0(%arg0: i32, %arg1: i32, %arg2: i32) -> (i32, i32) {
    %c0_i32 = arith.constant 0 : i32
    return %arg0, %arg2 : i32, i32
  }
  func.func @transform_1(%arg0: i32, %arg1: i32, %arg2: i32) -> (i32, i32) {
    %c0_i32 = arith.constant 0 : i32
    return %arg2, %arg1 : i32, i32
  }
  func.func @transform_2(%arg0: i32, %arg1: i32, %arg2: i32) -> (i32, i32) {
    %c0_i32 = arith.constant 0 : i32
    %c0_i32_0 = arith.constant 0 : i32
    return %c0_i32, %arg1 : i32, i32
  }
  func.func @transform_3(%arg0: i32, %arg1: i32, %arg2: i32) -> (i32, i32) {
    %c0_i32 = arith.constant 0 : i32
    return %arg0, %arg1 : i32, i32
  }
}

module attributes {stable_mosaic.version = 11 : i64} {
  func.func @_matmul_bias_act_kernel(%arg0: i32, %arg1: i32, %arg2: i32, %arg3: memref<56x128xbf16, #tpu.memory_space<vmem>>, %arg4: memref<128x128xbf16, #tpu.memory_space<vmem>>, %arg5: memref<1x128xf32, #tpu.memory_space<vmem>>, %arg6: memref<56x128xf32, #tpu.memory_space<vmem>>, %arg7: memref<56x128xf32, #tpu.memory_space<vmem>>) attributes {dimension_semantics = [#tpu.dimension_semantics<parallel>, #tpu.dimension_semantics<parallel>, #tpu.dimension_semantics<arbitrary>], iteration_bounds = array<i64: 1, 13, 1>, scalar_prefetch = 0 : i64, scratch_operands = 1 : i64, tpu.core_type = #tpu.core_type<tc>, window_params = [{transform_indices = @transform_0, window_bounds = array<i64: 56, 128>}, {transform_indices = @transform_1, window_bounds = array<i64: 128, 128>}, {transform_indices = @transform_2, window_bounds = array<i64: 1, 128>}, {transform_indices = @transform_3, window_bounds = array<i64: 56, 128>}]} {
    %c0_i32 = arith.constant 0 : i32
    %0 = arith.cmpi eq, %arg2, %c0_i32 : i32
    %1 = arith.extui %0 : i1 to i32
    %c0_i32_0 = arith.constant 0 : i32
    %2 = arith.cmpi ne, %1, %c0_i32_0 : i32
    scf.if %2 {
      %cst_10 = arith.constant 0.000000e+00 : f32
      %12 = vector.broadcast %cst_10 : f32 to vector<56x128xf32>
      %c0_11 = arith.constant 0 : index
      %c0_12 = arith.constant 0 : index
      %13 = vector.load %arg7[%c0_11, %c0_12] : memref<56x128xf32, #tpu.memory_space<vmem>>, vector<56x128xf32>
      tpu.vector_store %arg7[%c0_11, %c0_12], %12 {strides = array<i32>} : memref<56x128xf32, #tpu.memory_space<vmem>>, vector<56x128xf32>,
    } else {
    }
    %c0 = arith.constant 0 : index
    %c0_1 = arith.constant 0 : index
    %3 = vector.load %arg7[%c0, %c0_1] : memref<56x128xf32, #tpu.memory_space<vmem>>, vector<56x128xf32>
    %c0_2 = arith.constant 0 : index
    %c0_3 = arith.constant 0 : index
    %4 = vector.load %arg3[%c0_2, %c0_3] : memref<56x128xbf16, #tpu.memory_space<vmem>>, vector<56x128xbf16>
    %c0_4 = arith.constant 0 : index
    %c0_5 = arith.constant 0 : index
    %5 = vector.load %arg4[%c0_4, %c0_5] : memref<128x128xbf16, #tpu.memory_space<vmem>>, vector<128x128xbf16>
    %cst = arith.constant dense<0.000000e+00> : vector<56x128xf32>
    %6 = tpu.matmul %4, %5, %cst {dimension_numbers = #tpu.dot_dimension_numbers<[1], [0], [0], [1], [0, 0, 1, 1], [], []>} : vector<56x128xbf16>, vector<128x128xbf16>, vector<56x128xf32> -> vector<56x128xf32>
    %7 = arith.addf %3, %6 : vector<56x128xf32>
    %c0_6 = arith.constant 0 : index
    %c0_7 = arith.constant 0 : index
    %8 = vector.load %arg7[%c0_6, %c0_7] : memref<56x128xf32, #tpu.memory_space<vmem>>, vector<56x128xf32>
    tpu.vector_store %arg7[%c0_6, %c0_7], %7 {strides = array<i32>} : memref<56x128xf32, #tpu.memory_space<vmem>>, vector<56x128xf32>,
    %c0_i32_8 = arith.constant 0 : i32
    %9 = arith.cmpi eq, %arg2, %c0_i32_8 : i32
    %10 = arith.extui %9 : i1 to i32
    %c0_i32_9 = arith.constant 0 : i32
    %11 = arith.cmpi ne, %10, %c0_i32_9 : i32
    scf.if %11 {
      %c0_10 = arith.constant 0 : index
      %c0_11 = arith.constant 0 : index
      %12 = vector.load %arg7[%c0_10, %c0_11] : memref<56x128xf32, #tpu.memory_space<vmem>>, vector<56x128xf32>
      %c0_12 = arith.constant 0 : index
      %c0_13 = arith.constant 0 : index
      %13 = vector.load %arg5[%c0_12, %c0_13] : memref<1x128xf32, #tpu.memory_space<vmem>>, vector<1x128xf32>
      %14 = vector.broadcast %13 : vector<1x128xf32> to vector<56x128xf32>
      %15 = arith.addf %12, %14 : vector<56x128xf32>
      %c0_14 = arith.constant 0 : index
      %c0_15 = arith.constant 0 : index
      %16 = vector.load %arg6[%c0_14, %c0_15] : memref<56x128xf32, #tpu.memory_space<vmem>>, vector<56x128xf32>
      tpu.vector_store %arg6[%c0_14, %c0_15], %15 {strides = array<i32>} : memref<56x128xf32, #tpu.memory_space<vmem>>, vector<56x128xf32>,
    } else {
    }
    return
  }
  func.func @transform_0(%arg0: i32, %arg1: i32, %arg2: i32) -> (i32, i32) {
    %c0_i32 = arith.constant 0 : i32
    return %arg0, %arg2 : i32, i32
  }
  func.func @transform_1(%arg0: i32, %arg1: i32, %arg2: i32) -> (i32, i32) {
    %c0_i32 = arith.constant 0 : i32
    return %arg2, %arg1 : i32, i32
  }
  func.func @transform_2(%arg0: i32, %arg1: i32, %arg2: i32) -> (i32, i32) {
    %c0_i32 = arith.constant 0 : i32
    %c0_i32_0 = arith.constant 0 : i32
    return %c0_i32, %arg1 : i32, i32
  }
  func.func @transform_3(%arg0: i32, %arg1: i32, %arg2: i32) -> (i32, i32) {
    %c0_i32 = arith.constant 0 : i32
    return %arg0, %arg1 : i32, i32
  }
}

module attributes {stable_mosaic.version = 11 : i64} {
  func.func @_matmul_bias_act_kernel(%arg0: i32, %arg1: i32, %arg2: i32, %arg3: memref<128x128xbf16, #tpu.memory_space<vmem>>, %arg4: memref<128x128xbf16, #tpu.memory_space<vmem>>, %arg5: memref<1x128xf32, #tpu.memory_space<vmem>>, %arg6: memref<128x128xf32, #tpu.memory_space<vmem>>, %arg7: memref<128x128xf32, #tpu.memory_space<vmem>>) attributes {dimension_semantics = [#tpu.dimension_semantics<parallel>, #tpu.dimension_semantics<parallel>, #tpu.dimension_semantics<arbitrary>], iteration_bounds = array<i64: 3, 9, 1>, scalar_prefetch = 0 : i64, scratch_operands = 1 : i64, tpu.core_type = #tpu.core_type<tc>, window_params = [{transform_indices = @transform_0, window_bounds = array<i64: 128, 128>}, {transform_indices = @transform_1, window_bounds = array<i64: 128, 128>}, {transform_indices = @transform_2, window_bounds = array<i64: 1, 128>}, {transform_indices = @transform_3, window_bounds = array<i64: 128, 128>}]} {
    %c0_i32 = arith.constant 0 : i32
    %0 = arith.cmpi eq, %arg2, %c0_i32 : i32
    %1 = arith.extui %0 : i1 to i32
    %c0_i32_0 = arith.constant 0 : i32
    %2 = arith.cmpi ne, %1, %c0_i32_0 : i32
    scf.if %2 {
      %cst_10 = arith.constant 0.000000e+00 : f32
      %12 = vector.broadcast %cst_10 : f32 to vector<128x128xf32>
      %c0_11 = arith.constant 0 : index
      %c0_12 = arith.constant 0 : index
      %13 = vector.load %arg7[%c0_11, %c0_12] : memref<128x128xf32, #tpu.memory_space<vmem>>, vector<128x128xf32>
      tpu.vector_store %arg7[%c0_11, %c0_12], %12 {strides = array<i32>} : memref<128x128xf32, #tpu.memory_space<vmem>>, vector<128x128xf32>,
    } else {
    }
    %c0 = arith.constant 0 : index
    %c0_1 = arith.constant 0 : index
    %3 = vector.load %arg7[%c0, %c0_1] : memref<128x128xf32, #tpu.memory_space<vmem>>, vector<128x128xf32>
    %c0_2 = arith.constant 0 : index
    %c0_3 = arith.constant 0 : index
    %4 = vector.load %arg3[%c0_2, %c0_3] : memref<128x128xbf16, #tpu.memory_space<vmem>>, vector<128x128xbf16>
    %c0_4 = arith.constant 0 : index
    %c0_5 = arith.constant 0 : index
    %5 = vector.load %arg4[%c0_4, %c0_5] : memref<128x128xbf16, #tpu.memory_space<vmem>>, vector<128x128xbf16>
    %cst = arith.constant dense<0.000000e+00> : vector<128x128xf32>
    %6 = tpu.matmul %4, %5, %cst {dimension_numbers = #tpu.dot_dimension_numbers<[1], [0], [0], [1], [0, 0, 1, 1], [], []>} : vector<128x128xbf16>, vector<128x128xbf16>, vector<128x128xf32> -> vector<128x128xf32>
    %7 = arith.addf %3, %6 : vector<128x128xf32>
    %c0_6 = arith.constant 0 : index
    %c0_7 = arith.constant 0 : index
    %8 = vector.load %arg7[%c0_6, %c0_7] : memref<128x128xf32, #tpu.memory_space<vmem>>, vector<128x128xf32>
    tpu.vector_store %arg7[%c0_6, %c0_7], %7 {strides = array<i32>} : memref<128x128xf32, #tpu.memory_space<vmem>>, vector<128x128xf32>,
    %c0_i32_8 = arith.constant 0 : i32
    %9 = arith.cmpi eq, %arg2, %c0_i32_8 : i32
    %10 = arith.extui %9 : i1 to i32
    %c0_i32_9 = arith.constant 0 : i32
    %11 = arith.cmpi ne, %10, %c0_i32_9 : i32
    scf.if %11 {
      %c0_10 = arith.constant 0 : index
      %c0_11 = arith.constant 0 : index
      %12 = vector.load %arg7[%c0_10, %c0_11] : memref<128x128xf32, #tpu.memory_space<vmem>>, vector<128x128xf32>
      %c0_12 = arith.constant 0 : index
      %c0_13 = arith.constant 0 : index
      %13 = vector.load %arg5[%c0_12, %c0_13] : memref<1x128xf32, #tpu.memory_space<vmem>>, vector<1x128xf32>
      %14 = vector.broadcast %13 : vector<1x128xf32> to vector<128x128xf32>
      %15 = arith.addf %12, %14 : vector<128x128xf32>
      %c0_14 = arith.constant 0 : index
      %c0_15 = arith.constant 0 : index
      %16 = vector.load %arg6[%c0_14, %c0_15] : memref<128x128xf32, #tpu.memory_space<vmem>>, vector<128x128xf32>
      tpu.vector_store %arg6[%c0_14, %c0_15], %15 {strides = array<i32>} : memref<128x128xf32, #tpu.memory_space<vmem>>, vector<128x128xf32>,
    } else {
    }
    return
  }
  func.func @transform_0(%arg0: i32, %arg1: i32, %arg2: i32) -> (i32, i32) {
    %c0_i32 = arith.constant 0 : i32
    return %arg0, %arg2 : i32, i32
  }
  func.func @transform_1(%arg0: i32, %arg1: i32, %arg2: i32) -> (i32, i32) {
    %c0_i32 = arith.constant 0 : i32
    return %arg2, %arg1 : i32, i32
  }
  func.func @transform_2(%arg0: i32, %arg1: i32, %arg2: i32) -> (i32, i32) {
    %c0_i32 = arith.constant 0 : i32
    %c0_i32_0 = arith.constant 0 : i32
    return %c0_i32, %arg1 : i32, i32
  }
  func.func @transform_3(%arg0: i32, %arg1: i32, %arg2: i32) -> (i32, i32) {
    %c0_i32 = arith.constant 0 : i32
    return %arg0, %arg1 : i32, i32
  }
}

module attributes {stable_mosaic.version = 11 : i64} {
  func.func @_matmul_bias_act_kernel(%arg0: i32, %arg1: i32, %arg2: i32, %arg3: memref<128x128xbf16, #tpu.memory_space<vmem>>, %arg4: memref<128x128xbf16, #tpu.memory_space<vmem>>, %arg5: memref<1x128xf32, #tpu.memory_space<vmem>>, %arg6: memref<128x128xf32, #tpu.memory_space<vmem>>, %arg7: memref<128x128xf32, #tpu.memory_space<vmem>>) attributes {dimension_semantics = [#tpu.dimension_semantics<parallel>, #tpu.dimension_semantics<parallel>, #tpu.dimension_semantics<arbitrary>], iteration_bounds = array<i64: 15, 1, 1>, scalar_prefetch = 0 : i64, scratch_operands = 1 : i64, tpu.core_type = #tpu.core_type<tc>, window_params = [{transform_indices = @transform_0, window_bounds = array<i64: 128, 128>}, {transform_indices = @transform_1, window_bounds = array<i64: 128, 128>}, {transform_indices = @transform_2, window_bounds = array<i64: 1, 128>}, {transform_indices = @transform_3, window_bounds = array<i64: 128, 128>}]} {
    %c0_i32 = arith.constant 0 : i32
    %0 = arith.cmpi eq, %arg2, %c0_i32 : i32
    %1 = arith.extui %0 : i1 to i32
    %c0_i32_0 = arith.constant 0 : i32
    %2 = arith.cmpi ne, %1, %c0_i32_0 : i32
    scf.if %2 {
      %cst_10 = arith.constant 0.000000e+00 : f32
      %12 = vector.broadcast %cst_10 : f32 to vector<128x128xf32>
      %c0_11 = arith.constant 0 : index
      %c0_12 = arith.constant 0 : index
      %13 = vector.load %arg7[%c0_11, %c0_12] : memref<128x128xf32, #tpu.memory_space<vmem>>, vector<128x128xf32>
      tpu.vector_store %arg7[%c0_11, %c0_12], %12 {strides = array<i32>} : memref<128x128xf32, #tpu.memory_space<vmem>>, vector<128x128xf32>,
    } else {
    }
    %c0 = arith.constant 0 : index
    %c0_1 = arith.constant 0 : index
    %3 = vector.load %arg7[%c0, %c0_1] : memref<128x128xf32, #tpu.memory_space<vmem>>, vector<128x128xf32>
    %c0_2 = arith.constant 0 : index
    %c0_3 = arith.constant 0 : index
    %4 = vector.load %arg3[%c0_2, %c0_3] : memref<128x128xbf16, #tpu.memory_space<vmem>>, vector<128x128xbf16>
    %c0_4 = arith.constant 0 : index
    %c0_5 = arith.constant 0 : index
    %5 = vector.load %arg4[%c0_4, %c0_5] : memref<128x128xbf16, #tpu.memory_space<vmem>>, vector<128x128xbf16>
    %cst = arith.constant dense<0.000000e+00> : vector<128x128xf32>
    %6 = tpu.matmul %4, %5, %cst {dimension_numbers = #tpu.dot_dimension_numbers<[1], [0], [0], [1], [0, 0, 1, 1], [], []>} : vector<128x128xbf16>, vector<128x128xbf16>, vector<128x128xf32> -> vector<128x128xf32>
    %7 = arith.addf %3, %6 : vector<128x128xf32>
    %c0_6 = arith.constant 0 : index
    %c0_7 = arith.constant 0 : index
    %8 = vector.load %arg7[%c0_6, %c0_7] : memref<128x128xf32, #tpu.memory_space<vmem>>, vector<128x128xf32>
    tpu.vector_store %arg7[%c0_6, %c0_7], %7 {strides = array<i32>} : memref<128x128xf32, #tpu.memory_space<vmem>>, vector<128x128xf32>,
    %c0_i32_8 = arith.constant 0 : i32
    %9 = arith.cmpi eq, %arg2, %c0_i32_8 : i32
    %10 = arith.extui %9 : i1 to i32
    %c0_i32_9 = arith.constant 0 : i32
    %11 = arith.cmpi ne, %10, %c0_i32_9 : i32
    scf.if %11 {
      %c0_10 = arith.constant 0 : index
      %c0_11 = arith.constant 0 : index
      %12 = vector.load %arg7[%c0_10, %c0_11] : memref<128x128xf32, #tpu.memory_space<vmem>>, vector<128x128xf32>
      %c0_12 = arith.constant 0 : index
      %c0_13 = arith.constant 0 : index
      %13 = vector.load %arg5[%c0_12, %c0_13] : memref<1x128xf32, #tpu.memory_space<vmem>>, vector<1x128xf32>
      %14 = vector.broadcast %13 : vector<1x128xf32> to vector<128x128xf32>
      %15 = arith.addf %12, %14 : vector<128x128xf32>
      %c0_14 = arith.constant 0 : index
      %c0_15 = arith.constant 0 : index
      %16 = vector.load %arg6[%c0_14, %c0_15] : memref<128x128xf32, #tpu.memory_space<vmem>>, vector<128x128xf32>
      tpu.vector_store %arg6[%c0_14, %c0_15], %15 {strides = array<i32>} : memref<128x128xf32, #tpu.memory_space<vmem>>, vector<128x128xf32>,
    } else {
    }
    return
  }
  func.func @transform_0(%arg0: i32, %arg1: i32, %arg2: i32) -> (i32, i32) {
    %c0_i32 = arith.constant 0 : i32
    return %arg0, %arg2 : i32, i32
  }
  func.func @transform_1(%arg0: i32, %arg1: i32, %arg2: i32) -> (i32, i32) {
    %c0_i32 = arith.constant 0 : i32
    return %arg2, %arg1 : i32, i32
  }
  func.func @transform_2(%arg0: i32, %arg1: i32, %arg2: i32) -> (i32, i32) {
    %c0_i32 = arith.constant 0 : i32
    %c0_i32_0 = arith.constant 0 : i32
    return %c0_i32, %arg1 : i32, i32
  }
  func.func @transform_3(%arg0: i32, %arg1: i32, %arg2: i32) -> (i32, i32) {
    %c0_i32 = arith.constant 0 : i32
    return %arg0, %arg1 : i32, i32
  }
}

</mosaic_0001>

<bundles_post_ra>
// kernel: vae_forward.10
= control target key start
LH: loop header
LB: loop body
LE: loop exit
PB: predicated region body
PF: predicated region fallthrough
CT: control target
= control target key end

     0   :  { %s916_s12 = smov 0   ;;  %s918_s13 = smov 0   ;;  %s1008_s0 = inlined_call_operand.vmem [shape: bf16[2048,128], index: 0, kind: input, shape index: {}]   ;;  %s1009_s1 = inlined_call_operand.vmem [shape: bf16[128,128], index: 1, kind: input, shape index: {}]   ;;  %s1010_s2 = inlined_call_operand.vmem [shape: f32[1,128], index: 2, kind: input, shape index: {}]   ;;  %s1011_s3 = inlined_call_operand.vmem [shape: f32[2048,128], index: 3, kind: output, shape index: {}]  }
   0x1   :  { %s920_s14 = smov 0  }
   0x2 LB: > { %s32_s15 = sadd.s32 1, %s890_s13  ;;  %p744_p0 = scmp.ge.s32.totalorder %s894_s14, 1  ;;  %s894_s14 = sphi %s920_s14, %s13_s14   ;;  %s890_s13 = sphi %s918_s13, %s1013_s13   ;;  %s886_s12 = sphi %s916_s12, %s1012_s12  }
   0x3   : > { %p34_p1 = scmp.ge.s32.totalorder %s32_s15, 16  ;;  %p188_p2 = scmp.lt.s32.totalorder %s894_s14, 17 }
   0x5   : > { %s1015_s15 = smov (%p34_p1, %s32_s15), 0  ;;  %p189_p3 = pnand %p744_p0, %p188_p2 }
   0x6   : > { %v856_v0 = vld [vmem:[%s1009_s1] sm:$0xff] (!%p189_p3)   ;;  %s745_s18 = sshll.u32 (!%p189_p3), %s886_s12, 4  ;;  %v857_v1 = vld [vmem:[%s1009_s1 + $0x8] sm:$0xff] (!%p189_p3)   ;;  %v858_v2 = vld [vmem:[%s1009_s1 + $0x10] sm:$0xff] (!%p189_p3)  }
   0x7   : > { %192 = sbr.rel (%p189_p3) target bundleno = 267 (0x10b), region = 32  ;;  %p230_p4 = scmp.lt.s32.totalorder (!%p189_p3), %s745_s18, 255  ;;  %784 = vmatprep.subr.bf16.mxu0 (!%p189_p3), %v856_v0  ;;  %816 = vmatprep.subr.bf16.mxu1 (!%p189_p3), %v856_v0  ;;  %v859_v3 = vld [vmem:[%s1009_s1 + $0x18] sm:$0xff] (!%p189_p3)   ;;  %v860_v6 = vld [vmem:[%s1009_s1 + $0x20] sm:$0xff] (!%p189_p3)   ;;  %v861_v7 = vld [vmem:[%s1009_s1 + $0x28] sm:$0xff] (!%p189_p3)  }
   0x8   : > { %785 = vmatpush3.bf16.msra.mxu0 (!%p189_p3), %v856_v0  ;;  %824 = vmatpush3.bf16.msra.mxu1 (!%p189_p3), %v856_v0  ;;  %v862_v8 = vld [vmem:[%s1009_s1 + $0x30] sm:$0xff] (!%p189_p3)   ;;  %v863_v9 = vld [vmem:[%s1009_s1 + $0x38] sm:$0xff] (!%p189_p3)   ;;  %v765_v16 = vld [vmem:[%s1010_s2] ss:$0 sm:$0xff] (!%p189_p3) }
   0x9   : > { %786 = vmatprep.subr.bf16.mxu0 (!%p189_p3), %v857_v1  ;;  %817 = vmatprep.subr.bf16.mxu1 (!%p189_p3), %v857_v1 }
   0xc   : > { %787 = vmatpush3.bf16.msra.mxu0 (!%p189_p3), %v857_v1  ;;  %825 = vmatpush3.bf16.msra.mxu1 (!%p189_p3), %v857_v1 }
   0xd   : > { %788 = vmatprep.subr.bf16.mxu0 (!%p189_p3), %v858_v2  ;;  %818 = vmatprep.subr.bf16.mxu1 (!%p189_p3), %v858_v2 }
   0xe   : > { %s1017_s18 = smov (!%p230_p4, %s745_s18), 255 }
   0xf   : > { %s746_s23 = sshll.u32 %s1017_s18, 2  ;;  %s748_s12 = sshll.u32 %s1017_s18, 3 }
  0x10   : > { %s949_s26 = scalar_lea.vmem %s1008_s0, %s746_s23  ;;  %789 = vmatpush3.bf16.msra.mxu0 %v858_v2  ;;  %826 = vmatpush3.bf16.msra.mxu1 %v858_v2  ;;  %s981_s19 = scalar_lea.vmem %s1011_s3, %s748_s12 }
  0x11   : > { %v864_v4 = vld [vmem:[%s949_s26] sm:$0xff]   ;;  %790 = vmatprep.subr.bf16.mxu0 %v859_v3  ;;  %819 = vmatprep.subr.bf16.mxu1 %v859_v3  ;;  %v866_v10 = vld [vmem:[%s949_s26 + $0x8] sm:$0xff]   ;;  %v868_v12 = vld [vmem:[%s949_s26 + $0x10] sm:$0xff]  }
  0x12   : > { %v865_v5 = vld [vmem:[%s949_s26 + $0x20] sm:$0xff]   ;;  %800 = vmatprep.mubr.bf16.mxu0 %v864_v4  ;;  %v867_v11 = vld [vmem:[%s949_s26 + $0x28] sm:$0xff]   ;;  %v869_v13 = vld [vmem:[%s949_s26 + $0x30] sm:$0xff]  }
  0x13   : > { %808 = vmatprep.mubr.bf16.mxu1 %v865_v5  ;;  %v870_v14 = vld [vmem:[%s949_s26 + $0x18] sm:$0xff]  }
  0x14   : > { %791 = vmatpush3.bf16.msra.mxu0 %v859_v3  ;;  %827 = vmatpush3.bf16.msra.mxu1 %v859_v3  ;;  %v871_v15 = vld [vmem:[%s949_s26 + $0x38] sm:$0xff]  }
  0x15   : > { %792 = vmatprep.subr.bf16.mxu0 %v860_v6  ;;  %820 = vmatprep.subr.bf16.mxu1 %v860_v6 }
  0x18   : > { %793 = vmatpush3.bf16.msra.mxu0 %v860_v6  ;;  %828 = vmatpush3.bf16.msra.mxu1 %v860_v6 }
  0x19   : > { %794 = vmatprep.subr.bf16.mxu0 %v861_v7  ;;  %821 = vmatprep.subr.bf16.mxu1 %v861_v7 }
  0x1c   : > { %795 = vmatpush3.bf16.msra.mxu0 %v861_v7  ;;  %829 = vmatpush3.bf16.msra.mxu1 %v861_v7 }
  0x1d   : > { %796 = vmatprep.subr.bf16.mxu0 %v862_v8  ;;  %822 = vmatprep.subr.bf16.mxu1 %v862_v8 }
  0x20   : > { %797 = vmatpush3.bf16.msra.mxu0 %v862_v8  ;;  %830 = vmatpush3.bf16.msra.mxu1 %v862_v8 }
  0x21   : > { %798 = vmatprep.subr.bf16.mxu0 %v863_v9  ;;  %823 = vmatprep.subr.bf16.mxu1 %v863_v9 }
  0x24   : > { %799 = vmatpush3.bf16.msra.mxu0 %v863_v9  ;;  %831 = vmatpush3.bf16.msra.mxu1 %v863_v9 }
  0x27   : > { %801 = vmatmul.mubr.bf16.vlgmr.msra.gmra.mrb[0].mxu0 %v866_v10  ;;  %809 = vmatmul.mubr.bf16.vlgmr.msra.gmra.mrb[0].mxu1 %v867_v11 }
  0x28   : > { %804 = vmatprep.mubr.bf16.mxu0 %v868_v12  ;;  %812 = vmatprep.mubr.bf16.mxu1 %v869_v13 }
  0x2f   : > { %805 = vmatmul.mubr.bf16.gmra.mrb[4].mxu0 %v870_v14  ;;  %813 = vmatmul.mubr.bf16.gmra.mrb[4].mxu1 %v871_v15 }
  0xfa   : > { %v802_v17 = vpop.f32.mrb[0].mxu0  ;;  %v810_v18 = vpop.f32.mrb[0].mxu1 }
  0xfb   : > { %v581_v19 = vadd.f32 %v802_v17, %v765_v16  ;;  %v589_v20 = vadd.f32 %v810_v18, %v765_v16  ;;  %v458_v21 = vpop.f32.mrb[1].mxu0  ;;  %v490_v22 = vpop.f32.mrb[1].mxu1 }
  0xfc   : > { %v579_v23 = vadd.f32 %v765_v16, %v458_v21  ;;  %v587_v24 = vadd.f32 %v765_v16, %v490_v22  ;;  %v803_v25 = vpop.f32.mrb[2].mxu0  ;;  %v811_v26 = vpop.f32.mrb[2].mxu1 }
  0xfd   : > { %v597_v27 = vmax.f32 %v581_v19, 0.0  ;;  %v605_v28 = vmax.f32 %v589_v20, 0.0  ;;  %v582_v29 = vadd.f32 %v803_v25, %v765_v16  ;;  %v590_v30 = vadd.f32 %v811_v26, %v765_v16  ;;  %v461_v31 = vpop.f32.mrb[3].mxu0  ;;  %v493_v32 = vpop.f32.mrb[3].mxu1 }
  0xfe   : > { %v595_v33 = vmax.f32 %v579_v23, 0.0  ;;  %v603_v34 = vmax.f32 %v587_v24, 0.0  ;;  %v580_v35 = vadd.f32 %v765_v16, %v461_v31  ;;  %v588_v36 = vadd.f32 %v765_v16, %v493_v32 }
  0xff   : > { %613 = vst [vmem:[%s981_s19 + $0x10] sm:$0xff] %v597_v27  ;;  %621 = vst [vmem:[%s981_s19 + $0x50] sm:$0xff] %v605_v28  ;;  %v598_v37 = vmax.f32 %v582_v29, 0.0  ;;  %v606_v38 = vmax.f32 %v590_v30, 0.0 }
 0x100   : > { %611 = vst [vmem:[%s981_s19] sm:$0xff] %v595_v33  ;;  %619 = vst [vmem:[%s981_s19 + $0x40] sm:$0xff] %v603_v34  ;;  %v596_v39 = vmax.f32 %v580_v35, 0.0  ;;  %v604_v40 = vmax.f32 %v588_v36, 0.0 }
 0x101   : > { %614 = vst [vmem:[%s981_s19 + $0x18] sm:$0xff] %v598_v37  ;;  %622 = vst [vmem:[%s981_s19 + $0x58] sm:$0xff] %v606_v38 }
 0x102   : > { %612 = vst [vmem:[%s981_s19 + $0x8] sm:$0xff] %v596_v39  ;;  %620 = vst [vmem:[%s981_s19 + $0x48] sm:$0xff] %v604_v40  ;;  %v806_v41 = vpop.f32.mrb[4].mxu0  ;;  %v814_v42 = vpop.f32.mrb[4].mxu1 }
 0x103   : > { %v585_v43 = vadd.f32 %v806_v41, %v765_v16  ;;  %v593_v44 = vadd.f32 %v814_v42, %v765_v16  ;;  %v474_v45 = vpop.f32.mrb[5].mxu0  ;;  %v506_v46 = vpop.f32.mrb[5].mxu1 }
 0x104   : > { %v583_v47 = vadd.f32 %v765_v16, %v474_v45  ;;  %v591_v48 = vadd.f32 %v765_v16, %v506_v46  ;;  %v807_v49 = vpop.f32.mrb[6].mxu0  ;;  %v815_v50 = vpop.f32.mrb[6].mxu1 }
 0x105   : > { %v601_v51 = vmax.f32 %v585_v43, 0.0  ;;  %v609_v52 = vmax.f32 %v593_v44, 0.0  ;;  %v586_v53 = vadd.f32 %v807_v49, %v765_v16  ;;  %v594_v54 = vadd.f32 %v815_v50, %v765_v16  ;;  %v477_v55 = vpop.f32.mrb[7].mxu0  ;;  %v509_v56 = vpop.f32.mrb[7].mxu1 }
 0x106   : > { %v599_v57 = vmax.f32 %v583_v47, 0.0  ;;  %v607_v58 = vmax.f32 %v591_v48, 0.0  ;;  %v584_v59 = vadd.f32 %v765_v16, %v477_v55  ;;  %v592_v60 = vadd.f32 %v765_v16, %v509_v56 }
 0x107   : > { %617 = vst [vmem:[%s981_s19 + $0x30] sm:$0xff] %v601_v51  ;;  %625 = vst [vmem:[%s981_s19 + $0x70] sm:$0xff] %v609_v52  ;;  %v602_v61 = vmax.f32 %v586_v53, 0.0  ;;  %v610_v62 = vmax.f32 %v594_v54, 0.0 }
 0x108   : > { %615 = vst [vmem:[%s981_s19 + $0x20] sm:$0xff] %v599_v57  ;;  %623 = vst [vmem:[%s981_s19 + $0x60] sm:$0xff] %v607_v58  ;;  %v600_v63 = vmax.f32 %v584_v59, 0.0  ;;  %v608_v0 = vmax.f32 %v592_v60, 0.0 }
 0x109   : > { %618 = vst [vmem:[%s981_s19 + $0x38] sm:$0xff] %v602_v61  ;;  %626 = vst [vmem:[%s981_s19 + $0x78] sm:$0xff] %v610_v62 }
 0x10a   : > { %616 = vst [vmem:[%s981_s19 + $0x28] sm:$0xff] %v600_v63  ;;  %624 = vst [vmem:[%s981_s19 + $0x68] sm:$0xff] %v608_v0 }
 0x10b PF: > { %s13_s14 = sadd.s32 1, %s894_s14   ;;  %s1012_s12 = smov %s890_s13 }
 0x10c   : > { %p10_p5 = scmp.ge.s32.totalorder %s13_s14, 18   ;;  %s1013_s13 = smov %s1015_s15 }
 0x10e   :  { %12 = sbr.rel (!%p10_p5) target bundleno = 2 (0x2), region = 76 }

// kernel: vae_forward.11
= control target key start
LH: loop header
LB: loop body
LE: loop exit
PB: predicated region body
PF: predicated region fallthrough
CT: control target
= control target key end

     0   :  { %s1522_s12 = smov 0   ;;  %s1524_s13 = smov 0   ;;  %s1731_s0 = inlined_call_operand.vmem [shape: bf16[512,512], index: 0, kind: input, shape index: {}]   ;;  %s1732_s1 = inlined_call_operand.vmem [shape: bf16[512,128], index: 1, kind: input, shape index: {}]   ;;  %s1733_s2 = inlined_call_operand.vmem [shape: f32[1,128], index: 2, kind: input, shape index: {}]   ;;  %s1734_s3 = inlined_call_operand.vmem [shape: f32[512,128], index: 3, kind: output, shape index: {}]  }
   0x1   :  { %s1526_s14 = smov 0  }
   0x2 LB: > { %s32_s15 = sadd.s32 1, %s1496_s13  ;;  %p1172_p0 = scmp.ge.s32.totalorder %s1500_s14, 1  ;;  %s1500_s14 = sphi %s1526_s14, %s13_s14   ;;  %s1496_s13 = sphi %s1524_s13, %s1736_s13   ;;  %s1492_s12 = sphi %s1522_s12, %s1735_s12  }
   0x3   : > { %p34_p1 = scmp.ge.s32.totalorder %s32_s15, 4  ;;  %p191_p2 = scmp.lt.s32.totalorder %s1500_s14, 5 }
   0x5   : > { %s1738_s15 = smov (%p34_p1, %s32_s15), 0  ;;  %p192_p3 = pnand %p1172_p0, %p191_p2 }
   0x6   : > { %v1398_v0 = vld [vmem:[%s1732_s1 + $0x40] sm:$0xff] (!%p192_p3)   ;;  %v1402_v4 = vld [vmem:[%s1732_s1 + $0x48] sm:$0xff] (!%p192_p3)   ;;  %v1406_v8 = vld [vmem:[%s1732_s1 + $0x50] sm:$0xff] (!%p192_p3)   ;;  %s1173_s25 = sshll.u32 (!%p192_p3), %s1492_s12, 4 }
   0x7   : > { %195 = sbr.rel (%p192_p3) target bundleno = 321 (0x141), region = 32  ;;  %v1399_v1 = vld [vmem:[%s1732_s1 + $0xc0] sm:$0xff] (!%p192_p3)   ;;  %1246 = vmatprep.subr.bf16.mxu0 (!%p192_p3), %v1398_v0  ;;  %v1403_v5 = vld [vmem:[%s1732_s1 + $0xc8] sm:$0xff] (!%p192_p3)   ;;  %v1407_v9 = vld [vmem:[%s1732_s1 + $0xd0] sm:$0xff] (!%p192_p3)   ;;  %p236_p4 = scmp.lt.s32.totalorder (!%p192_p3), %s1173_s25, 63 }
   0x8   : > { %v1400_v2 = vld [vmem:[%s1732_s1] sm:$0xff] (!%p192_p3)   ;;  %1310 = vmatprep.subr.bf16.mxu1 (!%p192_p3), %v1399_v1  ;;  %v1404_v6 = vld [vmem:[%s1732_s1 + $0x8] sm:$0xff] (!%p192_p3)   ;;  %v1408_v10 = vld [vmem:[%s1732_s1 + $0x10] sm:$0xff] (!%p192_p3)  }
   0x9   : > { %v1401_v3 = vld [vmem:[%s1732_s1 + $0x80] sm:$0xff] (!%p192_p3)   ;;  %1247 = vmatpush3.bf16.msra.mxu0 (!%p192_p3), %v1400_v2  ;;  %v1405_v7 = vld [vmem:[%s1732_s1 + $0x88] sm:$0xff] (!%p192_p3)   ;;  %v1409_v11 = vld [vmem:[%s1732_s1 + $0x90] sm:$0xff] (!%p192_p3)  }
   0xa   : > { %1311 = vmatpush3.bf16.msra.mxu1 (!%p192_p3), %v1401_v3  ;;  %1248 = vmatprep.subr.bf16.mxu0 (!%p192_p3), %v1402_v4  ;;  %v1410_v12 = vld [vmem:[%s1732_s1 + $0x58] sm:$0xff] (!%p192_p3)   ;;  %v1414_v16 = vld [vmem:[%s1732_s1 + $0x60] sm:$0xff] (!%p192_p3)   ;;  %v1418_v20 = vld [vmem:[%s1732_s1 + $0x68] sm:$0xff] (!%p192_p3)  }
   0xb   : > { %1312 = vmatprep.subr.bf16.mxu1 (!%p192_p3), %v1403_v5  ;;  %v1411_v13 = vld [vmem:[%s1732_s1 + $0xd8] sm:$0xff] (!%p192_p3)   ;;  %v1415_v17 = vld [vmem:[%s1732_s1 + $0xe0] sm:$0xff] (!%p192_p3)   ;;  %v1419_v21 = vld [vmem:[%s1732_s1 + $0xe8] sm:$0xff] (!%p192_p3)  }
   0xc   : > { %v1412_v14 = vld [vmem:[%s1732_s1 + $0x18] sm:$0xff] (!%p192_p3)   ;;  %v1416_v18 = vld [vmem:[%s1732_s1 + $0x20] sm:$0xff] (!%p192_p3)   ;;  %v1420_v22 = vld [vmem:[%s1732_s1 + $0x28] sm:$0xff] (!%p192_p3)  }
   0xd   : > { %1249 = vmatpush3.bf16.msra.mxu0 (!%p192_p3), %v1404_v6  ;;  %v1413_v15 = vld [vmem:[%s1732_s1 + $0x98] sm:$0xff] (!%p192_p3)   ;;  %v1417_v19 = vld [vmem:[%s1732_s1 + $0xa0] sm:$0xff] (!%p192_p3)   ;;  %v1421_v23 = vld [vmem:[%s1732_s1 + $0xa8] sm:$0xff] (!%p192_p3)  }
   0xe   : > { %1313 = vmatpush3.bf16.msra.mxu1 %v1405_v7  ;;  %1250 = vmatprep.subr.bf16.mxu0 %v1406_v8  ;;  %s1740_s25 = smov (!%p236_p4, %s1173_s25), 63  ;;  %v1422_v24 = vld [vmem:[%s1732_s1 + $0x70] sm:$0xff]   ;;  %v1426_v28 = vld [vmem:[%s1732_s1 + $0x78] sm:$0xff]  }
   0xf   : > { %1314 = vmatprep.subr.bf16.mxu1 %v1407_v9  ;;  %v1423_v25 = vld [vmem:[%s1732_s1 + $0xf0] sm:$0xff]   ;;  %s1245_s24 = sshll.u32 %s1740_s25, 4  ;;  %v1427_v29 = vld [vmem:[%s1732_s1 + $0xf8] sm:$0xff]   ;;  %v1682_v9 = vld [vmem:[%s1733_s2] ss:$0 sm:$0xff]  ;;  %s1177_s17 = sshll.u32 %s1740_s25, 3 }
  0x10   : > { %v1424_v26 = vld [vmem:[%s1732_s1 + $0x30] sm:$0xff]   ;;  %s1639_s12 = scalar_lea.vmem %s1731_s0, %s1245_s24  ;;  %v1428_v30 = vld [vmem:[%s1732_s1 + $0x38] sm:$0xff]   ;;  %s1689_s20 = scalar_lea.vmem %s1734_s3, %s1177_s17 }
  0x11   : > { %1251 = vmatpush3.bf16.msra.mxu0 %v1408_v10  ;;  %v1425_v27 = vld [vmem:[%s1732_s1 + $0xb0] sm:$0xff]   ;;  %v1429_v31 = vld [vmem:[%s1732_s1 + $0xb8] sm:$0xff]  }
  0x12   : > { %1315 = vmatpush3.bf16.msra.mxu1 %v1409_v11  ;;  %1252 = vmatprep.subr.bf16.mxu0 %v1410_v12  ;;  %v1430_v32 = vld [vmem:[%s1639_s12] ss:$16 sps:$4 sm:$0xff]   ;;  %v1432_v33 = vld [vmem:[%s1639_s12 + $0x4] ss:$16 sps:$4 sm:$0xff]   ;;  %v1433_v34 = vld [vmem:[%s1639_s12 + $0x8] ss:$16 sps:$4 sm:$0xff]  }
  0x13   : > { %1316 = vmatprep.subr.bf16.mxu1 %v1411_v13  ;;  %v1435_v35 = vld [vmem:[%s1639_s12 + $0xc] ss:$16 sps:$4 sm:$0xff]   ;;  %784 = vmatprep.mubr.bf16.mxu0 %v1432_v33  ;;  %v1436_v36 = vld [vmem:[%s1639_s12 + $0x24] ss:$16 sps:$4 sm:$0xff]   ;;  %v1440_v38 = vld [vmem:[%s1639_s12 + $0x20] ss:$16 sps:$4 sm:$0xff]  }
  0x14   : > { %881 = vmatprep.mubr.bf16.mxu1 %v1435_v35  ;;  %v1438_v37 = vld [vmem:[%s1639_s12 + $0x2c] ss:$16 sps:$4 sm:$0xff]   ;;  %v1441_v39 = vld [vmem:[%s1639_s12 + $0x28] ss:$16 sps:$4 sm:$0xff]   ;;  %v1442_v40 = vld [vmem:[%s1639_s12 + $0x44] ss:$16 sps:$4 sm:$0xff]  }
  0x15   : > { %1253 = vmatpush3.bf16.msra.mxu0 %v1412_v14  ;;  %v1444_v41 = vld [vmem:[%s1639_s12 + $0x4c] ss:$16 sps:$4 sm:$0xff]   ;;  %v1446_v42 = vld [vmem:[%s1639_s12 + $0x40] ss:$16 sps:$4 sm:$0xff]   ;;  %v1447_v43 = vld [vmem:[%s1639_s12 + $0x48] ss:$16 sps:$4 sm:$0xff]  }
  0x16   : > { %1317 = vmatpush3.bf16.msra.mxu1 %v1413_v15  ;;  %1254 = vmatprep.subr.bf16.mxu0 %v1414_v16  ;;  %v1448_v44 = vld [vmem:[%s1639_s12 + $0x64] ss:$16 sps:$4 sm:$0xff]   ;;  %v1450_v45 = vld [vmem:[%s1639_s12 + $0x6c] ss:$16 sps:$4 sm:$0xff]   ;;  %v1452_v46 = vld [vmem:[%s1639_s12 + $0x60] ss:$16 sps:$4 sm:$0xff]  }
  0x17   : > { %1318 = vmatprep.subr.bf16.mxu1 %v1415_v17  ;;  %v1453_v47 = vld [vmem:[%s1639_s12 + $0x68] ss:$16 sps:$4 sm:$0xff]   ;;  %v1454_v48 = vld [vmem:[%s1639_s12 + $0x84] ss:$16 sps:$4 sm:$0xff]   ;;  %v1456_v49 = vld [vmem:[%s1639_s12 + $0x8c] ss:$16 sps:$4 sm:$0xff]  }
  0x18   : > { %v1458_v50 = vld [vmem:[%s1639_s12 + $0x80] ss:$16 sps:$4 sm:$0xff]   ;;  %v1459_v51 = vld [vmem:[%s1639_s12 + $0x88] ss:$16 sps:$4 sm:$0xff]   ;;  %v1460_v52 = vld [vmem:[%s1639_s12 + $0xa4] ss:$16 sps:$4 sm:$0xff]  }
  0x19   : > { %1255 = vmatpush3.bf16.msra.mxu0 %v1416_v18  ;;  %v1462_v53 = vld [vmem:[%s1639_s12 + $0xac] ss:$16 sps:$4 sm:$0xff]   ;;  %v1464_v54 = vld [vmem:[%s1639_s12 + $0xa0] ss:$16 sps:$4 sm:$0xff]   ;;  %v1465_v55 = vld [vmem:[%s1639_s12 + $0xa8] ss:$16 sps:$4 sm:$0xff]  }
  0x1a   : > { %1319 = vmatpush3.bf16.msra.mxu1 %v1417_v19  ;;  %1256 = vmatprep.subr.bf16.mxu0 %v1418_v20  ;;  %v1466_v56 = vld [vmem:[%s1639_s12 + $0xc4] ss:$16 sps:$4 sm:$0xff]   ;;  %v1468_v57 = vld [vmem:[%s1639_s12 + $0xcc] ss:$16 sps:$4 sm:$0xff]   ;;  %v1470_v58 = vld [vmem:[%s1639_s12 + $0xc0] ss:$16 sps:$4 sm:$0xff]  }
  0x1b   : > { %1320 = vmatprep.subr.bf16.mxu1 %v1419_v21  ;;  %v1471_v59 = vld [vmem:[%s1639_s12 + $0xc8] ss:$16 sps:$4 sm:$0xff]   ;;  %v1472_v60 = vld [vmem:[%s1639_s12 + $0xe4] ss:$16 sps:$4 sm:$0xff]   ;;  %v1474_v61 = vld [vmem:[%s1639_s12 + $0xec] ss:$16 sps:$4 sm:$0xff]  }
  0x1c   : > { %v1476_v62 = vld [vmem:[%s1639_s12 + $0xe0] ss:$16 sps:$4 sm:$0xff]   ;;  %v1477_v63 = vld [vmem:[%s1639_s12 + $0xe8] ss:$16 sps:$4 sm:$0xff]  }
  0x1d   : > { %1257 = vmatpush3.bf16.msra.mxu0 %v1420_v22 }
  0x1e   : > { %1321 = vmatpush3.bf16.msra.mxu1 %v1421_v23  ;;  %1258 = vmatprep.subr.bf16.mxu0 %v1422_v24 }
  0x1f   : > { %1322 = vmatprep.subr.bf16.mxu1 %v1423_v25 }
  0x21   : > { %1259 = vmatpush3.bf16.msra.mxu0 %v1424_v26 }
  0x22   : > { %1323 = vmatpush3.bf16.msra.mxu1 %v1425_v27  ;;  %1260 = vmatprep.subr.bf16.mxu0 %v1426_v28 }
  0x23   : > { %1324 = vmatprep.subr.bf16.mxu1 %v1427_v29 }
  0x25   : > { %1261 = vmatpush3.bf16.msra.mxu0 %v1428_v30 }
  0x26   : > { %1325 = vmatpush3.bf16.msra.mxu1 %v1429_v31 }
  0x28   : > { %785 = vmatmul.mubr.bf16.vlgmr.msra.gmra.mrb[0].mxu0 %v1430_v32 }
  0x29   : > { %882 = vmatmul.mubr.bf16.vlgmr.msra.gmra.mrb[0].mxu1 %v1433_v34  ;;  %792 = vmatprep.mubr.bf16.mxu0 %v1436_v36 }
  0x2a   : > { %889 = vmatprep.mubr.bf16.mxu1 %v1438_v37 }
  0x30   : > { %793 = vmatmul.mubr.bf16.gmra.mrb[4].mxu0 %v1440_v38 }
  0x31   : > { %890 = vmatmul.mubr.bf16.gmra.mrb[4].mxu1 %v1441_v39  ;;  %800 = vmatprep.mubr.bf16.mxu0 %v1442_v40 }
  0x32   : > { %897 = vmatprep.mubr.bf16.mxu1 %v1444_v41 }
  0x38   : > { %801 = vmatmul.mubr.bf16.gmra.mrb[8].mxu0 %v1446_v42 }
  0x39   : > { %898 = vmatmul.mubr.bf16.gmra.mrb[8].mxu1 %v1447_v43  ;;  %808 = vmatprep.mubr.bf16.mxu0 %v1448_v44 }
  0x3a   : > { %905 = vmatprep.mubr.bf16.mxu1 %v1450_v45 }
  0x40   : > { %809 = vmatmul.mubr.bf16.gmra.mrb[12].mxu0 %v1452_v46 }
  0x41   : > { %906 = vmatmul.mubr.bf16.gmra.mrb[12].mxu1 %v1453_v47  ;;  %816 = vmatprep.mubr.bf16.mxu0 %v1454_v48 }
  0x42   : > { %913 = vmatprep.mubr.bf16.mxu1 %v1456_v49 }
  0x48   : > { %817 = vmatmul.mubr.bf16.gmra.mrb[16].mxu0 %v1458_v50 }
  0x49   : > { %914 = vmatmul.mubr.bf16.gmra.mrb[16].mxu1 %v1459_v51  ;;  %824 = vmatprep.mubr.bf16.mxu0 %v1460_v52 }
  0x4a   : > { %921 = vmatprep.mubr.bf16.mxu1 %v1462_v53 }
  0x50   : > { %825 = vmatmul.mubr.bf16.gmra.mrb[20].mxu0 %v1464_v54 }
  0x51   : > { %922 = vmatmul.mubr.bf16.gmra.mrb[20].mxu1 %v1465_v55  ;;  %832 = vmatprep.mubr.bf16.mxu0 %v1466_v56 }
  0x52   : > { %929 = vmatprep.mubr.bf16.mxu1 %v1468_v57 }
  0x58   : > { %833 = vmatmul.mubr.bf16.gmra.mrb[24].mxu0 %v1470_v58 }
  0x59   : > { %930 = vmatmul.mubr.bf16.gmra.mrb[24].mxu1 %v1471_v59  ;;  %840 = vmatprep.mubr.bf16.mxu0 %v1472_v60 }
  0x5a   : > { %937 = vmatprep.mubr.bf16.mxu1 %v1474_v61 }
  0x60   : > { %841 = vmatmul.mubr.bf16.gmra.mrb[28].mxu0 %v1476_v62 }
  0x61   : > { %938 = vmatmul.mubr.bf16.gmra.mrb[28].mxu1 %v1477_v63 }
  0xfb   : > { %v1262_v0 = vpop.f32.mrb[0].mxu0 }
  0xfc   : > { %v1326_v1 = vpop.f32.mrb[0].mxu1  ;;  %v1263_v2 = vpop.f32.mrb[1].mxu0 }
  0xfd   : > { %v1264_v3 = vadd.f32 %v1263_v2, %v1262_v0  ;;  %v1327_v4 = vpop.f32.mrb[1].mxu1  ;;  %v1265_v5 = vpop.f32.mrb[2].mxu0 }
  0xfe   : > { %v1328_v6 = vadd.f32 %v1327_v4, %v1326_v1  ;;  %v1329_v7 = vpop.f32.mrb[2].mxu1  ;;  %v1266_v8 = vpop.f32.mrb[3].mxu0 }
  0xff   : > { %v1267_v10 = vadd.f32 %v1266_v8, %v1265_v5  ;;  %v1330_v11 = vpop.f32.mrb[3].mxu1 }
 0x100   : > { %v884_v12 = vadd.f32 %v1328_v6, %v1264_v3  ;;  %v1331_v13 = vadd.f32 %v1330_v11, %v1329_v7 }
 0x102   : > { %v1004_v14 = vadd.f32 %v1682_v9, %v884_v12  ;;  %v887_v15 = vadd.f32 %v1331_v13, %v1267_v10 }
 0x103   : > { %v1268_v16 = vpop.f32.mrb[4].mxu0 }
 0x104   : > { %v1020_v17 = vmax.f32 %v1004_v14, 0.0  ;;  %v1005_v18 = vadd.f32 %v1682_v9, %v887_v15  ;;  %v1332_v19 = vpop.f32.mrb[4].mxu1  ;;  %v1269_v20 = vpop.f32.mrb[5].mxu0 }
 0x105   : > { %v1270_v21 = vadd.f32 %v1269_v20, %v1268_v16  ;;  %v1333_v22 = vpop.f32.mrb[5].mxu1  ;;  %v1271_v23 = vpop.f32.mrb[6].mxu0 }
 0x106   : > { %1036 = vst [vmem:[%s1689_s20] sm:$0xff] %v1020_v17  ;;  %v1021_v24 = vmax.f32 %v1005_v18, 0.0  ;;  %v1334_v25 = vadd.f32 %v1333_v22, %v1332_v19  ;;  %v1335_v26 = vpop.f32.mrb[6].mxu1  ;;  %v1272_v27 = vpop.f32.mrb[7].mxu0 }
 0x107   : > { %v1273_v28 = vadd.f32 %v1272_v27, %v1271_v23  ;;  %v1336_v29 = vpop.f32.mrb[7].mxu1 }
 0x108   : > { %1037 = vst [vmem:[%s1689_s20 + $0x8] sm:$0xff] %v1021_v24  ;;  %v892_v30 = vadd.f32 %v1334_v25, %v1270_v21  ;;  %v1337_v31 = vadd.f32 %v1336_v29, %v1335_v26 }
 0x10a   : > { %v1006_v32 = vadd.f32 %v1682_v9, %v892_v30  ;;  %v895_v33 = vadd.f32 %v1337_v31, %v1273_v28 }
 0x10b   : > { %v1274_v34 = vpop.f32.mrb[8].mxu0 }
 0x10c   : > { %v1022_v35 = vmax.f32 %v1006_v32, 0.0  ;;  %v1007_v36 = vadd.f32 %v1682_v9, %v895_v33  ;;  %v1338_v37 = vpop.f32.mrb[8].mxu1  ;;  %v1275_v38 = vpop.f32.mrb[9].mxu0 }
 0x10d   : > { %v1276_v39 = vadd.f32 %v1275_v38, %v1274_v34  ;;  %v1339_v40 = vpop.f32.mrb[9].mxu1  ;;  %v1277_v41 = vpop.f32.mrb[10].mxu0 }
 0x10e   : > { %1038 = vst [vmem:[%s1689_s20 + $0x10] sm:$0xff] %v1022_v35  ;;  %v1023_v42 = vmax.f32 %v1007_v36, 0.0  ;;  %v1340_v43 = vadd.f32 %v1339_v40, %v1338_v37  ;;  %v1341_v44 = vpop.f32.mrb[10].mxu1  ;;  %v1278_v45 = vpop.f32.mrb[11].mxu0 }
 0x10f   : > { %v1279_v46 = vadd.f32 %v1278_v45, %v1277_v41  ;;  %v1342_v47 = vpop.f32.mrb[11].mxu1 }
 0x110   : > { %1039 = vst [vmem:[%s1689_s20 + $0x18] sm:$0xff] %v1023_v42  ;;  %v900_v48 = vadd.f32 %v1340_v43, %v1276_v39  ;;  %v1343_v49 = vadd.f32 %v1342_v47, %v1341_v44 }
 0x112   : > { %v1008_v50 = vadd.f32 %v1682_v9, %v900_v48  ;;  %v903_v51 = vadd.f32 %v1343_v49, %v1279_v46 }
 0x113   : > { %v1280_v52 = vpop.f32.mrb[12].mxu0 }
 0x114   : > { %v1024_v53 = vmax.f32 %v1008_v50, 0.0  ;;  %v1009_v54 = vadd.f32 %v1682_v9, %v903_v51  ;;  %v1344_v55 = vpop.f32.mrb[12].mxu1  ;;  %v1281_v56 = vpop.f32.mrb[13].mxu0 }
 0x115   : > { %v1282_v57 = vadd.f32 %v1281_v56, %v1280_v52  ;;  %v1345_v58 = vpop.f32.mrb[13].mxu1  ;;  %v1283_v59 = vpop.f32.mrb[14].mxu0 }
 0x116   : > { %1040 = vst [vmem:[%s1689_s20 + $0x20] sm:$0xff] %v1024_v53  ;;  %v1025_v60 = vmax.f32 %v1009_v54, 0.0  ;;  %v1346_v61 = vadd.f32 %v1345_v58, %v1344_v55  ;;  %v1347_v62 = vpop.f32.mrb[14].mxu1  ;;  %v1284_v63 = vpop.f32.mrb[15].mxu0 }
 0x117   : > { %v1285_v0 = vadd.f32 %v1284_v63, %v1283_v59  ;;  %v1348_v1 = vpop.f32.mrb[15].mxu1 }
 0x118   : > { %1041 = vst [vmem:[%s1689_s20 + $0x28] sm:$0xff] %v1025_v60  ;;  %v908_v2 = vadd.f32 %v1346_v61, %v1282_v57  ;;  %v1349_v3 = vadd.f32 %v1348_v1, %v1347_v62 }
 0x11a   : > { %v1010_v4 = vadd.f32 %v1682_v9, %v908_v2  ;;  %v911_v5 = vadd.f32 %v1349_v3, %v1285_v0 }
 0x11b   : > { %v1286_v6 = vpop.f32.mrb[16].mxu0 }
 0x11c   : > { %v1026_v7 = vmax.f32 %v1010_v4, 0.0  ;;  %v1011_v8 = vadd.f32 %v1682_v9, %v911_v5  ;;  %v1350_v10 = vpop.f32.mrb[16].mxu1  ;;  %v1287_v11 = vpop.f32.mrb[17].mxu0 }
 0x11d   : > { %v1288_v12 = vadd.f32 %v1287_v11, %v1286_v6  ;;  %v1351_v13 = vpop.f32.mrb[17].mxu1  ;;  %v1289_v14 = vpop.f32.mrb[18].mxu0 }
 0x11e   : > { %1042 = vst [vmem:[%s1689_s20 + $0x30] sm:$0xff] %v1026_v7  ;;  %v1027_v15 = vmax.f32 %v1011_v8, 0.0  ;;  %v1352_v16 = vadd.f32 %v1351_v13, %v1350_v10  ;;  %v1353_v17 = vpop.f32.mrb[18].mxu1  ;;  %v1290_v18 = vpop.f32.mrb[19].mxu0 }
 0x11f   : > { %v1291_v19 = vadd.f32 %v1290_v18, %v1289_v14  ;;  %v1354_v20 = vpop.f32.mrb[19].mxu1 }
 0x120   : > { %1043 = vst [vmem:[%s1689_s20 + $0x38] sm:$0xff] %v1027_v15  ;;  %v916_v21 = vadd.f32 %v1352_v16, %v1288_v12  ;;  %v1355_v22 = vadd.f32 %v1354_v20, %v1353_v17 }
 0x122   : > { %v1012_v23 = vadd.f32 %v1682_v9, %v916_v21  ;;  %v919_v24 = vadd.f32 %v1355_v22, %v1291_v19 }
 0x123   : > { %v1292_v25 = vpop.f32.mrb[20].mxu0 }
 0x124   : > { %v1028_v26 = vmax.f32 %v1012_v23, 0.0  ;;  %v1013_v27 = vadd.f32 %v1682_v9, %v919_v24  ;;  %v1356_v28 = vpop.f32.mrb[20].mxu1  ;;  %v1293_v29 = vpop.f32.mrb[21].mxu0 }
 0x125   : > { %v1294_v30 = vadd.f32 %v1293_v29, %v1292_v25  ;;  %v1357_v31 = vpop.f32.mrb[21].mxu1  ;;  %v1295_v32 = vpop.f32.mrb[22].mxu0 }
 0x126   : > { %1044 = vst [vmem:[%s1689_s20 + $0x40] sm:$0xff] %v1028_v26  ;;  %v1029_v33 = vmax.f32 %v1013_v27, 0.0  ;;  %v1358_v34 = vadd.f32 %v1357_v31, %v1356_v28  ;;  %v1359_v35 = vpop.f32.mrb[22].mxu1  ;;  %v1296_v36 = vpop.f32.mrb[23].mxu0 }
 0x127   : > { %v1297_v37 = vadd.f32 %v1296_v36, %v1295_v32  ;;  %v1360_v38 = vpop.f32.mrb[23].mxu1 }
 0x128   : > { %1045 = vst [vmem:[%s1689_s20 + $0x48] sm:$0xff] %v1029_v33  ;;  %v924_v39 = vadd.f32 %v1358_v34, %v1294_v30  ;;  %v1361_v40 = vadd.f32 %v1360_v38, %v1359_v35 }
 0x12a   : > { %v1014_v41 = vadd.f32 %v1682_v9, %v924_v39  ;;  %v927_v42 = vadd.f32 %v1361_v40, %v1297_v37 }
 0x12b   : > { %v1298_v43 = vpop.f32.mrb[24].mxu0 }
 0x12c   : > { %v1030_v44 = vmax.f32 %v1014_v41, 0.0  ;;  %v1015_v45 = vadd.f32 %v1682_v9, %v927_v42  ;;  %v1362_v46 = vpop.f32.mrb[24].mxu1  ;;  %v1299_v47 = vpop.f32.mrb[25].mxu0 }
 0x12d   : > { %v1300_v48 = vadd.f32 %v1299_v47, %v1298_v43  ;;  %v1363_v49 = vpop.f32.mrb[25].mxu1  ;;  %v1301_v50 = vpop.f32.mrb[26].mxu0 }
 0x12e   : > { %1046 = vst [vmem:[%s1689_s20 + $0x50] sm:$0xff] %v1030_v44  ;;  %v1031_v51 = vmax.f32 %v1015_v45, 0.0  ;;  %v1364_v52 = vadd.f32 %v1363_v49, %v1362_v46  ;;  %v1365_v53 = vpop.f32.mrb[26].mxu1  ;;  %v1302_v54 = vpop.f32.mrb[27].mxu0 }
 0x12f   : > { %v1303_v55 = vadd.f32 %v1302_v54, %v1301_v50  ;;  %v1366_v56 = vpop.f32.mrb[27].mxu1 }
 0x130   : > { %1047 = vst [vmem:[%s1689_s20 + $0x58] sm:$0xff] %v1031_v51  ;;  %v932_v57 = vadd.f32 %v1364_v52, %v1300_v48  ;;  %v1367_v58 = vadd.f32 %v1366_v56, %v1365_v53 }
 0x132   : > { %v1016_v59 = vadd.f32 %v1682_v9, %v932_v57  ;;  %v935_v60 = vadd.f32 %v1367_v58, %v1303_v55 }
 0x133   : > { %v1304_v61 = vpop.f32.mrb[28].mxu0 }
 0x134   : > { %v1032_v62 = vmax.f32 %v1016_v59, 0.0  ;;  %v1017_v63 = vadd.f32 %v1682_v9, %v935_v60  ;;  %v1368_v0 = vpop.f32.mrb[28].mxu1  ;;  %v1305_v1 = vpop.f32.mrb[29].mxu0 }
 0x135   : > { %v1306_v2 = vadd.f32 %v1305_v1, %v1304_v61  ;;  %v1369_v3 = vpop.f32.mrb[29].mxu1  ;;  %v1307_v4 = vpop.f32.mrb[30].mxu0 }
 0x136   : > { %1048 = vst [vmem:[%s1689_s20 + $0x60] sm:$0xff] %v1032_v62  ;;  %v1033_v5 = vmax.f32 %v1017_v63, 0.0  ;;  %v1370_v6 = vadd.f32 %v1369_v3, %v1368_v0  ;;  %v1371_v7 = vpop.f32.mrb[30].mxu1  ;;  %v1308_v8 = vpop.f32.mrb[31].mxu0 }
 0x137   : > { %v1309_v10 = vadd.f32 %v1308_v8, %v1307_v4  ;;  %v1372_v11 = vpop.f32.mrb[31].mxu1 }
 0x138   : > { %1049 = vst [vmem:[%s1689_s20 + $0x68] sm:$0xff] %v1033_v5  ;;  %v940_v12 = vadd.f32 %v1370_v6, %v1306_v2  ;;  %v1373_v13 = vadd.f32 %v1372_v11, %v1371_v7 }
 0x13a   : > { %v1018_v14 = vadd.f32 %v1682_v9, %v940_v12  ;;  %v943_v15 = vadd.f32 %v1373_v13, %v1309_v10 }
 0x13c   : > { %v1034_v16 = vmax.f32 %v1018_v14, 0.0  ;;  %v1019_v17 = vadd.f32 %v1682_v9, %v943_v15 }
 0x13e   : > { %1050 = vst [vmem:[%s1689_s20 + $0x70] sm:$0xff] %v1034_v16  ;;  %v1035_v18 = vmax.f32 %v1019_v17, 0.0 }
 0x140   : > { %1051 = vst [vmem:[%s1689_s20 + $0x78] sm:$0xff] %v1035_v18 }
 0x141 PF: > { %s13_s14 = sadd.s32 1, %s1500_s14   ;;  %s1735_s12 = smov %s1496_s13 }
 0x142   : > { %p10_p5 = scmp.ge.s32.totalorder %s13_s14, 6   ;;  %s1736_s13 = smov %s1738_s15 }
 0x144   :  { %12 = sbr.rel (!%p10_p5) target bundleno = 2 (0x2), region = 76 }

// kernel: vae_forward.12
= control target key start
LH: loop header
LB: loop body
LE: loop exit
PB: predicated region body
PF: predicated region fallthrough
CT: control target
= control target key end

     0   :  { %s1878_s1 = inlined_call_operand.vmem [shape: bf16[1024,128], index: 1, kind: input, shape index: {}]   ;;  %s1879_s0 = inlined_call_operand.vmem [shape: bf16[72,1024], index: 0, kind: input, shape index: {}]   ;;  %s1880_s2 = inlined_call_operand.vmem [shape: f32[1,128], index: 2, kind: input, shape index: {}]   ;;  %s1881_s3 = inlined_call_operand.vmem [shape: f32[72,128], index: 3, kind: output, shape index: {}]  }
   0x1   :  { %v1418_v0 = vld [vmem:[%s1878_s1 + $0x40] sm:$0xff]   ;;  %v1422_v4 = vld [vmem:[%s1878_s1 + $0x48] sm:$0xff]   ;;  %v1426_v8 = vld [vmem:[%s1878_s1 + $0x50] sm:$0xff]  }
   0x2   :  { %v1419_v1 = vld [vmem:[%s1878_s1 + $0xc0] sm:$0xff]   ;;  %1234 = vmatprep.subr.bf16.mxu0 %v1418_v0  ;;  %v1423_v5 = vld [vmem:[%s1878_s1 + $0xc8] sm:$0xff]   ;;  %v1427_v9 = vld [vmem:[%s1878_s1 + $0xd0] sm:$0xff]  }
   0x3   :  { %v1420_v2 = vld [vmem:[%s1878_s1] sm:$0xff]   ;;  %1280 = vmatprep.subr.bf16.mxu1 %v1419_v1  ;;  %v1424_v6 = vld [vmem:[%s1878_s1 + $0x8] sm:$0xff]   ;;  %v1428_v10 = vld [vmem:[%s1878_s1 + $0x10] sm:$0xff]  }
   0x4   :  { %v1421_v3 = vld [vmem:[%s1878_s1 + $0x80] sm:$0xff]   ;;  %1235 = vmatpush3.bf16.msra.mxu0 %v1420_v2  ;;  %v1425_v7 = vld [vmem:[%s1878_s1 + $0x88] sm:$0xff]   ;;  %v1429_v11 = vld [vmem:[%s1878_s1 + $0x90] sm:$0xff]  }
   0x5   :  { %1281 = vmatpush3.bf16.msra.mxu1 %v1421_v3  ;;  %1236 = vmatprep.subr.bf16.mxu0 %v1422_v4  ;;  %v1430_v12 = vld [vmem:[%s1878_s1 + $0x58] sm:$0xff]   ;;  %v1434_v16 = vld [vmem:[%s1878_s1 + $0x60] sm:$0xff]   ;;  %v1438_v20 = vld [vmem:[%s1878_s1 + $0x68] sm:$0xff]  }
   0x6   :  { %1282 = vmatprep.subr.bf16.mxu1 %v1423_v5  ;;  %v1431_v13 = vld [vmem:[%s1878_s1 + $0xd8] sm:$0xff]   ;;  %v1435_v17 = vld [vmem:[%s1878_s1 + $0xe0] sm:$0xff]   ;;  %v1439_v21 = vld [vmem:[%s1878_s1 + $0xe8] sm:$0xff]  }
   0x7   :  { %v1432_v14 = vld [vmem:[%s1878_s1 + $0x18] sm:$0xff]   ;;  %v1436_v18 = vld [vmem:[%s1878_s1 + $0x20] sm:$0xff]   ;;  %v1440_v22 = vld [vmem:[%s1878_s1 + $0x28] sm:$0xff]  }
   0x8   :  { %1237 = vmatpush3.bf16.msra.mxu0 %v1424_v6  ;;  %v1433_v15 = vld [vmem:[%s1878_s1 + $0x98] sm:$0xff]   ;;  %v1437_v19 = vld [vmem:[%s1878_s1 + $0xa0] sm:$0xff]   ;;  %v1441_v23 = vld [vmem:[%s1878_s1 + $0xa8] sm:$0xff]  }
   0x9   :  { %1283 = vmatpush3.bf16.msra.mxu1 %v1425_v7  ;;  %1238 = vmatprep.subr.bf16.mxu0 %v1426_v8  ;;  %v1442_v24 = vld [vmem:[%s1878_s1 + $0x70] sm:$0xff]   ;;  %v1446_v28 = vld [vmem:[%s1878_s1 + $0x78] sm:$0xff]   ;;  %v37_v32 = vld [vmem:[%s1879_s0] sm:$0xff] }
   0xa   :  { %1284 = vmatprep.subr.bf16.mxu1 %v1427_v9  ;;  %v1443_v25 = vld [vmem:[%s1878_s1 + $0xf0] sm:$0xff]   ;;  %v1447_v29 = vld [vmem:[%s1878_s1 + $0xf8] sm:$0xff]   ;;  %v41_v33 = vld [vmem:[%s1879_s0 + $0x20] sm:$0xff] }
   0xb   :  { %v1444_v26 = vld [vmem:[%s1878_s1 + $0x30] sm:$0xff]   ;;  %v1448_v30 = vld [vmem:[%s1878_s1 + $0x38] sm:$0xff]   ;;  %v38_v34 = vld [vmem:[%s1879_s0 + $0x8] sm:$0xff]  ;;  %v1129_v35 = vcombine.low %v37_v32, %v41_v33  ;;  %v1130_v36 = vcombine.high %v37_v32, %v41_v33 }
   0xc   :  { %1239 = vmatpush3.bf16.msra.mxu0 %v1428_v10  ;;  %v1445_v27 = vld [vmem:[%s1878_s1 + $0xb0] sm:$0xff]   ;;  %v1449_v31 = vld [vmem:[%s1878_s1 + $0xb8] sm:$0xff]   ;;  %v42_v37 = vld [vmem:[%s1879_s0 + $0x28] sm:$0xff] }
   0xd   :  { %1285 = vmatpush3.bf16.msra.mxu1 %v1429_v11  ;;  %1240 = vmatprep.subr.bf16.mxu0 %v1430_v12  ;;  %v1131_v38 = vcombine.low %v38_v34, %v42_v37  ;;  %v1132_v39 = vcombine.high %v38_v34, %v42_v37  ;;  %v1450_v40 = vld [vmem:[%s1878_s1 + $0x140] sm:$0xff]   ;;  %v1454_v44 = vld [vmem:[%s1878_s1 + $0x148] sm:$0xff]   ;;  %v1458_v56 = vld [vmem:[%s1878_s1 + $0x150] sm:$0xff]  }
   0xe   :  { %1286 = vmatprep.subr.bf16.mxu1 %v1431_v13  ;;  %805 = vmatprep.mubr.bf16.mxu0 %v1130_v36  ;;  %v1451_v41 = vld [vmem:[%s1878_s1 + $0x100] sm:$0xff]   ;;  %v1455_v45 = vld [vmem:[%s1878_s1 + $0x108] sm:$0xff]   ;;  %v1459_v57 = vld [vmem:[%s1878_s1 + $0x110] sm:$0xff]  }
   0xf   :  { %877 = vmatprep.mubr.bf16.mxu1 %v1132_v39  ;;  %v1452_v42 = vld [vmem:[%s1878_s1 + $0x1c0] sm:$0xff]   ;;  %v46_v49 = vld [vmem:[%s1879_s0 + $0x48] sm:$0xff]  ;;  %v1460_v58 = vld [vmem:[%s1878_s1 + $0x1d0] sm:$0xff]  }
  0x10   :  { %1241 = vmatpush3.bf16.msra.mxu0 %v1432_v14  ;;  %v1453_v43 = vld [vmem:[%s1878_s1 + $0x180] sm:$0xff]   ;;  %v50_v50 = vld [vmem:[%s1879_s0 + $0x68] sm:$0xff]  ;;  %v1461_v59 = vld [vmem:[%s1878_s1 + $0x190] sm:$0xff]  }
  0x11   :  { %1287 = vmatpush3.bf16.msra.mxu1 %v1433_v15  ;;  %1242 = vmatprep.subr.bf16.mxu0 %v1434_v16  ;;  %v45_v46 = vld [vmem:[%s1879_s0 + $0x40] sm:$0xff]  ;;  %v1140_v52 = vcombine.high %v46_v49, %v50_v50  ;;  %v1456_v53 = vld [vmem:[%s1878_s1 + $0x1c8] sm:$0xff]   ;;  %v1139_v54 = vcombine.low %v46_v49, %v50_v50  ;;  %v1462_v2 = vld [vmem:[%s1878_s1 + $0x158] sm:$0xff]  }
  0x12   :  { %1288 = vmatprep.subr.bf16.mxu1 %v1435_v17  ;;  %v49_v47 = vld [vmem:[%s1879_s0 + $0x60] sm:$0xff]  ;;  %v1457_v55 = vld [vmem:[%s1878_s1 + $0x188] sm:$0xff]   ;;  %v1463_v5 = vld [vmem:[%s1878_s1 + $0x118] sm:$0xff]  }
  0x13   :  { %v1138_v48 = vcombine.high %v45_v46, %v49_v47  ;;  %v1137_v51 = vcombine.low %v45_v46, %v49_v47  ;;  %v53_v60 = vld [vmem:[%s1879_s0 + $0x80] sm:$0xff]  ;;  %v54_v62 = vld [vmem:[%s1879_s0 + $0x88] sm:$0xff]  ;;  %v1464_v6 = vld [vmem:[%s1878_s1 + $0x1d8] sm:$0xff]  }
  0x14   :  { %1243 = vmatpush3.bf16.msra.mxu0 %v1436_v18  ;;  %v57_v61 = vld [vmem:[%s1879_s0 + $0xa0] sm:$0xff]  ;;  %v58_v63 = vld [vmem:[%s1879_s0 + $0xa8] sm:$0xff]  ;;  %v1465_v7 = vld [vmem:[%s1878_s1 + $0x198] sm:$0xff]  }
  0x15   :  { %1289 = vmatpush3.bf16.msra.mxu1 %v1437_v19  ;;  %1244 = vmatprep.subr.bf16.mxu0 %v1438_v20  ;;  %v1146_v0 = vcombine.high %v53_v60, %v57_v61  ;;  %v1148_v1 = vcombine.high %v54_v62, %v58_v63  ;;  %v1145_v3 = vcombine.low %v53_v60, %v57_v61  ;;  %v1466_v8 = vld [vmem:[%s1878_s1 + $0x160] sm:$0xff]   ;;  %v62_v13 = vld [vmem:[%s1879_s0 + $0xc8] sm:$0xff]  ;;  %v1481_v33 = vld [vmem:[%s1878_s1 + $0x1b0] sm:$0xff]  }
  0x16   :  { %1290 = vmatprep.subr.bf16.mxu1 %v1439_v21  ;;  %v1147_v4 = vcombine.low %v54_v62, %v58_v63  ;;  %v1467_v9 = vld [vmem:[%s1878_s1 + $0x120] sm:$0xff]   ;;  %v66_v15 = vld [vmem:[%s1879_s0 + $0xe8] sm:$0xff]  ;;  %v1482_v34 = vld [vmem:[%s1878_s1 + $0x178] sm:$0xff]  }
  0x17   :  { %v1468_v10 = vld [vmem:[%s1878_s1 + $0x1e0] sm:$0xff]   ;;  %v1156_v17 = vcombine.high %v62_v13, %v66_v15  ;;  %v1155_v19 = vcombine.low %v62_v13, %v66_v15  ;;  %v1470_v20 = vld [vmem:[%s1878_s1 + $0x168] sm:$0xff]   ;;  %v1484_v36 = vld [vmem:[%s1878_s1 + $0x1f8] sm:$0xff]  }
  0x18   :  { %1245 = vmatpush3.bf16.msra.mxu0 %v1440_v22  ;;  %v61_v11 = vld [vmem:[%s1879_s0 + $0xc0] sm:$0xff]  ;;  %v1471_v21 = vld [vmem:[%s1878_s1 + $0x128] sm:$0xff]   ;;  %v1485_v37 = vld [vmem:[%s1878_s1 + $0x1b8] sm:$0xff]  }
  0x19   :  { %1291 = vmatpush3.bf16.msra.mxu1 %v1441_v23  ;;  %1246 = vmatprep.subr.bf16.mxu0 %v1442_v24  ;;  %v65_v12 = vld [vmem:[%s1879_s0 + $0xe0] sm:$0xff]  ;;  %v1472_v22 = vld [vmem:[%s1878_s1 + $0x1e8] sm:$0xff]   ;;  %v1474_v24 = vld [vmem:[%s1878_s1 + $0x170] sm:$0xff]  }
  0x1a   :  { %1292 = vmatprep.subr.bf16.mxu1 %v1443_v25  ;;  %v1154_v14 = vcombine.high %v61_v11, %v65_v12  ;;  %v1153_v16 = vcombine.low %v61_v11, %v65_v12  ;;  %v1469_v18 = vld [vmem:[%s1878_s1 + $0x1a0] sm:$0xff]   ;;  %v1473_v23 = vld [vmem:[%s1878_s1 + $0x1a8] sm:$0xff]   ;;  %v43_v39 = vld [vmem:[%s1879_s0 + $0x30] sm:$0xff] }
  0x1b   :  { %v69_v25 = vld [vmem:[%s1879_s0 + $0x100] sm:$0xff]  ;;  %v48_v47 = vld [vmem:[%s1879_s0 + $0x58] sm:$0xff]  ;;  %v63_v60 = vld [vmem:[%s1879_s0 + $0xd0] sm:$0xff] }
  0x1c   :  { %1247 = vmatpush3.bf16.msra.mxu0 %v1444_v26  ;;  %v70_v26 = vld [vmem:[%s1879_s0 + $0x108] sm:$0xff]  ;;  %v67_v61 = vld [vmem:[%s1879_s0 + $0xf0] sm:$0xff]  ;;  %v64_v62 = vld [vmem:[%s1879_s0 + $0xd8] sm:$0xff] }
  0x1d   :  { %1293 = vmatpush3.bf16.msra.mxu1 %v1445_v27  ;;  %1248 = vmatprep.subr.bf16.mxu0 %v1446_v28  ;;  %v1162_v27 = vcombine.high %v69_v25, %v69_v25  ;;  %v1164_v28 = vcombine.high %v70_v26, %v70_v26  ;;  %v1163_v32 = vcombine.low %v70_v26, %v70_v26  ;;  %v68_v63 = vld [vmem:[%s1879_s0 + $0xf8] sm:$0xff] }
  0x1e   :  { %1294 = vmatprep.subr.bf16.mxu1 %v1447_v29  ;;  %v1477_v29 = vld [vmem:[%s1878_s1 + $0x130] sm:$0xff]  }
  0x20   :  { %1249 = vmatpush3.bf16.msra.mxu0 %v1448_v30  ;;  %v1161_v30 = vcombine.low %v69_v25, %v69_v25 }
  0x21   :  { %1295 = vmatpush3.bf16.msra.mxu1 %v1449_v31  ;;  %1326 = vmatprep.subr.bf16.mxu0 %v1450_v40  ;;  %v1480_v31 = vld [vmem:[%s1878_s1 + $0x1f0] sm:$0xff]   ;;  %v40_v40 = vld [vmem:[%s1879_s0 + $0x18] sm:$0xff] }
  0x22   :  { %1372 = vmatprep.subr.bf16.mxu1 %v1452_v42  ;;  %v44_v42 = vld [vmem:[%s1879_s0 + $0x38] sm:$0xff] }
  0x23   :  { %806 = vmatmul.mubr.bf16.vlgmr.msra.gmra.mrb[0].mxu0 %v1129_v35  ;;  %v1483_v35 = vld [vmem:[%s1878_s1 + $0x138] sm:$0xff]   ;;  %v1136_v46 = vcombine.high %v40_v40, %v44_v42  ;;  %v1135_v49 = vcombine.low %v40_v40, %v44_v42 }
  0x24   :  { %878 = vmatmul.mubr.bf16.vlgmr.msra.gmra.mrb[0].mxu1 %v1131_v38  ;;  %1327 = vmatpush3.bf16.msra.mxu0 %v1451_v41  ;;  %v39_v38 = vld [vmem:[%s1879_s0 + $0x10] sm:$0xff] }
  0x25   :  { %1373 = vmatpush3.bf16.msra.mxu1 %v1453_v43  ;;  %1328 = vmatprep.subr.bf16.mxu0 %v1454_v44  ;;  %v1134_v41 = vcombine.high %v39_v38, %v43_v39  ;;  %v47_v43 = vld [vmem:[%s1879_s0 + $0x50] sm:$0xff] }
  0x26   :  { %813 = vmatprep.mubr.bf16.mxu0 %v1138_v48  ;;  %885 = vmatprep.mubr.bf16.mxu1 %v1140_v52  ;;  %v51_v44 = vld [vmem:[%s1879_s0 + $0x70] sm:$0xff]  ;;  %v52_v48 = vld [vmem:[%s1879_s0 + $0x78] sm:$0xff] }
  0x27   :  { %1374 = vmatprep.subr.bf16.mxu1 %v1456_v53  ;;  %v1142_v50 = vcombine.high %v47_v43, %v51_v44  ;;  %v55_v52 = vld [vmem:[%s1879_s0 + $0x90] sm:$0xff] }
  0x28   :  { %1329 = vmatpush3.bf16.msra.mxu0 %v1455_v45  ;;  %v1133_v45 = vcombine.low %v39_v38, %v43_v39  ;;  %v59_v53 = vld [vmem:[%s1879_s0 + $0xb0] sm:$0xff] }
  0x29   :  { %1375 = vmatpush3.bf16.msra.mxu1 %v1457_v55  ;;  %1330 = vmatprep.subr.bf16.mxu0 %v1458_v56  ;;  %v60_v55 = vld [vmem:[%s1879_s0 + $0xb8] sm:$0xff]  ;;  %v1141_v56 = vcombine.low %v47_v43, %v51_v44 }
  0x2a   :  { %1376 = vmatprep.subr.bf16.mxu1 %v1460_v58  ;;  %v1150_v58 = vcombine.high %v55_v52, %v59_v53 }
  0x2b   :  { %814 = vmatmul.mubr.bf16.gmra.mrb[4].mxu0 %v1137_v51  ;;  %v1144_v51 = vcombine.high %v48_v47, %v52_v48 }
  0x2c   :  { %886 = vmatmul.mubr.bf16.gmra.mrb[4].mxu1 %v1139_v54  ;;  %1331 = vmatpush3.bf16.msra.mxu0 %v1459_v57  ;;  %v56_v54 = vld [vmem:[%s1879_s0 + $0x98] sm:$0xff]  ;;  %v1143_v57 = vcombine.low %v48_v47, %v52_v48 }
  0x2d   :  { %1377 = vmatpush3.bf16.msra.mxu1 %v1461_v59  ;;  %821 = vmatprep.mubr.bf16.mxu0 %v1146_v0  ;;  %v1152_v59 = vcombine.high %v56_v54, %v60_v55  ;;  %v1149_v0 = vcombine.low %v55_v52, %v59_v53 }
  0x2e   :  { %893 = vmatprep.mubr.bf16.mxu1 %v1148_v1  ;;  %1332 = vmatprep.subr.bf16.mxu0 %v1462_v2  ;;  %v1151_v1 = vcombine.low %v56_v54, %v60_v55  ;;  %v1158_v2 = vcombine.high %v63_v60, %v67_v61 }
  0x2f   :  { %1378 = vmatprep.subr.bf16.mxu1 %v1464_v6  ;;  %v1157_v6 = vcombine.low %v63_v60, %v67_v61 }
  0x30   :  { %1333 = vmatpush3.bf16.msra.mxu0 %v1463_v5  ;;  %v72_v5 = vld [vmem:[%s1879_s0 + $0x118] sm:$0xff] }
  0x31   :  { %1379 = vmatpush3.bf16.msra.mxu1 %v1465_v7  ;;  %1334 = vmatprep.subr.bf16.mxu0 %v1466_v8  ;;  %v1159_v7 = vcombine.low %v64_v62, %v68_v63  ;;  %v1167_v11 = vcombine.low %v72_v5, %v72_v5 }
  0x32   :  { %1380 = vmatprep.subr.bf16.mxu1 %v1468_v10 }
  0x33   :  { %822 = vmatmul.mubr.bf16.gmra.mrb[8].mxu0 %v1145_v3  ;;  %v1160_v3 = vcombine.high %v64_v62, %v68_v63 }
  0x34   :  { %894 = vmatmul.mubr.bf16.gmra.mrb[8].mxu1 %v1147_v4  ;;  %1335 = vmatpush3.bf16.msra.mxu0 %v1467_v9  ;;  %v71_v4 = vld [vmem:[%s1879_s0 + $0x110] sm:$0xff]  ;;  %v1168_v9 = vcombine.high %v72_v5, %v72_v5 }
  0x35   :  { %829 = vmatprep.mubr.bf16.mxu0 %v1154_v14  ;;  %901 = vmatprep.mubr.bf16.mxu1 %v1156_v17  ;;  %v1166_v8 = vcombine.high %v71_v4, %v71_v4  ;;  %v1165_v10 = vcombine.low %v71_v4, %v71_v4 }
  0x36   :  { %1381 = vmatpush3.bf16.msra.mxu1 %v1469_v18  ;;  %1336 = vmatprep.subr.bf16.mxu0 %v1470_v20 }
  0x37   :  { %1382 = vmatprep.subr.bf16.mxu1 %v1472_v22 }
  0x38   :  { %1337 = vmatpush3.bf16.msra.mxu0 %v1471_v21 }
  0x39   :  { %1338 = vmatprep.subr.bf16.mxu0 %v1474_v24 }
  0x3a   :  { %1383 = vmatpush3.bf16.msra.mxu1 %v1473_v23 }
  0x3b   :  { %830 = vmatmul.mubr.bf16.gmra.mrb[12].mxu0 %v1153_v16  ;;  %1384 = vmatprep.subr.bf16.mxu1 %v1480_v31 }
  0x3c   :  { %902 = vmatmul.mubr.bf16.gmra.mrb[12].mxu1 %v1155_v19  ;;  %837 = vmatprep.mubr.bf16.mxu0 %v1162_v27 }
  0x3d   :  { %909 = vmatprep.mubr.bf16.mxu1 %v1164_v28  ;;  %1339 = vmatpush3.bf16.msra.mxu0 %v1477_v29 }
  0x3e   :  { %1385 = vmatpush3.bf16.msra.mxu1 %v1481_v33  ;;  %1340 = vmatprep.subr.bf16.mxu0 %v1482_v34 }
  0x3f   :  { %1386 = vmatprep.subr.bf16.mxu1 %v1484_v36 }
  0x41   :  { %1341 = vmatpush3.bf16.msra.mxu0 %v1483_v35 }
  0x42   :  { %1387 = vmatpush3.bf16.msra.mxu1 %v1485_v37 }
  0x43   :  { %838 = vmatmul.mubr.bf16.gmra.mrb[16].mxu0 %v1161_v30 }
  0x44   :  { %910 = vmatmul.mubr.bf16.gmra.mrb[16].mxu1 %v1163_v32  ;;  %949 = vmatprep.mubr.bf16.mxu0 %v1134_v41 }
  0x45   :  { %1021 = vmatprep.mubr.bf16.mxu1 %v1136_v46 }
  0x4b   :  { %950 = vmatmul.mubr.bf16.vlgmr.msra.gmra.mrb[20].mxu0 %v1133_v45 }
  0x4c   :  { %1022 = vmatmul.mubr.bf16.vlgmr.msra.gmra.mrb[20].mxu1 %v1135_v49  ;;  %957 = vmatprep.mubr.bf16.mxu0 %v1142_v50 }
  0x4d   :  { %1029 = vmatprep.mubr.bf16.mxu1 %v1144_v51 }
  0x53   :  { %958 = vmatmul.mubr.bf16.gmra.mrb[24].mxu0 %v1141_v56 }
  0x54   :  { %1030 = vmatmul.mubr.bf16.gmra.mrb[24].mxu1 %v1143_v57  ;;  %965 = vmatprep.mubr.bf16.mxu0 %v1150_v58 }
  0x55   :  { %1037 = vmatprep.mubr.bf16.mxu1 %v1152_v59 }
  0x5b   :  { %966 = vmatmul.mubr.bf16.gmra.mrb[28].mxu0 %v1149_v0 }
  0x5c   :  { %1038 = vmatmul.mubr.bf16.gmra.mrb[28].mxu1 %v1151_v1  ;;  %973 = vmatprep.mubr.bf16.mxu0 %v1158_v2 }
  0x5d   :  { %1045 = vmatprep.mubr.bf16.mxu1 %v1160_v3 }
  0x63   :  { %974 = vmatmul.mubr.bf16.gmra.mrb[32].mxu0 %v1157_v6 }
  0x64   :  { %1046 = vmatmul.mubr.bf16.gmra.mrb[32].mxu1 %v1159_v7  ;;  %981 = vmatprep.mubr.bf16.mxu0 %v1166_v8 }
  0x65   :  { %1053 = vmatprep.mubr.bf16.mxu1 %v1168_v9 }
  0x6b   :  { %982 = vmatmul.mubr.bf16.gmra.mrb[36].mxu0 %v1165_v10 }
  0x6c   :  { %1054 = vmatmul.mubr.bf16.gmra.mrb[36].mxu1 %v1167_v11 }
  0xf6   :  { %v1250_v12 = vpop.f32.mrb[0].mxu0 }
  0xf7   :  { %v1296_v13 = vpop.f32.mrb[0].mxu1  ;;  %v1251_v14 = vpop.f32.mrb[1].mxu0 }
  0xf8   :  { %v1252_v15 = vadd.f32 %v1251_v14, %v1250_v12  ;;  %v1297_v16 = vpop.f32.mrb[1].mxu1  ;;  %v1253_v17 = vpop.f32.mrb[2].mxu0 }
  0xf9   :  { %v1298_v18 = vadd.f32 %v1297_v16, %v1296_v13  ;;  %v1299_v19 = vpop.f32.mrb[2].mxu1  ;;  %v1254_v20 = vpop.f32.mrb[3].mxu0 }
  0xfa   :  { %v1255_v21 = vadd.f32 %v1254_v20, %v1253_v17  ;;  %v1300_v22 = vpop.f32.mrb[3].mxu1 }
  0xfb   :  { %v1810_v23 = vadd.f32 %v1298_v18, %v1252_v15  ;;  %v1301_v24 = vadd.f32 %v1300_v22, %v1299_v19 }
  0xfd   :  { %v1812_v25 = vadd.f32 %v1301_v24, %v1255_v21 }
  0xfe   :  { %v1256_v26 = vpop.f32.mrb[4].mxu0 }
  0xff   :  { %v1302_v27 = vpop.f32.mrb[4].mxu1  ;;  %v1257_v28 = vpop.f32.mrb[5].mxu0 }
 0x100   :  { %v1258_v29 = vadd.f32 %v1257_v28, %v1256_v26  ;;  %v1303_v30 = vpop.f32.mrb[5].mxu1  ;;  %v1259_v31 = vpop.f32.mrb[6].mxu0 }
 0x101   :  { %v1304_v32 = vadd.f32 %v1303_v30, %v1302_v27  ;;  %v1305_v33 = vpop.f32.mrb[6].mxu1  ;;  %v1260_v34 = vpop.f32.mrb[7].mxu0 }
 0x102   :  { %v1261_v35 = vadd.f32 %v1260_v34, %v1259_v31  ;;  %v1306_v36 = vpop.f32.mrb[7].mxu1 }
 0x103   :  { %v1814_v37 = vadd.f32 %v1304_v32, %v1258_v29  ;;  %v1307_v38 = vadd.f32 %v1306_v36, %v1305_v33  ;;  %v1832_v29 = vld [vmem:[%s1880_s2] ss:$0 sm:$0xff] }
 0x105   :  { %v1816_v39 = vadd.f32 %v1307_v38, %v1261_v35 }
 0x106   :  { %v1262_v40 = vpop.f32.mrb[8].mxu0 }
 0x107   :  { %v1308_v41 = vpop.f32.mrb[8].mxu1  ;;  %v1263_v42 = vpop.f32.mrb[9].mxu0 }
 0x108   :  { %v1264_v43 = vadd.f32 %v1263_v42, %v1262_v40  ;;  %v1309_v44 = vpop.f32.mrb[9].mxu1  ;;  %v1265_v45 = vpop.f32.mrb[10].mxu0 }
 0x109   :  { %v1310_v46 = vadd.f32 %v1309_v44, %v1308_v41  ;;  %v1311_v47 = vpop.f32.mrb[10].mxu1  ;;  %v1266_v48 = vpop.f32.mrb[11].mxu0 }
 0x10a   :  { %v1267_v49 = vadd.f32 %v1266_v48, %v1265_v45  ;;  %v1312_v50 = vpop.f32.mrb[11].mxu1 }
 0x10b   :  { %v1818_v51 = vadd.f32 %v1310_v46, %v1264_v43  ;;  %v1313_v52 = vadd.f32 %v1312_v50, %v1311_v47 }
 0x10d   :  { %v1820_v53 = vadd.f32 %v1313_v52, %v1267_v49 }
 0x10e   :  { %v1268_v54 = vpop.f32.mrb[12].mxu0 }
 0x10f   :  { %v1314_v55 = vpop.f32.mrb[12].mxu1  ;;  %v1269_v56 = vpop.f32.mrb[13].mxu0 }
 0x110   :  { %v1270_v57 = vadd.f32 %v1269_v56, %v1268_v54  ;;  %v1315_v58 = vpop.f32.mrb[13].mxu1  ;;  %v1271_v59 = vpop.f32.mrb[14].mxu0 }
 0x111   :  { %v1316_v60 = vadd.f32 %v1315_v58, %v1314_v55  ;;  %v1317_v61 = vpop.f32.mrb[14].mxu1  ;;  %v1272_v62 = vpop.f32.mrb[15].mxu0 }
 0x112   :  { %v1273_v63 = vadd.f32 %v1272_v62, %v1271_v59  ;;  %v1318_v0 = vpop.f32.mrb[15].mxu1 }
 0x113   :  { %v1822_v1 = vadd.f32 %v1316_v60, %v1270_v57  ;;  %v1319_v2 = vadd.f32 %v1318_v0, %v1317_v61 }
 0x115   :  { %v1824_v3 = vadd.f32 %v1319_v2, %v1273_v63 }
 0x116   :  { %v1274_v4 = vpop.f32.mrb[16].mxu0 }
 0x117   :  { %v1320_v5 = vpop.f32.mrb[16].mxu1  ;;  %v1275_v6 = vpop.f32.mrb[17].mxu0 }
 0x118   :  { %v1276_v7 = vadd.f32 %v1275_v6, %v1274_v4  ;;  %v1321_v8 = vpop.f32.mrb[17].mxu1  ;;  %v1277_v9 = vpop.f32.mrb[18].mxu0 }
 0x119   :  { %v1322_v10 = vadd.f32 %v1321_v8, %v1320_v5  ;;  %v1323_v11 = vpop.f32.mrb[18].mxu1  ;;  %v1278_v12 = vpop.f32.mrb[19].mxu0 }
 0x11a   :  { %v1324_v13 = vpop.f32.mrb[19].mxu1 }
 0x11b   :  { %v1826_v14 = vadd.f32 %v1322_v10, %v1276_v7 }
 0x11e   :  { %v1342_v15 = vpop.f32.mrb[20].mxu0 }
 0x11f   :  { %v1388_v16 = vpop.f32.mrb[20].mxu1  ;;  %v1343_v17 = vpop.f32.mrb[21].mxu0 }
 0x120   :  { %v1344_v18 = vadd.f32 %v1343_v17, %v1342_v15  ;;  %v1389_v19 = vpop.f32.mrb[21].mxu1  ;;  %v1345_v20 = vpop.f32.mrb[22].mxu0 }
 0x121   :  { %v1390_v21 = vadd.f32 %v1389_v19, %v1388_v16  ;;  %v1391_v22 = vpop.f32.mrb[22].mxu1  ;;  %v1346_v24 = vpop.f32.mrb[23].mxu0 }
 0x122   :  { %v952_v26 = vadd.f32 %v1344_v18, %v1810_v23  ;;  %v1347_v27 = vadd.f32 %v1346_v24, %v1345_v20  ;;  %v1392_v28 = vpop.f32.mrb[23].mxu1 }
 0x123   :  { %v1393_v30 = vadd.f32 %v1392_v28, %v1391_v22 }
 0x124   :  { %v1024_v31 = vadd.f32 %v1390_v21, %v952_v26  ;;  %v955_v32 = vadd.f32 %v1347_v27, %v1812_v25 }
 0x126   :  { %v1098_v33 = vadd.f32 %v1832_v29, %v1024_v31  ;;  %v1027_v34 = vadd.f32 %v1393_v30, %v955_v32  ;;  %v1348_v35 = vpop.f32.mrb[24].mxu0 }
 0x127   :  { %v1394_v36 = vpop.f32.mrb[24].mxu1  ;;  %v1349_v38 = vpop.f32.mrb[25].mxu0 }
 0x128   :  { %v1107_v40 = vmax.f32 %v1098_v33, 0.0  ;;  %v1099_v23 = vadd.f32 %v1832_v29, %v1027_v34  ;;  %v1350_v41 = vadd.f32 %v1349_v38, %v1348_v35  ;;  %v1395_v42 = vpop.f32.mrb[25].mxu1  ;;  %v1351_v43 = vpop.f32.mrb[26].mxu0 }
 0x129   :  { %v1396_v44 = vadd.f32 %v1395_v42, %v1394_v36  ;;  %v1397_v45 = vpop.f32.mrb[26].mxu1  ;;  %v1352_v46 = vpop.f32.mrb[27].mxu0 }
 0x12a   :  { %1116 = vst [vmem:[%s1881_s3] sm:$0xff] %v1107_v40  ;;  %v1108_v25 = vmax.f32 %v1099_v23, 0.0  ;;  %v960_v47 = vadd.f32 %v1350_v41, %v1814_v37  ;;  %v1353_v48 = vadd.f32 %v1352_v46, %v1351_v43  ;;  %v1398_v49 = vpop.f32.mrb[27].mxu1 }
 0x12b   :  { %v1399_v50 = vadd.f32 %v1398_v49, %v1397_v45 }
 0x12c   :  { %1117 = vst [vmem:[%s1881_s3 + $0x8] sm:$0xff] %v1108_v25  ;;  %v1032_v52 = vadd.f32 %v1396_v44, %v960_v47  ;;  %v963_v54 = vadd.f32 %v1353_v48, %v1816_v39 }
 0x12e   :  { %v1100_v55 = vadd.f32 %v1832_v29, %v1032_v52  ;;  %v1035_v56 = vadd.f32 %v1399_v50, %v963_v54  ;;  %v1354_v57 = vpop.f32.mrb[28].mxu0 }
 0x12f   :  { %v1400_v58 = vpop.f32.mrb[28].mxu1  ;;  %v1355_v59 = vpop.f32.mrb[29].mxu0 }
 0x130   :  { %v1109_v60 = vmax.f32 %v1100_v55, 0.0  ;;  %v1101_v61 = vadd.f32 %v1832_v29, %v1035_v56  ;;  %v1356_v37 = vadd.f32 %v1355_v59, %v1354_v57  ;;  %v1401_v62 = vpop.f32.mrb[29].mxu1  ;;  %v1357_v63 = vpop.f32.mrb[30].mxu0 }
 0x131   :  { %v1402_v0 = vadd.f32 %v1401_v62, %v1400_v58  ;;  %v1403_v2 = vpop.f32.mrb[30].mxu1  ;;  %v1358_v4 = vpop.f32.mrb[31].mxu0 }
 0x132   :  { %1118 = vst [vmem:[%s1881_s3 + $0x10] sm:$0xff] %v1109_v60  ;;  %v1110_v39 = vmax.f32 %v1101_v61, 0.0  ;;  %v968_v5 = vadd.f32 %v1356_v37, %v1818_v51  ;;  %v1359_v6 = vadd.f32 %v1358_v4, %v1357_v63  ;;  %v1404_v7 = vpop.f32.mrb[31].mxu1 }
 0x133   :  { %v1405_v8 = vadd.f32 %v1404_v7, %v1403_v2 }
 0x134   :  { %1119 = vst [vmem:[%s1881_s3 + $0x18] sm:$0xff] %v1110_v39  ;;  %v1040_v9 = vadd.f32 %v1402_v0, %v968_v5  ;;  %v971_v10 = vadd.f32 %v1359_v6, %v1820_v53 }
 0x136   :  { %v1102_v11 = vadd.f32 %v1832_v29, %v1040_v9  ;;  %v1043_v12 = vadd.f32 %v1405_v8, %v971_v10  ;;  %v1360_v13 = vpop.f32.mrb[32].mxu0 }
 0x137   :  { %v1406_v15 = vpop.f32.mrb[32].mxu1  ;;  %v1361_v16 = vpop.f32.mrb[33].mxu0 }
 0x138   :  { %v1111_v17 = vmax.f32 %v1102_v11, 0.0  ;;  %v1103_v18 = vadd.f32 %v1832_v29, %v1043_v12  ;;  %v1362_v51 = vadd.f32 %v1361_v16, %v1360_v13  ;;  %v1407_v19 = vpop.f32.mrb[33].mxu1  ;;  %v1363_v20 = vpop.f32.mrb[34].mxu0 }
 0x139   :  { %v1408_v21 = vadd.f32 %v1407_v19, %v1406_v15  ;;  %v1409_v22 = vpop.f32.mrb[34].mxu1  ;;  %v1364_v24 = vpop.f32.mrb[35].mxu0 }
 0x13a   :  { %1120 = vst [vmem:[%s1881_s3 + $0x20] sm:$0xff] %v1111_v17  ;;  %v1112_v53 = vmax.f32 %v1103_v18, 0.0  ;;  %v976_v26 = vadd.f32 %v1362_v51, %v1822_v1  ;;  %v1365_v27 = vadd.f32 %v1364_v24, %v1363_v20  ;;  %v1410_v28 = vpop.f32.mrb[35].mxu1 }
 0x13b   :  { %v1411_v30 = vadd.f32 %v1410_v28, %v1409_v22 }
 0x13c   :  { %1121 = vst [vmem:[%s1881_s3 + $0x28] sm:$0xff] %v1112_v53  ;;  %v1048_v31 = vadd.f32 %v1408_v21, %v976_v26  ;;  %v979_v32 = vadd.f32 %v1365_v27, %v1824_v3 }
 0x13e   :  { %v1104_v33 = vadd.f32 %v1832_v29, %v1048_v31  ;;  %v1051_v34 = vadd.f32 %v1411_v30, %v979_v32  ;;  %v1366_v35 = vpop.f32.mrb[36].mxu0 }
 0x13f   :  { %v1412_v36 = vpop.f32.mrb[36].mxu1  ;;  %v1367_v38 = vpop.f32.mrb[37].mxu0 }
 0x140   :  { %v1113_v40 = vmax.f32 %v1104_v33, 0.0  ;;  %v1105_v23 = vadd.f32 %v1832_v29, %v1051_v34  ;;  %v1368_v1 = vadd.f32 %v1367_v38, %v1366_v35  ;;  %v1413_v41 = vpop.f32.mrb[37].mxu1  ;;  %v1369_v42 = vpop.f32.mrb[38].mxu0 }
 0x141   :  { %v1414_v43 = vadd.f32 %v1413_v41, %v1412_v36  ;;  %v1415_v44 = vpop.f32.mrb[38].mxu1  ;;  %v1370_v45 = vpop.f32.mrb[39].mxu0 }
 0x142   :  { %1122 = vst [vmem:[%s1881_s3 + $0x30] sm:$0xff] %v1113_v40  ;;  %v1114_v3 = vmax.f32 %v1105_v23, 0.0  ;;  %v984_v46 = vadd.f32 %v1368_v1, %v1826_v14  ;;  %v1416_v25 = vpop.f32.mrb[39].mxu1 }
 0x144   :  { %1123 = vst [vmem:[%s1881_s3 + $0x38] sm:$0xff] %v1114_v3  ;;  %v1056_v47 = vadd.f32 %v1414_v43, %v984_v46 }
 0x146   :  { %v1106_v48 = vadd.f32 %v1832_v29, %v1056_v47 }
 0x148   :  { %v1115_v49 = vmax.f32 %v1106_v48, 0.0 }
 0x14a   :  { %1124 = vst [vmem:[%s1881_s3 + $0x40] sm:$0xff] %v1115_v49 }

// kernel: vae_forward.14
= control target key start
LH: loop header
LB: loop body
LE: loop exit
PB: predicated region body
PF: predicated region fallthrough
CT: control target
= control target key end

     0   :  { %12 = vsyncpa [#allocation3], 0  ;;  %s1923_s0 = inlined_call_operand.vmem [shape: bf16[8,1024], index: 0, kind: input, shape index: {}]   ;;  %s1924_s1 = inlined_call_operand.vmem [shape: bf16[1024,256], index: 1, kind: input, shape index: {}]   ;;  %s1925_s2 = inlined_call_operand.vmem [shape: f32[1,256], index: 2, kind: input, shape index: {}]   ;;  %s1926_s3 = inlined_call_operand.vmem [shape: f32[8,128], index: 3, kind: input, shape index: {}]   ;;  %s1927_s4 = inlined_call_operand.hbm [shape: f32[8,128], index: 4, kind: output, shape index: {0}]   ;;  %s1928_s5 = inlined_call_operand.hbm [shape: f32[8,128], index: 5, kind: output, shape index: {1}]   ;;  %s1929_s6 = inlined_call_operand.vmem [shape: f32[8,128], index: 6, kind: output, shape index: {2}]  }
   0x1   :  { %v1188_v0 = vld [vmem:[%s1924_s1 + $0x4] ss:$8 sps:$4 sm:$0xff]   ;;  %v1192_v2 = vld [vmem:[%s1924_s1] ss:$8 sps:$4 sm:$0xff]   ;;  %v1194_v4 = vld [vmem:[%s1924_s1 + $0x14] ss:$8 sps:$4 sm:$0xff]  }
   0x2   :  { %v1190_v1 = vld [vmem:[%s1924_s1 + $0x204] ss:$8 sps:$4 sm:$0xff]   ;;  %834 = vmatprep.subr.bf16.mxu1 %v1188_v0  ;;  %v1193_v3 = vld [vmem:[%s1924_s1 + $0x200] ss:$8 sps:$4 sm:$0xff]   ;;  %v1196_v5 = vld [vmem:[%s1924_s1 + $0x214] ss:$8 sps:$4 sm:$0xff]  }
   0x3   :  { %916 = vmatprep.subr.bf16.mxu0 %v1190_v1  ;;  %835 = vmatpush1.bf16.msra.mxu1 %v1192_v2  ;;  %v1198_v6 = vld [vmem:[%s1924_s1 + $0x10] ss:$8 sps:$4 sm:$0xff]   ;;  %v1200_v8 = vld [vmem:[%s1924_s1 + $0x24] ss:$8 sps:$4 sm:$0xff]   ;;  %v1204_v10 = vld [vmem:[%s1924_s1 + $0x20] ss:$8 sps:$4 sm:$0xff]  }
   0x4   :  { %917 = vmatpush1.bf16.msra.mxu0 %v1193_v3  ;;  %836 = vmatprep.subr.bf16.mxu1 %v1194_v4  ;;  %v1199_v7 = vld [vmem:[%s1924_s1 + $0x210] ss:$8 sps:$4 sm:$0xff]   ;;  %v1202_v9 = vld [vmem:[%s1924_s1 + $0x224] ss:$8 sps:$4 sm:$0xff]   ;;  %v1205_v11 = vld [vmem:[%s1924_s1 + $0x220] ss:$8 sps:$4 sm:$0xff]  }
   0x5   :  { %918 = vmatprep.subr.bf16.mxu0 %v1196_v5  ;;  %v1206_v12 = vld [vmem:[%s1924_s1 + $0x34] ss:$8 sps:$4 sm:$0xff]   ;;  %v1210_v14 = vld [vmem:[%s1924_s1 + $0x30] ss:$8 sps:$4 sm:$0xff]   ;;  %v1212_v16 = vld [vmem:[%s1924_s1 + $0x44] ss:$8 sps:$4 sm:$0xff]  }
   0x6   :  { %v1208_v13 = vld [vmem:[%s1924_s1 + $0x234] ss:$8 sps:$4 sm:$0xff]   ;;  %v1211_v15 = vld [vmem:[%s1924_s1 + $0x230] ss:$8 sps:$4 sm:$0xff]   ;;  %v1214_v17 = vld [vmem:[%s1924_s1 + $0x244] ss:$8 sps:$4 sm:$0xff]  }
   0x7   :  { %837 = vmatpush1.bf16.msra.mxu1 %v1198_v6  ;;  %v1216_v18 = vld [vmem:[%s1924_s1 + $0x40] ss:$8 sps:$4 sm:$0xff]   ;;  %v1218_v20 = vld [vmem:[%s1924_s1 + $0x54] ss:$8 sps:$4 sm:$0xff]   ;;  %v1222_v22 = vld [vmem:[%s1924_s1 + $0x50] ss:$8 sps:$4 sm:$0xff]  }
   0x8   :  { %919 = vmatpush1.bf16.msra.mxu0 %v1199_v7  ;;  %838 = vmatprep.subr.bf16.mxu1 %v1200_v8  ;;  %v1217_v19 = vld [vmem:[%s1924_s1 + $0x240] ss:$8 sps:$4 sm:$0xff]   ;;  %v1220_v21 = vld [vmem:[%s1924_s1 + $0x254] ss:$8 sps:$4 sm:$0xff]   ;;  %v1223_v23 = vld [vmem:[%s1924_s1 + $0x250] ss:$8 sps:$4 sm:$0xff]  }
   0x9   :  { %920 = vmatprep.subr.bf16.mxu0 %v1202_v9  ;;  %v1224_v24 = vld [vmem:[%s1924_s1 + $0x64] ss:$8 sps:$4 sm:$0xff]   ;;  %v1228_v26 = vld [vmem:[%s1924_s1 + $0x60] ss:$8 sps:$4 sm:$0xff]   ;;  %v1230_v28 = vld [vmem:[%s1924_s1 + $0x74] ss:$8 sps:$4 sm:$0xff]  }
   0xa   :  { %v1226_v25 = vld [vmem:[%s1924_s1 + $0x264] ss:$8 sps:$4 sm:$0xff]   ;;  %v1229_v27 = vld [vmem:[%s1924_s1 + $0x260] ss:$8 sps:$4 sm:$0xff]   ;;  %v1232_v29 = vld [vmem:[%s1924_s1 + $0x274] ss:$8 sps:$4 sm:$0xff]  }
   0xb   :  { %839 = vmatpush1.bf16.msra.mxu1 %v1204_v10  ;;  %v1234_v30 = vld [vmem:[%s1924_s1 + $0x70] ss:$8 sps:$4 sm:$0xff]   ;;  %v1236_v32 = vld [vmem:[%s1924_s1 + $0x84] ss:$8 sps:$4 sm:$0xff]   ;;  %v1240_v34 = vld [vmem:[%s1924_s1 + $0x80] ss:$8 sps:$4 sm:$0xff]  }
   0xc   :  { %921 = vmatpush1.bf16.msra.mxu0 %v1205_v11  ;;  %840 = vmatprep.subr.bf16.mxu1 %v1206_v12  ;;  %v1235_v31 = vld [vmem:[%s1924_s1 + $0x270] ss:$8 sps:$4 sm:$0xff]   ;;  %v1238_v33 = vld [vmem:[%s1924_s1 + $0x284] ss:$8 sps:$4 sm:$0xff]   ;;  %v1241_v35 = vld [vmem:[%s1924_s1 + $0x280] ss:$8 sps:$4 sm:$0xff]  }
   0xd   :  { %922 = vmatprep.subr.bf16.mxu0 %v1208_v13  ;;  %v1242_v36 = vld [vmem:[%s1924_s1 + $0x94] ss:$8 sps:$4 sm:$0xff]   ;;  %v1246_v38 = vld [vmem:[%s1924_s1 + $0x90] ss:$8 sps:$4 sm:$0xff]   ;;  %v1248_v40 = vld [vmem:[%s1924_s1 + $0xa4] ss:$8 sps:$4 sm:$0xff]  }
   0xe   :  { %v1244_v37 = vld [vmem:[%s1924_s1 + $0x294] ss:$8 sps:$4 sm:$0xff]   ;;  %v1247_v39 = vld [vmem:[%s1924_s1 + $0x290] ss:$8 sps:$4 sm:$0xff]   ;;  %v1250_v41 = vld [vmem:[%s1924_s1 + $0x2a4] ss:$8 sps:$4 sm:$0xff]  }
   0xf   :  { %841 = vmatpush1.bf16.msra.mxu1 %v1210_v14  ;;  %v1252_v42 = vld [vmem:[%s1924_s1 + $0xa0] ss:$8 sps:$4 sm:$0xff]   ;;  %v1254_v44 = vld [vmem:[%s1924_s1 + $0xb4] ss:$8 sps:$4 sm:$0xff]   ;;  %v1258_v47 = vld [vmem:[%s1924_s1 + $0xb0] ss:$8 sps:$4 sm:$0xff]  }
  0x10   :  { %923 = vmatpush1.bf16.msra.mxu0 %v1211_v15  ;;  %842 = vmatprep.subr.bf16.mxu1 %v1212_v16  ;;  %v1253_v43 = vld [vmem:[%s1924_s1 + $0x2a0] ss:$8 sps:$4 sm:$0xff]   ;;  %v1256_v45 = vld [vmem:[%s1924_s1 + $0x2b4] ss:$8 sps:$4 sm:$0xff]   ;;  %v1259_v49 = vld [vmem:[%s1924_s1 + $0x2b0] ss:$8 sps:$4 sm:$0xff]  }
  0x11   :  { %924 = vmatprep.subr.bf16.mxu0 %v1214_v17  ;;  %v22_v46 = vld [vmem:[%s1923_s0] sm:$0xff]  ;;  %v24_v50 = vld [vmem:[%s1923_s0 + $0x10] sm:$0xff] }
  0x12   :  { %v1039_v48 = vcombine.high %v22_v46, %v22_v46  ;;  %v1260_v51 = vld [vmem:[%s1924_s1 + $0xc4] ss:$8 sps:$4 sm:$0xff]   ;;  %v1043_v53 = vcombine.high %v24_v50, %v24_v50  ;;  %v1264_v54 = vld [vmem:[%s1924_s1 + $0xc0] ss:$8 sps:$4 sm:$0xff]   ;;  %v1266_v56 = vld [vmem:[%s1924_s1 + $0xd4] ss:$8 sps:$4 sm:$0xff]   ;;  %v1038_v6 = vcombine.low %v22_v46, %v22_v46  ;;  %v1042_v7 = vcombine.low %v24_v50, %v24_v50 }
  0x13   :  { %843 = vmatpush1.bf16.msra.mxu1 %v1216_v18  ;;  %v1262_v52 = vld [vmem:[%s1924_s1 + $0x2c4] ss:$8 sps:$4 sm:$0xff]   ;;  %v1265_v55 = vld [vmem:[%s1924_s1 + $0x2c0] ss:$8 sps:$4 sm:$0xff]   ;;  %v1268_v57 = vld [vmem:[%s1924_s1 + $0x2d4] ss:$8 sps:$4 sm:$0xff]  }
  0x14   :  { %925 = vmatpush1.bf16.msra.mxu0 %v1217_v19  ;;  %844 = vmatprep.subr.bf16.mxu1 %v1218_v20  ;;  %v1270_v58 = vld [vmem:[%s1924_s1 + $0xd0] ss:$8 sps:$4 sm:$0xff]   ;;  %v1272_v60 = vld [vmem:[%s1924_s1 + $0xe4] ss:$8 sps:$4 sm:$0xff]   ;;  %v1276_v62 = vld [vmem:[%s1924_s1 + $0xe0] ss:$8 sps:$4 sm:$0xff]  }
  0x15   :  { %926 = vmatprep.subr.bf16.mxu0 %v1220_v21  ;;  %866 = vmatprep.mubr.bf16.mxu1 %v1039_v48  ;;  %v1271_v59 = vld [vmem:[%s1924_s1 + $0x2d0] ss:$8 sps:$4 sm:$0xff]   ;;  %v1274_v61 = vld [vmem:[%s1924_s1 + $0x2e4] ss:$8 sps:$4 sm:$0xff]   ;;  %v1277_v63 = vld [vmem:[%s1924_s1 + $0x2e0] ss:$8 sps:$4 sm:$0xff]  }
  0x16   :  { %948 = vmatprep.mubr.bf16.mxu0 %v1043_v53  ;;  %v1278_v0 = vld [vmem:[%s1924_s1 + $0xf4] ss:$8 sps:$4 sm:$0xff]   ;;  %v1282_v2 = vld [vmem:[%s1924_s1 + $0xf0] ss:$8 sps:$4 sm:$0xff]   ;;  %v1288_v4 = vld [vmem:[%s1924_s1 + $0x104] ss:$8 sps:$4 sm:$0xff]  }
  0x17   :  { %845 = vmatpush1.bf16.msra.mxu1 %v1222_v22  ;;  %v1280_v1 = vld [vmem:[%s1924_s1 + $0x2f4] ss:$8 sps:$4 sm:$0xff]   ;;  %v1283_v3 = vld [vmem:[%s1924_s1 + $0x2f0] ss:$8 sps:$4 sm:$0xff]   ;;  %v1293_v5 = vld [vmem:[%s1924_s1 + $0x304] ss:$8 sps:$4 sm:$0xff]  }
  0x18   :  { %927 = vmatpush1.bf16.msra.mxu0 %v1223_v23  ;;  %846 = vmatprep.subr.bf16.mxu1 %v1224_v24  ;;  %v1286_v8 = vld [vmem:[%s1924_s1 + $0x100] ss:$8 sps:$4 sm:$0xff]   ;;  %v1296_v10 = vld [vmem:[%s1924_s1 + $0x114] ss:$8 sps:$4 sm:$0xff]   ;;  %v1294_v12 = vld [vmem:[%s1924_s1 + $0x110] ss:$8 sps:$4 sm:$0xff]  }
  0x19   :  { %928 = vmatprep.subr.bf16.mxu0 %v1226_v25  ;;  %v1291_v9 = vld [vmem:[%s1924_s1 + $0x300] ss:$8 sps:$4 sm:$0xff]   ;;  %v1299_v11 = vld [vmem:[%s1924_s1 + $0x314] ss:$8 sps:$4 sm:$0xff]   ;;  %v1297_v13 = vld [vmem:[%s1924_s1 + $0x310] ss:$8 sps:$4 sm:$0xff]  }
  0x1a   :  { %v1302_v14 = vld [vmem:[%s1924_s1 + $0x124] ss:$8 sps:$4 sm:$0xff]   ;;  %v1300_v16 = vld [vmem:[%s1924_s1 + $0x120] ss:$8 sps:$4 sm:$0xff]   ;;  %v1308_v18 = vld [vmem:[%s1924_s1 + $0x134] ss:$8 sps:$4 sm:$0xff]  }
  0x1b   :  { %847 = vmatpush1.bf16.msra.mxu1 %v1228_v26  ;;  %v1305_v15 = vld [vmem:[%s1924_s1 + $0x324] ss:$8 sps:$4 sm:$0xff]   ;;  %v1303_v17 = vld [vmem:[%s1924_s1 + $0x320] ss:$8 sps:$4 sm:$0xff]   ;;  %v1311_v19 = vld [vmem:[%s1924_s1 + $0x334] ss:$8 sps:$4 sm:$0xff]  }
  0x1c   :  { %929 = vmatpush1.bf16.msra.mxu0 %v1229_v27  ;;  %848 = vmatprep.subr.bf16.mxu1 %v1230_v28  ;;  %v1306_v20 = vld [vmem:[%s1924_s1 + $0x130] ss:$8 sps:$4 sm:$0xff]   ;;  %v1314_v22 = vld [vmem:[%s1924_s1 + $0x144] ss:$8 sps:$4 sm:$0xff]   ;;  %v1312_v24 = vld [vmem:[%s1924_s1 + $0x140] ss:$8 sps:$4 sm:$0xff]  }
  0x1d   :  { %930 = vmatprep.subr.bf16.mxu0 %v1232_v29  ;;  %v1309_v21 = vld [vmem:[%s1924_s1 + $0x330] ss:$8 sps:$4 sm:$0xff]   ;;  %v1317_v23 = vld [vmem:[%s1924_s1 + $0x344] ss:$8 sps:$4 sm:$0xff]   ;;  %v1315_v25 = vld [vmem:[%s1924_s1 + $0x340] ss:$8 sps:$4 sm:$0xff]  }
  0x1e   :  { %v1320_v26 = vld [vmem:[%s1924_s1 + $0x154] ss:$8 sps:$4 sm:$0xff]   ;;  %v1318_v28 = vld [vmem:[%s1924_s1 + $0x150] ss:$8 sps:$4 sm:$0xff]  }
  0x1f   :  { %849 = vmatpush1.bf16.msra.mxu1 %v1234_v30  ;;  %v1323_v27 = vld [vmem:[%s1924_s1 + $0x354] ss:$8 sps:$4 sm:$0xff]   ;;  %v1321_v29 = vld [vmem:[%s1924_s1 + $0x350] ss:$8 sps:$4 sm:$0xff]   ;;  %v1326_v30 = vld [vmem:[%s1924_s1 + $0x164] ss:$8 sps:$4 sm:$0xff]  }
  0x20   :  { %931 = vmatpush1.bf16.msra.mxu0 %v1235_v31  ;;  %850 = vmatprep.subr.bf16.mxu1 %v1236_v32  ;;  %v1329_v31 = vld [vmem:[%s1924_s1 + $0x364] ss:$8 sps:$4 sm:$0xff]  }
  0x21   :  { %932 = vmatprep.subr.bf16.mxu0 %v1238_v33  ;;  %v1754_v32 = vld [vmem:[%s1923_s0 + $0x8] sm:$0xff]  ;;  %v1759_v33 = vld [vmem:[%s1923_s0 + $0x18] sm:$0xff] }
  0x23   :  { %851 = vmatpush1.bf16.msra.mxu1 %v1240_v34  ;;  %v1041_v34 = vcombine.high %v1754_v32, %v1754_v32 }
  0x24   :  { %933 = vmatpush1.bf16.msra.mxu0 %v1241_v35  ;;  %852 = vmatprep.subr.bf16.mxu1 %v1242_v36  ;;  %v1045_v35 = vcombine.high %v1759_v33, %v1759_v33 }
  0x25   :  { %934 = vmatprep.subr.bf16.mxu0 %v1244_v37 }
  0x27   :  { %853 = vmatpush1.bf16.msra.mxu1 %v1246_v38 }
  0x28   :  { %935 = vmatpush1.bf16.msra.mxu0 %v1247_v39  ;;  %854 = vmatprep.subr.bf16.mxu1 %v1248_v40 }
  0x29   :  { %936 = vmatprep.subr.bf16.mxu0 %v1250_v41 }
  0x2b   :  { %855 = vmatpush1.bf16.msra.mxu1 %v1252_v42 }
  0x2c   :  { %937 = vmatpush1.bf16.msra.mxu0 %v1253_v43  ;;  %856 = vmatprep.subr.bf16.mxu1 %v1254_v44 }
  0x2d   :  { %938 = vmatprep.subr.bf16.mxu0 %v1256_v45 }
  0x2f   :  { %857 = vmatpush1.bf16.msra.mxu1 %v1258_v47 }
  0x30   :  { %939 = vmatpush1.bf16.msra.mxu0 %v1259_v49  ;;  %858 = vmatprep.subr.bf16.mxu1 %v1260_v51 }
  0x31   :  { %940 = vmatprep.subr.bf16.mxu0 %v1262_v52 }
  0x33   :  { %859 = vmatpush1.bf16.msra.mxu1 %v1264_v54 }
  0x34   :  { %941 = vmatpush1.bf16.msra.mxu0 %v1265_v55  ;;  %860 = vmatprep.subr.bf16.mxu1 %v1266_v56 }
  0x35   :  { %942 = vmatprep.subr.bf16.mxu0 %v1268_v57 }
  0x37   :  { %861 = vmatpush1.bf16.msra.mxu1 %v1270_v58 }
  0x38   :  { %943 = vmatpush1.bf16.msra.mxu0 %v1271_v59  ;;  %862 = vmatprep.subr.bf16.mxu1 %v1272_v60 }
  0x39   :  { %944 = vmatprep.subr.bf16.mxu0 %v1274_v61 }
  0x3b   :  { %863 = vmatpush1.bf16.msra.mxu1 %v1276_v62 }
  0x3c   :  { %945 = vmatpush1.bf16.msra.mxu0 %v1277_v63  ;;  %864 = vmatprep.subr.bf16.mxu1 %v1278_v0 }
  0x3d   :  { %946 = vmatprep.subr.bf16.mxu0 %v1280_v1 }
  0x3f   :  { %865 = vmatpush1.bf16.msra.mxu1 %v1282_v2 }
  0x40   :  { %947 = vmatpush1.bf16.msra.mxu0 %v1283_v3  ;;  %875 = vmatprep.subr.bf16.mxu1 %v1288_v4 }
  0x41   :  { %957 = vmatprep.subr.bf16.mxu0 %v1293_v5 }
  0x42   :  { %867 = vmatmul.mubr.bf16.vlgmr.msra.gmra.mrb[0].mxu1 %v1038_v6 }
  0x43   :  { %949 = vmatmul.mubr.bf16.vlgmr.msra.gmra.mrb[0].mxu0 %v1042_v7  ;;  %876 = vmatpush1.bf16.msra.mxu1 %v1286_v8 }
  0x44   :  { %958 = vmatpush1.bf16.msra.mxu0 %v1291_v9  ;;  %877 = vmatprep.subr.bf16.mxu1 %v1296_v10 }
  0x45   :  { %959 = vmatprep.subr.bf16.mxu0 %v1299_v11 }
  0x47   :  { %878 = vmatpush1.bf16.msra.mxu1 %v1294_v12 }
  0x48   :  { %960 = vmatpush1.bf16.msra.mxu0 %v1297_v13  ;;  %879 = vmatprep.subr.bf16.mxu1 %v1302_v14 }
  0x49   :  { %961 = vmatprep.subr.bf16.mxu0 %v1305_v15 }
  0x4b   :  { %880 = vmatpush1.bf16.msra.mxu1 %v1300_v16 }
  0x4c   :  { %962 = vmatpush1.bf16.msra.mxu0 %v1303_v17  ;;  %881 = vmatprep.subr.bf16.mxu1 %v1308_v18 }
  0x4d   :  { %963 = vmatprep.subr.bf16.mxu0 %v1311_v19 }
  0x4f   :  { %882 = vmatpush1.bf16.msra.mxu1 %v1306_v20 }
  0x50   :  { %964 = vmatpush1.bf16.msra.mxu0 %v1309_v21  ;;  %883 = vmatprep.subr.bf16.mxu1 %v1314_v22 }
  0x51   :  { %965 = vmatprep.subr.bf16.mxu0 %v1317_v23 }
  0x53   :  { %884 = vmatpush1.bf16.msra.mxu1 %v1312_v24 }
  0x54   :  { %966 = vmatpush1.bf16.msra.mxu0 %v1315_v25  ;;  %885 = vmatprep.subr.bf16.mxu1 %v1320_v26 }
  0x55   :  { %967 = vmatprep.subr.bf16.mxu0 %v1323_v27 }
  0x56   :  { %13 = vsyncpa [#allocation5], 0  ;;  %v1324_v36 = vld [vmem:[%s1924_s1 + $0x160] ss:$8 sps:$4 sm:$0xff]   ;;  %v1332_v38 = vld [vmem:[%s1924_s1 + $0x174] ss:$8 sps:$4 sm:$0xff]   ;;  %907 = vmatprep.mubr.bf16.mxu1 %v1041_v34  ;;  %989 = vmatprep.mubr.bf16.mxu0 %v1045_v35  ;;  %v1040_v10 = vcombine.low %v1754_v32, %v1754_v32  ;;  %v1044_v11 = vcombine.low %v1759_v33, %v1759_v33  ;;  %v156_v12 = vlaneseq }
  0x57   :  { %886 = vmatpush1.bf16.msra.mxu1 %v1318_v28  ;;  %v1327_v37 = vld [vmem:[%s1924_s1 + $0x360] ss:$8 sps:$4 sm:$0xff]   ;;  %v1335_v39 = vld [vmem:[%s1924_s1 + $0x374] ss:$8 sps:$4 sm:$0xff]   ;;  %v1330_v40 = vld [vmem:[%s1924_s1 + $0x170] ss:$8 sps:$4 sm:$0xff]  }
  0x58   :  { %968 = vmatpush1.bf16.msra.mxu0 %v1321_v29  ;;  %887 = vmatprep.subr.bf16.mxu1 %v1326_v30  ;;  %v1333_v41 = vld [vmem:[%s1924_s1 + $0x370] ss:$8 sps:$4 sm:$0xff]   ;;  %v1338_v42 = vld [vmem:[%s1924_s1 + $0x184] ss:$8 sps:$4 sm:$0xff]   ;;  %v1336_v44 = vld [vmem:[%s1924_s1 + $0x180] ss:$8 sps:$4 sm:$0xff]  }
  0x59   :  { %969 = vmatprep.subr.bf16.mxu0 %v1329_v31  ;;  %v1341_v43 = vld [vmem:[%s1924_s1 + $0x384] ss:$8 sps:$4 sm:$0xff]   ;;  %v1339_v45 = vld [vmem:[%s1924_s1 + $0x380] ss:$8 sps:$4 sm:$0xff]   ;;  %v1344_v46 = vld [vmem:[%s1924_s1 + $0x194] ss:$8 sps:$4 sm:$0xff]  }
  0x5a   :  { %v1347_v47 = vld [vmem:[%s1924_s1 + $0x394] ss:$8 sps:$4 sm:$0xff]   ;;  %v1342_v48 = vld [vmem:[%s1924_s1 + $0x190] ss:$8 sps:$4 sm:$0xff]   ;;  %v1350_v50 = vld [vmem:[%s1924_s1 + $0x1a4] ss:$8 sps:$4 sm:$0xff]  }
  0x5b   :  { %888 = vmatpush1.bf16.msra.mxu1 %v1324_v36  ;;  %v1345_v49 = vld [vmem:[%s1924_s1 + $0x390] ss:$8 sps:$4 sm:$0xff]   ;;  %v1353_v51 = vld [vmem:[%s1924_s1 + $0x3a4] ss:$8 sps:$4 sm:$0xff]   ;;  %v1348_v52 = vld [vmem:[%s1924_s1 + $0x1a0] ss:$8 sps:$4 sm:$0xff]  }
  0x5c   :  { %970 = vmatpush1.bf16.msra.mxu0 %v1327_v37  ;;  %889 = vmatprep.subr.bf16.mxu1 %v1332_v38  ;;  %v1351_v53 = vld [vmem:[%s1924_s1 + $0x3a0] ss:$8 sps:$4 sm:$0xff]   ;;  %v1356_v54 = vld [vmem:[%s1924_s1 + $0x1b4] ss:$8 sps:$4 sm:$0xff]   ;;  %v1354_v56 = vld [vmem:[%s1924_s1 + $0x1b0] ss:$8 sps:$4 sm:$0xff]  }
  0x5d   :  { %971 = vmatprep.subr.bf16.mxu0 %v1335_v39  ;;  %v1359_v55 = vld [vmem:[%s1924_s1 + $0x3b4] ss:$8 sps:$4 sm:$0xff]   ;;  %v1357_v57 = vld [vmem:[%s1924_s1 + $0x3b0] ss:$8 sps:$4 sm:$0xff]   ;;  %v1362_v58 = vld [vmem:[%s1924_s1 + $0x1c4] ss:$8 sps:$4 sm:$0xff]  }
  0x5e   :  { %v1365_v59 = vld [vmem:[%s1924_s1 + $0x3c4] ss:$8 sps:$4 sm:$0xff]   ;;  %v1360_v60 = vld [vmem:[%s1924_s1 + $0x1c0] ss:$8 sps:$4 sm:$0xff]   ;;  %v1368_v62 = vld [vmem:[%s1924_s1 + $0x1d4] ss:$8 sps:$4 sm:$0xff]  }
  0x5f   :  { %890 = vmatpush1.bf16.msra.mxu1 %v1330_v40  ;;  %v1363_v61 = vld [vmem:[%s1924_s1 + $0x3c0] ss:$8 sps:$4 sm:$0xff]   ;;  %v1371_v63 = vld [vmem:[%s1924_s1 + $0x3d4] ss:$8 sps:$4 sm:$0xff]   ;;  %v1366_v0 = vld [vmem:[%s1924_s1 + $0x1d0] ss:$8 sps:$4 sm:$0xff]  }
  0x60   :  { %972 = vmatpush1.bf16.msra.mxu0 %v1333_v41  ;;  %891 = vmatprep.subr.bf16.mxu1 %v1338_v42  ;;  %v1369_v1 = vld [vmem:[%s1924_s1 + $0x3d0] ss:$8 sps:$4 sm:$0xff]   ;;  %v1374_v2 = vld [vmem:[%s1924_s1 + $0x1e4] ss:$8 sps:$4 sm:$0xff]   ;;  %v1372_v4 = vld [vmem:[%s1924_s1 + $0x1e0] ss:$8 sps:$4 sm:$0xff]  }
  0x61   :  { %973 = vmatprep.subr.bf16.mxu0 %v1341_v43  ;;  %v1377_v3 = vld [vmem:[%s1924_s1 + $0x3e4] ss:$8 sps:$4 sm:$0xff]   ;;  %v1375_v5 = vld [vmem:[%s1924_s1 + $0x3e0] ss:$8 sps:$4 sm:$0xff]   ;;  %v1380_v6 = vld [vmem:[%s1924_s1 + $0x1f4] ss:$8 sps:$4 sm:$0xff]  }
  0x62   :  { %v1383_v7 = vld [vmem:[%s1924_s1 + $0x3f4] ss:$8 sps:$4 sm:$0xff]   ;;  %v1378_v8 = vld [vmem:[%s1924_s1 + $0x1f0] ss:$8 sps:$4 sm:$0xff]   ;;  %v157_v13 = vshrl.u32 %v156_v12, 7  ;;  %s1439_s0 = smov [#allocation4]  }
  0x63   :  { %892 = vmatpush1.bf16.msra.mxu1 %v1336_v44  ;;  %v1381_v9 = vld [vmem:[%s1924_s1 + $0x3f0] ss:$8 sps:$4 sm:$0xff]   ;;  %v154_v15 = vld [vmem:[%s1925_s2] sm:$0x3]  ;;  %s1438_s1 = smov [#allocation2]   ;;  %s1022_s21 = sshll.u32 %s1439_s0, 4  ;;  %s1886_s21 = int_to_ptr.vmem [resolvable:$true] %s1022_s21 }
  0x64   :  { %974 = vmatpush1.bf16.msra.mxu0 %v1339_v45  ;;  %893 = vmatprep.subr.bf16.mxu1 %v1344_v46  ;;  %v158_v14 = vsub.s32 0, %v157_v13  ;;  %v162_v16 = vsub.s32 1, %v157_v13  ;;  %s1012_s20 = sshll.u32 %s1438_s1, 4  ;;  %s1013_s20 = int_to_ptr.vmem [resolvable:$true] %s1012_s20 }
  0x65   :  { %975 = vmatprep.subr.bf16.mxu0 %v1347_v47  ;;  %s1390_s2 = scalar_lea.vmem %s1013_s20, 128  ;;  %p1395_p1 = scmp.lt.s32.totalorder %s1013_s20, %s1013_s20 }
  0x66   :  { %v159_v17 = vrot.slane %v154_v15, %v158_v14  ;;  %v163_v18 = vrot.slane %v154_v15, %v162_v16  ;;  %p1391_p0 = scmp.ne.s32.totalorder %s1013_s20, %s1390_s2  ;;  %p1396_p2 = scmp.lt.s32.totalorder %s1390_s2, %s1390_s2 }
  0x67   :  { %894 = vmatpush1.bf16.msra.mxu1 %v1342_v48 }
  0x68   :  { %976 = vmatpush1.bf16.msra.mxu0 %v1345_v49  ;;  %895 = vmatprep.subr.bf16.mxu1 %v1350_v50  ;;  %p1397_p3 = por %p1396_p2, %p1395_p1 }
  0x69   :  { %977 = vmatprep.subr.bf16.mxu0 %v1353_v51 }
  0x6a   :  { %p1398_p4 = pnand %p1397_p3, %p1391_p0 }
  0x6b   :  { %896 = vmatpush1.bf16.msra.mxu1 %v1348_v52 }
  0x6c   :  { %978 = vmatpush1.bf16.msra.mxu0 %v1351_v53  ;;  %897 = vmatprep.subr.bf16.mxu1 %v1356_v54 }
  0x6d   :  { %979 = vmatprep.subr.bf16.mxu0 %v1359_v55 }
  0x6f   :  { %898 = vmatpush1.bf16.msra.mxu1 %v1354_v56 }
  0x70   :  { %980 = vmatpush1.bf16.msra.mxu0 %v1357_v57  ;;  %899 = vmatprep.subr.bf16.mxu1 %v1362_v58 }
  0x71   :  { %981 = vmatprep.subr.bf16.mxu0 %v1365_v59 }
  0x73   :  { %900 = vmatpush1.bf16.msra.mxu1 %v1360_v60 }
  0x74   :  { %982 = vmatpush1.bf16.msra.mxu0 %v1363_v61  ;;  %901 = vmatprep.subr.bf16.mxu1 %v1368_v62 }
  0x75   :  { %983 = vmatprep.subr.bf16.mxu0 %v1371_v63 }
  0x77   :  { %902 = vmatpush1.bf16.msra.mxu1 %v1366_v0 }
  0x78   :  { %984 = vmatpush1.bf16.msra.mxu0 %v1369_v1  ;;  %903 = vmatprep.subr.bf16.mxu1 %v1374_v2 }
  0x79   :  { %985 = vmatprep.subr.bf16.mxu0 %v1377_v3 }
  0x7b   :  { %904 = vmatpush1.bf16.msra.mxu1 %v1372_v4 }
  0x7c   :  { %986 = vmatpush1.bf16.msra.mxu0 %v1375_v5  ;;  %905 = vmatprep.subr.bf16.mxu1 %v1380_v6 }
  0x7d   :  { %987 = vmatprep.subr.bf16.mxu0 %v1383_v7 }
  0x7f   :  { %906 = vmatpush1.bf16.msra.mxu1 %v1378_v8 }
  0x80   :  { %988 = vmatpush1.bf16.msra.mxu0 %v1381_v9 }
  0x82   :  { %908 = vmatmul.mubr.bf16.vlgmr.msra.gmra.mrb[0].mxu1 %v1040_v10 }
  0x83   :  { %990 = vmatmul.mubr.bf16.vlgmr.msra.gmra.mrb[0].mxu0 %v1044_v11 }
 0x155   :  { %v909_v19 = vpop.f32.mrb[0].mxu1 }
 0x156   :  { %v991_v20 = vpop.f32.mrb[0].mxu0  ;;  %v1174_v21 = vadd.f32 %v909_v19, %v159_v17  ;;  %v911_v22 = vpop.f32.mrb[1].mxu1 }
 0x157   :  { %v993_v23 = vpop.f32.mrb[1].mxu0  ;;  %v1176_v24 = vadd.f32 %v911_v22, %v163_v18  ;;  %v913_v25 = vpop.f32.mrb[2].mxu1 }
 0x158   :  { %v995_v26 = vpop.f32.mrb[2].mxu0  ;;  %v1175_v27 = vadd.f32 %v1174_v21, %v991_v20  ;;  %v914_v28 = vpop.f32.mrb[3].mxu1 }
 0x159   :  { %v996_v29 = vpop.f32.mrb[3].mxu0  ;;  %v1177_v30 = vadd.f32 %v1176_v24, %v993_v23 }
 0x15a   :  { %998 = vst [vmem:[#allocation2] sm:$0xff] %v1175_v27 }
 0x15b   :  { %v1001_v31 = vmul.f32 1.442695, %v1177_v30  ;;  %999 = vst [vmem:[#allocation4] sm:$0xff] %v1177_v30 }
 0x15c   :  { %1401 = shalt.err (!%p1398_p4)
}
 0x15d   :  { %s1402_s24 = scalar_lea.hbm %s1927_s4, 128 }
 0x15e   :  { %p1403_p5 = scmp.ne.s32.totalorder %s1927_s4, %s1402_s24  ;;  %p1406_p6 = scmp.lt.u32.totalorder %s1402_s24, %s1927_s4 }
 0x160   :  { %p1408_p7 = pnand %p1406_p6, %p1403_p5 }
 0x162   :  { %1411 = shalt.err (!%p1408_p7)
}
 0x163   :  { %1015 = dma.vmem_to_hbm [thread:$0]  %s1013_s20, 128, %s1927_s4, [#allocation3]  }
 0x164   :  { %s1412_s7 = scalar_lea.vmem %s1886_s21, 128  ;;  %p1417_p9 = scmp.lt.s32.totalorder %s1886_s21, %s1886_s21 }
 0x165   :  { %p1413_p8 = scmp.ne.s32.totalorder %s1886_s21, %s1412_s7  ;;  %p1418_p10 = scmp.lt.s32.totalorder %s1412_s7, %s1412_s7 }
 0x167   :  { %p1419_p11 = por %p1418_p10, %p1417_p9 }
 0x169   :  { %p1420_p12 = pnand %p1419_p11, %p1413_p8 }
 0x16b   :  { %1423 = shalt.err (!%p1420_p12)
}
 0x16c   :  { %s1424_s10 = scalar_lea.hbm %s1928_s5, 128 }
 0x16d   :  { %p1425_p13 = scmp.ne.s32.totalorder %s1928_s5, %s1424_s10  ;;  %p1428_p0 = scmp.lt.u32.totalorder %s1424_s10, %s1928_s5 }
 0x16f   :  { %p1430_p1 = pnand %p1428_p0, %p1425_p13 }
 0x171   :  { %1433 = shalt.err (!%p1430_p1)
}
 0x172   :  { %1025 = dma.vmem_to_hbm [thread:$0]  %s1886_s21, 128, %s1928_s5, [#allocation5]   ;;  %1388 = vpow2.f32 %v1001_v31  ;;  %v1000_v32 = vld [vmem:[%s1926_s3] sm:$0xff] }
 0x17c   :  { %v1389_v33 = vpop.eup %1388 }
 0x17d   :  { %v1003_v34 = vmul.f32 %v1389_v33, %v1000_v32 }
 0x17f   :  { %v1004_v35 = vadd.f32 %v1175_v27, %v1003_v34 }
 0x181   :  { %1005 = vst [vmem:[%s1929_s6] sm:$0xff] %v1004_v35 }
 0x182   :  { %1434 = dma.done.wait [#allocation3], 128  }
 0x183   :  { %1435 = vsyncadd [#allocation3], 4294967168 }
 0x184   :  { %1436 = dma.done.wait [#allocation5], 128  }
 0x185   :  { %1437 = vsyncadd [#allocation5], 4294967168 }
 0x186   :  { %1036 = vsyncpa [#allocation3], 1 }
 0x187   :  { %1037 = vsyncpa [#allocation5], 1 }

// kernel: vae_forward.13
= control target key start
LH: loop header
LB: loop body
LE: loop exit
PB: predicated region body
PF: predicated region fallthrough
CT: control target
= control target key end

     0   :  { %s3510_s1 = inlined_call_operand.vmem [shape: bf16[2048,256], index: 1, kind: input, shape index: {}]   ;;  %s3511_s0 = inlined_call_operand.vmem [shape: bf16[8,2048], index: 0, kind: input, shape index: {}]   ;;  %s3512_s2 = inlined_call_operand.vmem [shape: f32[1,256], index: 2, kind: input, shape index: {}]   ;;  %s3513_s3 = inlined_call_operand.vmem [shape: f32[8,256], index: 3, kind: output, shape index: {}]  }
   0x1   :  { %v2253_v0 = vld [vmem:[%s3510_s1 + $0x4] ss:$8 sps:$4 sm:$0xff]   ;;  %v2257_v2 = vld [vmem:[%s3510_s1] ss:$8 sps:$4 sm:$0xff]   ;;  %v2259_v4 = vld [vmem:[%s3510_s1 + $0x14] ss:$8 sps:$4 sm:$0xff]  }
   0x2   :  { %v2255_v1 = vld [vmem:[%s3510_s1 + $0x104] ss:$8 sps:$4 sm:$0xff]   ;;  %1622 = vmatprep.subr.bf16.mxu0 %v2253_v0  ;;  %v2258_v3 = vld [vmem:[%s3510_s1 + $0x100] ss:$8 sps:$4 sm:$0xff]   ;;  %v2261_v5 = vld [vmem:[%s3510_s1 + $0x114] ss:$8 sps:$4 sm:$0xff]  }
   0x3   :  { %1663 = vmatprep.subr.bf16.mxu1 %v2255_v1  ;;  %1623 = vmatpush1.bf16.msra.mxu0 %v2257_v2  ;;  %v2263_v6 = vld [vmem:[%s3510_s1 + $0x10] ss:$8 sps:$4 sm:$0xff]   ;;  %v2265_v8 = vld [vmem:[%s3510_s1 + $0x24] ss:$8 sps:$4 sm:$0xff]   ;;  %v2269_v10 = vld [vmem:[%s3510_s1 + $0x20] ss:$8 sps:$4 sm:$0xff]  }
   0x4   :  { %1664 = vmatpush1.bf16.msra.mxu1 %v2258_v3  ;;  %1624 = vmatprep.subr.bf16.mxu0 %v2259_v4  ;;  %v2264_v7 = vld [vmem:[%s3510_s1 + $0x110] ss:$8 sps:$4 sm:$0xff]   ;;  %v2267_v9 = vld [vmem:[%s3510_s1 + $0x124] ss:$8 sps:$4 sm:$0xff]   ;;  %v2270_v11 = vld [vmem:[%s3510_s1 + $0x120] ss:$8 sps:$4 sm:$0xff]  }
   0x5   :  { %1665 = vmatprep.subr.bf16.mxu1 %v2261_v5  ;;  %v2271_v12 = vld [vmem:[%s3510_s1 + $0x34] ss:$8 sps:$4 sm:$0xff]   ;;  %v2275_v14 = vld [vmem:[%s3510_s1 + $0x30] ss:$8 sps:$4 sm:$0xff]   ;;  %v2277_v16 = vld [vmem:[%s3510_s1 + $0x44] ss:$8 sps:$4 sm:$0xff]  }
   0x6   :  { %v2273_v13 = vld [vmem:[%s3510_s1 + $0x134] ss:$8 sps:$4 sm:$0xff]   ;;  %v2276_v15 = vld [vmem:[%s3510_s1 + $0x130] ss:$8 sps:$4 sm:$0xff]   ;;  %v2279_v17 = vld [vmem:[%s3510_s1 + $0x144] ss:$8 sps:$4 sm:$0xff]  }
   0x7   :  { %1625 = vmatpush1.bf16.msra.mxu0 %v2263_v6  ;;  %v2281_v18 = vld [vmem:[%s3510_s1 + $0x40] ss:$8 sps:$4 sm:$0xff]   ;;  %v2283_v20 = vld [vmem:[%s3510_s1 + $0x54] ss:$8 sps:$4 sm:$0xff]   ;;  %v2287_v22 = vld [vmem:[%s3510_s1 + $0x50] ss:$8 sps:$4 sm:$0xff]  }
   0x8   :  { %1666 = vmatpush1.bf16.msra.mxu1 %v2264_v7  ;;  %1626 = vmatprep.subr.bf16.mxu0 %v2265_v8  ;;  %v2282_v19 = vld [vmem:[%s3510_s1 + $0x140] ss:$8 sps:$4 sm:$0xff]   ;;  %v2285_v21 = vld [vmem:[%s3510_s1 + $0x154] ss:$8 sps:$4 sm:$0xff]   ;;  %v2288_v23 = vld [vmem:[%s3510_s1 + $0x150] ss:$8 sps:$4 sm:$0xff]  }
   0x9   :  { %1667 = vmatprep.subr.bf16.mxu1 %v2267_v9  ;;  %v2289_v24 = vld [vmem:[%s3510_s1 + $0x64] ss:$8 sps:$4 sm:$0xff]   ;;  %v2293_v26 = vld [vmem:[%s3510_s1 + $0x60] ss:$8 sps:$4 sm:$0xff]   ;;  %v2295_v28 = vld [vmem:[%s3510_s1 + $0x74] ss:$8 sps:$4 sm:$0xff]  }
   0xa   :  { %v2291_v25 = vld [vmem:[%s3510_s1 + $0x164] ss:$8 sps:$4 sm:$0xff]   ;;  %v2294_v27 = vld [vmem:[%s3510_s1 + $0x160] ss:$8 sps:$4 sm:$0xff]   ;;  %v2297_v29 = vld [vmem:[%s3510_s1 + $0x174] ss:$8 sps:$4 sm:$0xff]  }
   0xb   :  { %1627 = vmatpush1.bf16.msra.mxu0 %v2269_v10  ;;  %v2299_v30 = vld [vmem:[%s3510_s1 + $0x70] ss:$8 sps:$4 sm:$0xff]   ;;  %v2301_v32 = vld [vmem:[%s3510_s1 + $0x84] ss:$8 sps:$4 sm:$0xff]   ;;  %v2305_v34 = vld [vmem:[%s3510_s1 + $0x80] ss:$8 sps:$4 sm:$0xff]  }
   0xc   :  { %1668 = vmatpush1.bf16.msra.mxu1 %v2270_v11  ;;  %1628 = vmatprep.subr.bf16.mxu0 %v2271_v12  ;;  %v2300_v31 = vld [vmem:[%s3510_s1 + $0x170] ss:$8 sps:$4 sm:$0xff]   ;;  %v2303_v33 = vld [vmem:[%s3510_s1 + $0x184] ss:$8 sps:$4 sm:$0xff]   ;;  %v2306_v35 = vld [vmem:[%s3510_s1 + $0x180] ss:$8 sps:$4 sm:$0xff]  }
   0xd   :  { %1669 = vmatprep.subr.bf16.mxu1 %v2273_v13  ;;  %v2307_v36 = vld [vmem:[%s3510_s1 + $0x94] ss:$8 sps:$4 sm:$0xff]   ;;  %v2311_v38 = vld [vmem:[%s3510_s1 + $0x90] ss:$8 sps:$4 sm:$0xff]   ;;  %v2313_v40 = vld [vmem:[%s3510_s1 + $0xa4] ss:$8 sps:$4 sm:$0xff]  }
   0xe   :  { %v2309_v37 = vld [vmem:[%s3510_s1 + $0x194] ss:$8 sps:$4 sm:$0xff]   ;;  %v2312_v39 = vld [vmem:[%s3510_s1 + $0x190] ss:$8 sps:$4 sm:$0xff]   ;;  %v2315_v41 = vld [vmem:[%s3510_s1 + $0x1a4] ss:$8 sps:$4 sm:$0xff]  }
   0xf   :  { %1629 = vmatpush1.bf16.msra.mxu0 %v2275_v14  ;;  %v2317_v42 = vld [vmem:[%s3510_s1 + $0xa0] ss:$8 sps:$4 sm:$0xff]   ;;  %v2319_v44 = vld [vmem:[%s3510_s1 + $0xb4] ss:$8 sps:$4 sm:$0xff]   ;;  %v2323_v49 = vld [vmem:[%s3510_s1 + $0xb0] ss:$8 sps:$4 sm:$0xff]  }
  0x10   :  { %1670 = vmatpush1.bf16.msra.mxu1 %v2276_v15  ;;  %1630 = vmatprep.subr.bf16.mxu0 %v2277_v16  ;;  %v2318_v43 = vld [vmem:[%s3510_s1 + $0x1a0] ss:$8 sps:$4 sm:$0xff]   ;;  %v2321_v45 = vld [vmem:[%s3510_s1 + $0x1b4] ss:$8 sps:$4 sm:$0xff]   ;;  %v2324_v50 = vld [vmem:[%s3510_s1 + $0x1b0] ss:$8 sps:$4 sm:$0xff]  }
  0x11   :  { %1671 = vmatprep.subr.bf16.mxu1 %v2279_v17  ;;  %v22_v46 = vld [vmem:[%s3511_s0] sm:$0xff]  ;;  %v23_v48 = vld [vmem:[%s3511_s0 + $0x8] sm:$0xff]  ;;  %v2331_v56 = vld [vmem:[%s3510_s1 + $0xd4] ss:$8 sps:$4 sm:$0xff]  }
  0x12   :  { %v1982_v47 = vcombine.high %v22_v46, %v22_v46  ;;  %v1984_v51 = vcombine.high %v23_v48, %v23_v48  ;;  %v2325_v52 = vld [vmem:[%s3510_s1 + $0xc4] ss:$8 sps:$4 sm:$0xff]   ;;  %v2329_v54 = vld [vmem:[%s3510_s1 + $0xc0] ss:$8 sps:$4 sm:$0xff]   ;;  %v2333_v57 = vld [vmem:[%s3510_s1 + $0x1d4] ss:$8 sps:$4 sm:$0xff]   ;;  %v1981_v6 = vcombine.low %v22_v46, %v22_v46  ;;  %v1983_v7 = vcombine.low %v23_v48, %v23_v48 }
  0x13   :  { %1631 = vmatpush1.bf16.msra.mxu0 %v2281_v18  ;;  %v2327_v53 = vld [vmem:[%s3510_s1 + $0x1c4] ss:$8 sps:$4 sm:$0xff]   ;;  %v2330_v55 = vld [vmem:[%s3510_s1 + $0x1c0] ss:$8 sps:$4 sm:$0xff]   ;;  %v2335_v58 = vld [vmem:[%s3510_s1 + $0xd0] ss:$8 sps:$4 sm:$0xff]  }
  0x14   :  { %1672 = vmatpush1.bf16.msra.mxu1 %v2282_v19  ;;  %1632 = vmatprep.subr.bf16.mxu0 %v2283_v20  ;;  %v2336_v59 = vld [vmem:[%s3510_s1 + $0x1d0] ss:$8 sps:$4 sm:$0xff]   ;;  %v2337_v60 = vld [vmem:[%s3510_s1 + $0xe4] ss:$8 sps:$4 sm:$0xff]   ;;  %v2341_v62 = vld [vmem:[%s3510_s1 + $0xe0] ss:$8 sps:$4 sm:$0xff]  }
  0x15   :  { %1673 = vmatprep.subr.bf16.mxu1 %v2285_v21  ;;  %1654 = vmatprep.mubr.bf16.mxu0 %v1982_v47  ;;  %v2339_v61 = vld [vmem:[%s3510_s1 + $0x1e4] ss:$8 sps:$4 sm:$0xff]   ;;  %v2342_v63 = vld [vmem:[%s3510_s1 + $0x1e0] ss:$8 sps:$4 sm:$0xff]   ;;  %v2343_v0 = vld [vmem:[%s3510_s1 + $0xf4] ss:$8 sps:$4 sm:$0xff]  }
  0x16   :  { %1695 = vmatprep.mubr.bf16.mxu1 %v1984_v51  ;;  %v2345_v1 = vld [vmem:[%s3510_s1 + $0x1f4] ss:$8 sps:$4 sm:$0xff]   ;;  %v2347_v2 = vld [vmem:[%s3510_s1 + $0xf0] ss:$8 sps:$4 sm:$0xff]   ;;  %v2355_v4 = vld [vmem:[%s3510_s1 + $0x204] ss:$8 sps:$4 sm:$0xff]  }
  0x17   :  { %1633 = vmatpush1.bf16.msra.mxu0 %v2287_v22  ;;  %v2348_v3 = vld [vmem:[%s3510_s1 + $0x1f0] ss:$8 sps:$4 sm:$0xff]   ;;  %v2358_v5 = vld [vmem:[%s3510_s1 + $0x304] ss:$8 sps:$4 sm:$0xff]   ;;  %v2353_v8 = vld [vmem:[%s3510_s1 + $0x200] ss:$8 sps:$4 sm:$0xff]  }
  0x18   :  { %1674 = vmatpush1.bf16.msra.mxu1 %v2288_v23  ;;  %1634 = vmatprep.subr.bf16.mxu0 %v2289_v24  ;;  %v2356_v9 = vld [vmem:[%s3510_s1 + $0x300] ss:$8 sps:$4 sm:$0xff]   ;;  %v2361_v10 = vld [vmem:[%s3510_s1 + $0x214] ss:$8 sps:$4 sm:$0xff]   ;;  %v2359_v12 = vld [vmem:[%s3510_s1 + $0x210] ss:$8 sps:$4 sm:$0xff]  }
  0x19   :  { %1675 = vmatprep.subr.bf16.mxu1 %v2291_v25  ;;  %v2364_v11 = vld [vmem:[%s3510_s1 + $0x314] ss:$8 sps:$4 sm:$0xff]   ;;  %v2362_v13 = vld [vmem:[%s3510_s1 + $0x310] ss:$8 sps:$4 sm:$0xff]   ;;  %v2367_v14 = vld [vmem:[%s3510_s1 + $0x224] ss:$8 sps:$4 sm:$0xff]  }
  0x1a   :  { %v2370_v15 = vld [vmem:[%s3510_s1 + $0x324] ss:$8 sps:$4 sm:$0xff]   ;;  %v2365_v16 = vld [vmem:[%s3510_s1 + $0x220] ss:$8 sps:$4 sm:$0xff]   ;;  %v2373_v18 = vld [vmem:[%s3510_s1 + $0x234] ss:$8 sps:$4 sm:$0xff]  }
  0x1b   :  { %1635 = vmatpush1.bf16.msra.mxu0 %v2293_v26  ;;  %v2368_v17 = vld [vmem:[%s3510_s1 + $0x320] ss:$8 sps:$4 sm:$0xff]   ;;  %v2376_v19 = vld [vmem:[%s3510_s1 + $0x334] ss:$8 sps:$4 sm:$0xff]   ;;  %v2371_v20 = vld [vmem:[%s3510_s1 + $0x230] ss:$8 sps:$4 sm:$0xff]  }
  0x1c   :  { %1676 = vmatpush1.bf16.msra.mxu1 %v2294_v27  ;;  %1636 = vmatprep.subr.bf16.mxu0 %v2295_v28  ;;  %v2374_v21 = vld [vmem:[%s3510_s1 + $0x330] ss:$8 sps:$4 sm:$0xff]   ;;  %v2379_v22 = vld [vmem:[%s3510_s1 + $0x244] ss:$8 sps:$4 sm:$0xff]   ;;  %v2377_v24 = vld [vmem:[%s3510_s1 + $0x240] ss:$8 sps:$4 sm:$0xff]  }
  0x1d   :  { %1677 = vmatprep.subr.bf16.mxu1 %v2297_v29  ;;  %v2382_v23 = vld [vmem:[%s3510_s1 + $0x344] ss:$8 sps:$4 sm:$0xff]   ;;  %v2380_v25 = vld [vmem:[%s3510_s1 + $0x340] ss:$8 sps:$4 sm:$0xff]   ;;  %v2385_v26 = vld [vmem:[%s3510_s1 + $0x254] ss:$8 sps:$4 sm:$0xff]  }
  0x1e   :  { %v2388_v27 = vld [vmem:[%s3510_s1 + $0x354] ss:$8 sps:$4 sm:$0xff]   ;;  %v2383_v28 = vld [vmem:[%s3510_s1 + $0x250] ss:$8 sps:$4 sm:$0xff]   ;;  %v2418_v51 = vld [vmem:[%s3510_s1 + $0x3a4] ss:$8 sps:$4 sm:$0xff]  }
  0x1f   :  { %1637 = vmatpush1.bf16.msra.mxu0 %v2299_v30  ;;  %v2386_v29 = vld [vmem:[%s3510_s1 + $0x350] ss:$8 sps:$4 sm:$0xff]   ;;  %v2391_v30 = vld [vmem:[%s3510_s1 + $0x264] ss:$8 sps:$4 sm:$0xff]   ;;  %v2409_v46 = vld [vmem:[%s3510_s1 + $0x294] ss:$8 sps:$4 sm:$0xff]  }
  0x20   :  { %1678 = vmatpush1.bf16.msra.mxu1 %v2300_v31  ;;  %1638 = vmatprep.subr.bf16.mxu0 %v2301_v32  ;;  %v2394_v31 = vld [vmem:[%s3510_s1 + $0x364] ss:$8 sps:$4 sm:$0xff]   ;;  %v2952_v32 = vld [vmem:[%s3511_s0 + $0x10] sm:$0xff] }
  0x21   :  { %1679 = vmatprep.subr.bf16.mxu1 %v2303_v33  ;;  %v2957_v33 = vld [vmem:[%s3511_s0 + $0x18] sm:$0xff] }
  0x22   :  { %v2412_v47 = vld [vmem:[%s3510_s1 + $0x394] ss:$8 sps:$4 sm:$0xff]   ;;  %v2407_v48 = vld [vmem:[%s3510_s1 + $0x290] ss:$8 sps:$4 sm:$0xff]  }
  0x23   :  { %1639 = vmatpush1.bf16.msra.mxu0 %v2305_v34  ;;  %v2389_v34 = vld [vmem:[%s3510_s1 + $0x260] ss:$8 sps:$4 sm:$0xff]  }
  0x24   :  { %1680 = vmatpush1.bf16.msra.mxu1 %v2306_v35  ;;  %1640 = vmatprep.subr.bf16.mxu0 %v2307_v36  ;;  %v2392_v35 = vld [vmem:[%s3510_s1 + $0x360] ss:$8 sps:$4 sm:$0xff]   ;;  %v1986_v36 = vcombine.high %v2952_v32, %v2952_v32 }
  0x25   :  { %1681 = vmatprep.subr.bf16.mxu1 %v2309_v37  ;;  %v1988_v37 = vcombine.high %v2957_v33, %v2957_v33 }
  0x27   :  { %1641 = vmatpush1.bf16.msra.mxu0 %v2311_v38  ;;  %v2397_v38 = vld [vmem:[%s3510_s1 + $0x274] ss:$8 sps:$4 sm:$0xff]  }
  0x28   :  { %1682 = vmatpush1.bf16.msra.mxu1 %v2312_v39  ;;  %1642 = vmatprep.subr.bf16.mxu0 %v2313_v40  ;;  %v2400_v39 = vld [vmem:[%s3510_s1 + $0x374] ss:$8 sps:$4 sm:$0xff]   ;;  %v2395_v40 = vld [vmem:[%s3510_s1 + $0x270] ss:$8 sps:$4 sm:$0xff]  }
  0x29   :  { %1683 = vmatprep.subr.bf16.mxu1 %v2315_v41  ;;  %v2398_v41 = vld [vmem:[%s3510_s1 + $0x370] ss:$8 sps:$4 sm:$0xff]  }
  0x2b   :  { %1643 = vmatpush1.bf16.msra.mxu0 %v2317_v42  ;;  %v2403_v42 = vld [vmem:[%s3510_s1 + $0x284] ss:$8 sps:$4 sm:$0xff]  }
  0x2c   :  { %1684 = vmatpush1.bf16.msra.mxu1 %v2318_v43  ;;  %1644 = vmatprep.subr.bf16.mxu0 %v2319_v44  ;;  %v2406_v43 = vld [vmem:[%s3510_s1 + $0x384] ss:$8 sps:$4 sm:$0xff]   ;;  %v2401_v44 = vld [vmem:[%s3510_s1 + $0x280] ss:$8 sps:$4 sm:$0xff]  }
  0x2d   :  { %1685 = vmatprep.subr.bf16.mxu1 %v2321_v45  ;;  %v2404_v45 = vld [vmem:[%s3510_s1 + $0x380] ss:$8 sps:$4 sm:$0xff]  }
  0x2f   :  { %1645 = vmatpush1.bf16.msra.mxu0 %v2323_v49  ;;  %v2410_v49 = vld [vmem:[%s3510_s1 + $0x390] ss:$8 sps:$4 sm:$0xff]  }
  0x30   :  { %1686 = vmatpush1.bf16.msra.mxu1 %v2324_v50  ;;  %1646 = vmatprep.subr.bf16.mxu0 %v2325_v52  ;;  %v2415_v50 = vld [vmem:[%s3510_s1 + $0x2a4] ss:$8 sps:$4 sm:$0xff]   ;;  %v2413_v52 = vld [vmem:[%s3510_s1 + $0x2a0] ss:$8 sps:$4 sm:$0xff]  }
  0x31   :  { %1687 = vmatprep.subr.bf16.mxu1 %v2327_v53  ;;  %v2416_v53 = vld [vmem:[%s3510_s1 + $0x3a0] ss:$8 sps:$4 sm:$0xff]  }
  0x33   :  { %1647 = vmatpush1.bf16.msra.mxu0 %v2329_v54  ;;  %v2421_v54 = vld [vmem:[%s3510_s1 + $0x2b4] ss:$8 sps:$4 sm:$0xff]  }
  0x34   :  { %1688 = vmatpush1.bf16.msra.mxu1 %v2330_v55  ;;  %1648 = vmatprep.subr.bf16.mxu0 %v2331_v56  ;;  %v2424_v55 = vld [vmem:[%s3510_s1 + $0x3b4] ss:$8 sps:$4 sm:$0xff]   ;;  %v2419_v56 = vld [vmem:[%s3510_s1 + $0x2b0] ss:$8 sps:$4 sm:$0xff]  }
  0x35   :  { %1689 = vmatprep.subr.bf16.mxu1 %v2333_v57  ;;  %v2422_v57 = vld [vmem:[%s3510_s1 + $0x3b0] ss:$8 sps:$4 sm:$0xff]  }
  0x37   :  { %1649 = vmatpush1.bf16.msra.mxu0 %v2335_v58  ;;  %v2427_v58 = vld [vmem:[%s3510_s1 + $0x2c4] ss:$8 sps:$4 sm:$0xff]  }
  0x38   :  { %1690 = vmatpush1.bf16.msra.mxu1 %v2336_v59  ;;  %1650 = vmatprep.subr.bf16.mxu0 %v2337_v60  ;;  %v2430_v59 = vld [vmem:[%s3510_s1 + $0x3c4] ss:$8 sps:$4 sm:$0xff]   ;;  %v2425_v60 = vld [vmem:[%s3510_s1 + $0x2c0] ss:$8 sps:$4 sm:$0xff]  }
  0x39   :  { %1691 = vmatprep.subr.bf16.mxu1 %v2339_v61  ;;  %v2428_v61 = vld [vmem:[%s3510_s1 + $0x3c0] ss:$8 sps:$4 sm:$0xff]  }
  0x3b   :  { %1651 = vmatpush1.bf16.msra.mxu0 %v2341_v62  ;;  %v2433_v62 = vld [vmem:[%s3510_s1 + $0x2d4] ss:$8 sps:$4 sm:$0xff]  }
  0x3c   :  { %1692 = vmatpush1.bf16.msra.mxu1 %v2342_v63  ;;  %1652 = vmatprep.subr.bf16.mxu0 %v2343_v0  ;;  %v2436_v63 = vld [vmem:[%s3510_s1 + $0x3d4] ss:$8 sps:$4 sm:$0xff]   ;;  %v2431_v0 = vld [vmem:[%s3510_s1 + $0x2d0] ss:$8 sps:$4 sm:$0xff]  }
  0x3d   :  { %1693 = vmatprep.subr.bf16.mxu1 %v2345_v1  ;;  %v2434_v1 = vld [vmem:[%s3510_s1 + $0x3d0] ss:$8 sps:$4 sm:$0xff]  }
  0x3f   :  { %1653 = vmatpush1.bf16.msra.mxu0 %v2347_v2  ;;  %v2439_v2 = vld [vmem:[%s3510_s1 + $0x2e4] ss:$8 sps:$4 sm:$0xff]  }
  0x40   :  { %1694 = vmatpush1.bf16.msra.mxu1 %v2348_v3  ;;  %1704 = vmatprep.subr.bf16.mxu0 %v2355_v4  ;;  %v2442_v3 = vld [vmem:[%s3510_s1 + $0x3e4] ss:$8 sps:$4 sm:$0xff]   ;;  %v2437_v4 = vld [vmem:[%s3510_s1 + $0x2e0] ss:$8 sps:$4 sm:$0xff]  }
  0x41   :  { %1745 = vmatprep.subr.bf16.mxu1 %v2358_v5  ;;  %v2440_v5 = vld [vmem:[%s3510_s1 + $0x3e0] ss:$8 sps:$4 sm:$0xff]  }
  0x42   :  { %1655 = vmatmul.mubr.bf16.vlgmr.msra.gmra.mrb[0].mxu0 %v1981_v6  ;;  %v2445_v6 = vld [vmem:[%s3510_s1 + $0x2f4] ss:$8 sps:$4 sm:$0xff]  }
  0x43   :  { %1696 = vmatmul.mubr.bf16.vlgmr.msra.gmra.mrb[0].mxu1 %v1983_v7  ;;  %1705 = vmatpush1.bf16.msra.mxu0 %v2353_v8  ;;  %v2448_v7 = vld [vmem:[%s3510_s1 + $0x3f4] ss:$8 sps:$4 sm:$0xff]   ;;  %v2443_v8 = vld [vmem:[%s3510_s1 + $0x2f0] ss:$8 sps:$4 sm:$0xff]  }
  0x44   :  { %1746 = vmatpush1.bf16.msra.mxu1 %v2356_v9  ;;  %1706 = vmatprep.subr.bf16.mxu0 %v2361_v10  ;;  %v2446_v9 = vld [vmem:[%s3510_s1 + $0x3f0] ss:$8 sps:$4 sm:$0xff]   ;;  %v2455_v10 = vld [vmem:[%s3510_s1 + $0x404] ss:$8 sps:$4 sm:$0xff]  }
  0x45   :  { %1747 = vmatprep.subr.bf16.mxu1 %v2364_v11  ;;  %1736 = vmatprep.mubr.bf16.mxu0 %v1986_v36  ;;  %v2458_v11 = vld [vmem:[%s3510_s1 + $0x504] ss:$8 sps:$4 sm:$0xff]   ;;  %v2485_v36 = vld [vmem:[%s3510_s1 + $0x454] ss:$8 sps:$4 sm:$0xff]  }
  0x46   :  { %1777 = vmatprep.mubr.bf16.mxu1 %v1988_v37  ;;  %v2488_v37 = vld [vmem:[%s3510_s1 + $0x554] ss:$8 sps:$4 sm:$0xff]  }
  0x47   :  { %1707 = vmatpush1.bf16.msra.mxu0 %v2359_v12  ;;  %v1985_v12 = vcombine.low %v2952_v32, %v2952_v32  ;;  %v2479_v32 = vld [vmem:[%s3510_s1 + $0x444] ss:$8 sps:$4 sm:$0xff]  }
  0x48   :  { %1748 = vmatpush1.bf16.msra.mxu1 %v2362_v13  ;;  %1708 = vmatprep.subr.bf16.mxu0 %v2367_v14  ;;  %v1987_v13 = vcombine.low %v2957_v33, %v2957_v33  ;;  %v2453_v14 = vld [vmem:[%s3510_s1 + $0x400] ss:$8 sps:$4 sm:$0xff]   ;;  %v2482_v33 = vld [vmem:[%s3510_s1 + $0x544] ss:$8 sps:$4 sm:$0xff]  }
  0x49   :  { %1749 = vmatprep.subr.bf16.mxu1 %v2370_v15  ;;  %v2456_v15 = vld [vmem:[%s3510_s1 + $0x500] ss:$8 sps:$4 sm:$0xff]  }
  0x4b   :  { %1709 = vmatpush1.bf16.msra.mxu0 %v2365_v16  ;;  %v2461_v16 = vld [vmem:[%s3510_s1 + $0x414] ss:$8 sps:$4 sm:$0xff]  }
  0x4c   :  { %1750 = vmatpush1.bf16.msra.mxu1 %v2368_v17  ;;  %1710 = vmatprep.subr.bf16.mxu0 %v2373_v18  ;;  %v2464_v17 = vld [vmem:[%s3510_s1 + $0x514] ss:$8 sps:$4 sm:$0xff]   ;;  %v3102_v18 = vld [vmem:[%s3511_s0 + $0x20] sm:$0xff] }
  0x4d   :  { %1751 = vmatprep.subr.bf16.mxu1 %v2376_v19  ;;  %v3107_v19 = vld [vmem:[%s3511_s0 + $0x28] sm:$0xff] }
  0x4f   :  { %1711 = vmatpush1.bf16.msra.mxu0 %v2371_v20  ;;  %v1990_v20 = vcombine.high %v3102_v18, %v3102_v18 }
  0x50   :  { %1752 = vmatpush1.bf16.msra.mxu1 %v2374_v21  ;;  %1712 = vmatprep.subr.bf16.mxu0 %v2379_v22  ;;  %v1992_v21 = vcombine.high %v3107_v19, %v3107_v19  ;;  %v2459_v22 = vld [vmem:[%s3510_s1 + $0x410] ss:$8 sps:$4 sm:$0xff]  }
  0x51   :  { %1753 = vmatprep.subr.bf16.mxu1 %v2382_v23  ;;  %v2462_v23 = vld [vmem:[%s3510_s1 + $0x510] ss:$8 sps:$4 sm:$0xff]  }
  0x53   :  { %1713 = vmatpush1.bf16.msra.mxu0 %v2377_v24  ;;  %v2467_v24 = vld [vmem:[%s3510_s1 + $0x424] ss:$8 sps:$4 sm:$0xff]  }
  0x54   :  { %1754 = vmatpush1.bf16.msra.mxu1 %v2380_v25  ;;  %1714 = vmatprep.subr.bf16.mxu0 %v2385_v26  ;;  %v2470_v25 = vld [vmem:[%s3510_s1 + $0x524] ss:$8 sps:$4 sm:$0xff]   ;;  %v2465_v26 = vld [vmem:[%s3510_s1 + $0x420] ss:$8 sps:$4 sm:$0xff]  }
  0x55   :  { %1755 = vmatprep.subr.bf16.mxu1 %v2388_v27  ;;  %v2468_v27 = vld [vmem:[%s3510_s1 + $0x520] ss:$8 sps:$4 sm:$0xff]  }
  0x57   :  { %1715 = vmatpush1.bf16.msra.mxu0 %v2383_v28  ;;  %v2473_v28 = vld [vmem:[%s3510_s1 + $0x434] ss:$8 sps:$4 sm:$0xff]  }
  0x58   :  { %1756 = vmatpush1.bf16.msra.mxu1 %v2386_v29  ;;  %1716 = vmatprep.subr.bf16.mxu0 %v2391_v30  ;;  %v2476_v29 = vld [vmem:[%s3510_s1 + $0x534] ss:$8 sps:$4 sm:$0xff]   ;;  %v2471_v30 = vld [vmem:[%s3510_s1 + $0x430] ss:$8 sps:$4 sm:$0xff]  }
  0x59   :  { %1757 = vmatprep.subr.bf16.mxu1 %v2394_v31  ;;  %v2474_v31 = vld [vmem:[%s3510_s1 + $0x530] ss:$8 sps:$4 sm:$0xff]  }
  0x5b   :  { %1717 = vmatpush1.bf16.msra.mxu0 %v2389_v34  ;;  %v2477_v34 = vld [vmem:[%s3510_s1 + $0x440] ss:$8 sps:$4 sm:$0xff]  }
  0x5c   :  { %1758 = vmatpush1.bf16.msra.mxu1 %v2392_v35  ;;  %1718 = vmatprep.subr.bf16.mxu0 %v2397_v38  ;;  %v2480_v35 = vld [vmem:[%s3510_s1 + $0x540] ss:$8 sps:$4 sm:$0xff]   ;;  %v2483_v38 = vld [vmem:[%s3510_s1 + $0x450] ss:$8 sps:$4 sm:$0xff]  }
  0x5d   :  { %1759 = vmatprep.subr.bf16.mxu1 %v2400_v39  ;;  %v2486_v39 = vld [vmem:[%s3510_s1 + $0x550] ss:$8 sps:$4 sm:$0xff]  }
  0x5f   :  { %1719 = vmatpush1.bf16.msra.mxu0 %v2395_v40  ;;  %v2491_v40 = vld [vmem:[%s3510_s1 + $0x464] ss:$8 sps:$4 sm:$0xff]  }
  0x60   :  { %1760 = vmatpush1.bf16.msra.mxu1 %v2398_v41  ;;  %1720 = vmatprep.subr.bf16.mxu0 %v2403_v42  ;;  %v2494_v41 = vld [vmem:[%s3510_s1 + $0x564] ss:$8 sps:$4 sm:$0xff]   ;;  %v2489_v42 = vld [vmem:[%s3510_s1 + $0x460] ss:$8 sps:$4 sm:$0xff]  }
  0x61   :  { %1761 = vmatprep.subr.bf16.mxu1 %v2406_v43  ;;  %v2492_v43 = vld [vmem:[%s3510_s1 + $0x560] ss:$8 sps:$4 sm:$0xff]  }
  0x63   :  { %1721 = vmatpush1.bf16.msra.mxu0 %v2401_v44  ;;  %v2497_v44 = vld [vmem:[%s3510_s1 + $0x474] ss:$8 sps:$4 sm:$0xff]  }
  0x64   :  { %1762 = vmatpush1.bf16.msra.mxu1 %v2404_v45  ;;  %1722 = vmatprep.subr.bf16.mxu0 %v2409_v46  ;;  %v2500_v45 = vld [vmem:[%s3510_s1 + $0x574] ss:$8 sps:$4 sm:$0xff]   ;;  %v2495_v46 = vld [vmem:[%s3510_s1 + $0x470] ss:$8 sps:$4 sm:$0xff]  }
  0x65   :  { %1763 = vmatprep.subr.bf16.mxu1 %v2412_v47  ;;  %v2498_v47 = vld [vmem:[%s3510_s1 + $0x570] ss:$8 sps:$4 sm:$0xff]  }
  0x67   :  { %1723 = vmatpush1.bf16.msra.mxu0 %v2407_v48  ;;  %v2503_v48 = vld [vmem:[%s3510_s1 + $0x484] ss:$8 sps:$4 sm:$0xff]  }
  0x68   :  { %1764 = vmatpush1.bf16.msra.mxu1 %v2410_v49  ;;  %1724 = vmatprep.subr.bf16.mxu0 %v2415_v50  ;;  %v2506_v49 = vld [vmem:[%s3510_s1 + $0x584] ss:$8 sps:$4 sm:$0xff]   ;;  %v2501_v50 = vld [vmem:[%s3510_s1 + $0x480] ss:$8 sps:$4 sm:$0xff]  }
  0x69   :  { %1765 = vmatprep.subr.bf16.mxu1 %v2418_v51  ;;  %v2504_v51 = vld [vmem:[%s3510_s1 + $0x580] ss:$8 sps:$4 sm:$0xff]  }
  0x6b   :  { %1725 = vmatpush1.bf16.msra.mxu0 %v2413_v52  ;;  %v2509_v52 = vld [vmem:[%s3510_s1 + $0x494] ss:$8 sps:$4 sm:$0xff]  }
  0x6c   :  { %1766 = vmatpush1.bf16.msra.mxu1 %v2416_v53  ;;  %1726 = vmatprep.subr.bf16.mxu0 %v2421_v54  ;;  %v2512_v53 = vld [vmem:[%s3510_s1 + $0x594] ss:$8 sps:$4 sm:$0xff]   ;;  %v2507_v54 = vld [vmem:[%s3510_s1 + $0x490] ss:$8 sps:$4 sm:$0xff]  }
  0x6d   :  { %1767 = vmatprep.subr.bf16.mxu1 %v2424_v55  ;;  %v2510_v55 = vld [vmem:[%s3510_s1 + $0x590] ss:$8 sps:$4 sm:$0xff]  }
  0x6f   :  { %1727 = vmatpush1.bf16.msra.mxu0 %v2419_v56  ;;  %v2515_v56 = vld [vmem:[%s3510_s1 + $0x4a4] ss:$8 sps:$4 sm:$0xff]  }
  0x70   :  { %1768 = vmatpush1.bf16.msra.mxu1 %v2422_v57  ;;  %1728 = vmatprep.subr.bf16.mxu0 %v2427_v58  ;;  %v2518_v57 = vld [vmem:[%s3510_s1 + $0x5a4] ss:$8 sps:$4 sm:$0xff]   ;;  %v2513_v58 = vld [vmem:[%s3510_s1 + $0x4a0] ss:$8 sps:$4 sm:$0xff]  }
  0x71   :  { %1769 = vmatprep.subr.bf16.mxu1 %v2430_v59  ;;  %v2516_v59 = vld [vmem:[%s3510_s1 + $0x5a0] ss:$8 sps:$4 sm:$0xff]  }
  0x73   :  { %1729 = vmatpush1.bf16.msra.mxu0 %v2425_v60  ;;  %v2521_v60 = vld [vmem:[%s3510_s1 + $0x4b4] ss:$8 sps:$4 sm:$0xff]  }
  0x74   :  { %1770 = vmatpush1.bf16.msra.mxu1 %v2428_v61  ;;  %1730 = vmatprep.subr.bf16.mxu0 %v2433_v62  ;;  %v2524_v61 = vld [vmem:[%s3510_s1 + $0x5b4] ss:$8 sps:$4 sm:$0xff]   ;;  %v2519_v62 = vld [vmem:[%s3510_s1 + $0x4b0] ss:$8 sps:$4 sm:$0xff]  }
  0x75   :  { %1771 = vmatprep.subr.bf16.mxu1 %v2436_v63  ;;  %v2522_v63 = vld [vmem:[%s3510_s1 + $0x5b0] ss:$8 sps:$4 sm:$0xff]  }
  0x77   :  { %1731 = vmatpush1.bf16.msra.mxu0 %v2431_v0  ;;  %v2527_v0 = vld [vmem:[%s3510_s1 + $0x4c4] ss:$8 sps:$4 sm:$0xff]  }
  0x78   :  { %1772 = vmatpush1.bf16.msra.mxu1 %v2434_v1  ;;  %1732 = vmatprep.subr.bf16.mxu0 %v2439_v2  ;;  %v2530_v1 = vld [vmem:[%s3510_s1 + $0x5c4] ss:$8 sps:$4 sm:$0xff]   ;;  %v2525_v2 = vld [vmem:[%s3510_s1 + $0x4c0] ss:$8 sps:$4 sm:$0xff]  }
  0x79   :  { %1773 = vmatprep.subr.bf16.mxu1 %v2442_v3  ;;  %v2528_v3 = vld [vmem:[%s3510_s1 + $0x5c0] ss:$8 sps:$4 sm:$0xff]  }
  0x7b   :  { %1733 = vmatpush1.bf16.msra.mxu0 %v2437_v4  ;;  %v2533_v4 = vld [vmem:[%s3510_s1 + $0x4d4] ss:$8 sps:$4 sm:$0xff]  }
  0x7c   :  { %1774 = vmatpush1.bf16.msra.mxu1 %v2440_v5  ;;  %1734 = vmatprep.subr.bf16.mxu0 %v2445_v6  ;;  %v2536_v5 = vld [vmem:[%s3510_s1 + $0x5d4] ss:$8 sps:$4 sm:$0xff]   ;;  %v2531_v6 = vld [vmem:[%s3510_s1 + $0x4d0] ss:$8 sps:$4 sm:$0xff]  }
  0x7d   :  { %1775 = vmatprep.subr.bf16.mxu1 %v2448_v7  ;;  %v2534_v7 = vld [vmem:[%s3510_s1 + $0x5d0] ss:$8 sps:$4 sm:$0xff]  }
  0x7f   :  { %1735 = vmatpush1.bf16.msra.mxu0 %v2443_v8  ;;  %v2539_v8 = vld [vmem:[%s3510_s1 + $0x4e4] ss:$8 sps:$4 sm:$0xff]  }
  0x80   :  { %1776 = vmatpush1.bf16.msra.mxu1 %v2446_v9  ;;  %1786 = vmatprep.subr.bf16.mxu0 %v2455_v10  ;;  %v2542_v9 = vld [vmem:[%s3510_s1 + $0x5e4] ss:$8 sps:$4 sm:$0xff]   ;;  %v2537_v10 = vld [vmem:[%s3510_s1 + $0x4e0] ss:$8 sps:$4 sm:$0xff]  }
  0x81   :  { %1827 = vmatprep.subr.bf16.mxu1 %v2458_v11  ;;  %v2540_v11 = vld [vmem:[%s3510_s1 + $0x5e0] ss:$8 sps:$4 sm:$0xff]  }
  0x82   :  { %1737 = vmatmul.mubr.bf16.vlgmr.msra.gmra.mrb[4].mxu0 %v1985_v12  ;;  %v2545_v12 = vld [vmem:[%s3510_s1 + $0x4f4] ss:$8 sps:$4 sm:$0xff]  }
  0x83   :  { %1778 = vmatmul.mubr.bf16.vlgmr.msra.gmra.mrb[4].mxu1 %v1987_v13  ;;  %1787 = vmatpush1.bf16.msra.mxu0 %v2453_v14  ;;  %v2548_v13 = vld [vmem:[%s3510_s1 + $0x5f4] ss:$8 sps:$4 sm:$0xff]   ;;  %v2543_v14 = vld [vmem:[%s3510_s1 + $0x4f0] ss:$8 sps:$4 sm:$0xff]  }
  0x84   :  { %1828 = vmatpush1.bf16.msra.mxu1 %v2456_v15  ;;  %1788 = vmatprep.subr.bf16.mxu0 %v2461_v16  ;;  %v2546_v15 = vld [vmem:[%s3510_s1 + $0x5f0] ss:$8 sps:$4 sm:$0xff]   ;;  %v2555_v16 = vld [vmem:[%s3510_s1 + $0x604] ss:$8 sps:$4 sm:$0xff]  }
  0x85   :  { %1829 = vmatprep.subr.bf16.mxu1 %v2464_v17  ;;  %1818 = vmatprep.mubr.bf16.mxu0 %v1990_v20  ;;  %v2558_v17 = vld [vmem:[%s3510_s1 + $0x704] ss:$8 sps:$4 sm:$0xff]   ;;  %v1989_v20 = vcombine.low %v3102_v18, %v3102_v18  ;;  %v2556_v18 = vld [vmem:[%s3510_s1 + $0x700] ss:$8 sps:$4 sm:$0xff]  }
  0x86   :  { %1859 = vmatprep.mubr.bf16.mxu1 %v1992_v21  ;;  %v1991_v21 = vcombine.low %v3107_v19, %v3107_v19  ;;  %v2561_v19 = vld [vmem:[%s3510_s1 + $0x614] ss:$8 sps:$4 sm:$0xff]  }
  0x87   :  { %1789 = vmatpush1.bf16.msra.mxu0 %v2459_v22  ;;  %v3300_v22 = vld [vmem:[%s3511_s0 + $0x30] sm:$0xff] }
  0x88   :  { %1830 = vmatpush1.bf16.msra.mxu1 %v2462_v23  ;;  %1790 = vmatprep.subr.bf16.mxu0 %v2467_v24  ;;  %v3305_v23 = vld [vmem:[%s3511_s0 + $0x38] sm:$0xff]  ;;  %v2553_v24 = vld [vmem:[%s3510_s1 + $0x600] ss:$8 sps:$4 sm:$0xff]  }
  0x89   :  { %1831 = vmatprep.subr.bf16.mxu1 %v2470_v25  ;;  %v2564_v25 = vld [vmem:[%s3510_s1 + $0x714] ss:$8 sps:$4 sm:$0xff]  }
  0x8b   :  { %1791 = vmatpush1.bf16.msra.mxu0 %v2465_v26  ;;  %v1994_v26 = vcombine.high %v3300_v22, %v3300_v22 }
  0x8c   :  { %1832 = vmatpush1.bf16.msra.mxu1 %v2468_v27  ;;  %1792 = vmatprep.subr.bf16.mxu0 %v2473_v28  ;;  %v1996_v27 = vcombine.high %v3305_v23, %v3305_v23  ;;  %v2559_v28 = vld [vmem:[%s3510_s1 + $0x610] ss:$8 sps:$4 sm:$0xff]  }
  0x8d   :  { %1833 = vmatprep.subr.bf16.mxu1 %v2476_v29  ;;  %v2562_v29 = vld [vmem:[%s3510_s1 + $0x710] ss:$8 sps:$4 sm:$0xff]  }
  0x8f   :  { %1793 = vmatpush1.bf16.msra.mxu0 %v2471_v30  ;;  %v2567_v30 = vld [vmem:[%s3510_s1 + $0x624] ss:$8 sps:$4 sm:$0xff]  }
  0x90   :  { %1834 = vmatpush1.bf16.msra.mxu1 %v2474_v31  ;;  %1794 = vmatprep.subr.bf16.mxu0 %v2479_v32  ;;  %v2570_v31 = vld [vmem:[%s3510_s1 + $0x724] ss:$8 sps:$4 sm:$0xff]   ;;  %v2565_v32 = vld [vmem:[%s3510_s1 + $0x620] ss:$8 sps:$4 sm:$0xff]  }
  0x91   :  { %1835 = vmatprep.subr.bf16.mxu1 %v2482_v33  ;;  %v2568_v33 = vld [vmem:[%s3510_s1 + $0x720] ss:$8 sps:$4 sm:$0xff]  }
  0x93   :  { %1795 = vmatpush1.bf16.msra.mxu0 %v2477_v34  ;;  %v2573_v34 = vld [vmem:[%s3510_s1 + $0x634] ss:$8 sps:$4 sm:$0xff]  }
  0x94   :  { %1836 = vmatpush1.bf16.msra.mxu1 %v2480_v35  ;;  %1796 = vmatprep.subr.bf16.mxu0 %v2485_v36  ;;  %v2576_v35 = vld [vmem:[%s3510_s1 + $0x734] ss:$8 sps:$4 sm:$0xff]   ;;  %v2571_v36 = vld [vmem:[%s3510_s1 + $0x630] ss:$8 sps:$4 sm:$0xff]  }
  0x95   :  { %1837 = vmatprep.subr.bf16.mxu1 %v2488_v37  ;;  %v2574_v37 = vld [vmem:[%s3510_s1 + $0x730] ss:$8 sps:$4 sm:$0xff]  }
  0x97   :  { %1797 = vmatpush1.bf16.msra.mxu0 %v2483_v38  ;;  %v2579_v38 = vld [vmem:[%s3510_s1 + $0x644] ss:$8 sps:$4 sm:$0xff]  }
  0x98   :  { %1838 = vmatpush1.bf16.msra.mxu1 %v2486_v39  ;;  %1798 = vmatprep.subr.bf16.mxu0 %v2491_v40  ;;  %v2582_v39 = vld [vmem:[%s3510_s1 + $0x744] ss:$8 sps:$4 sm:$0xff]   ;;  %v2577_v40 = vld [vmem:[%s3510_s1 + $0x640] ss:$8 sps:$4 sm:$0xff]  }
  0x99   :  { %1839 = vmatprep.subr.bf16.mxu1 %v2494_v41  ;;  %v2580_v41 = vld [vmem:[%s3510_s1 + $0x740] ss:$8 sps:$4 sm:$0xff]  }
  0x9b   :  { %1799 = vmatpush1.bf16.msra.mxu0 %v2489_v42  ;;  %v2585_v42 = vld [vmem:[%s3510_s1 + $0x654] ss:$8 sps:$4 sm:$0xff]  }
  0x9c   :  { %1840 = vmatpush1.bf16.msra.mxu1 %v2492_v43  ;;  %1800 = vmatprep.subr.bf16.mxu0 %v2497_v44  ;;  %v2588_v43 = vld [vmem:[%s3510_s1 + $0x754] ss:$8 sps:$4 sm:$0xff]   ;;  %v2583_v44 = vld [vmem:[%s3510_s1 + $0x650] ss:$8 sps:$4 sm:$0xff]  }
  0x9d   :  { %1841 = vmatprep.subr.bf16.mxu1 %v2500_v45  ;;  %v2586_v45 = vld [vmem:[%s3510_s1 + $0x750] ss:$8 sps:$4 sm:$0xff]  }
  0x9f   :  { %1801 = vmatpush1.bf16.msra.mxu0 %v2495_v46  ;;  %v2591_v46 = vld [vmem:[%s3510_s1 + $0x664] ss:$8 sps:$4 sm:$0xff]  }
  0xa0   :  { %1842 = vmatpush1.bf16.msra.mxu1 %v2498_v47  ;;  %1802 = vmatprep.subr.bf16.mxu0 %v2503_v48  ;;  %v2594_v47 = vld [vmem:[%s3510_s1 + $0x764] ss:$8 sps:$4 sm:$0xff]   ;;  %v2589_v48 = vld [vmem:[%s3510_s1 + $0x660] ss:$8 sps:$4 sm:$0xff]  }
  0xa1   :  { %1843 = vmatprep.subr.bf16.mxu1 %v2506_v49  ;;  %v2592_v49 = vld [vmem:[%s3510_s1 + $0x760] ss:$8 sps:$4 sm:$0xff]  }
  0xa3   :  { %1803 = vmatpush1.bf16.msra.mxu0 %v2501_v50  ;;  %v2597_v50 = vld [vmem:[%s3510_s1 + $0x674] ss:$8 sps:$4 sm:$0xff]  }
  0xa4   :  { %1844 = vmatpush1.bf16.msra.mxu1 %v2504_v51  ;;  %1804 = vmatprep.subr.bf16.mxu0 %v2509_v52  ;;  %v2600_v51 = vld [vmem:[%s3510_s1 + $0x774] ss:$8 sps:$4 sm:$0xff]   ;;  %v2595_v52 = vld [vmem:[%s3510_s1 + $0x670] ss:$8 sps:$4 sm:$0xff]  }
  0xa5   :  { %1845 = vmatprep.subr.bf16.mxu1 %v2512_v53  ;;  %v2598_v53 = vld [vmem:[%s3510_s1 + $0x770] ss:$8 sps:$4 sm:$0xff]  }
  0xa7   :  { %1805 = vmatpush1.bf16.msra.mxu0 %v2507_v54  ;;  %v2603_v54 = vld [vmem:[%s3510_s1 + $0x684] ss:$8 sps:$4 sm:$0xff]  }
  0xa8   :  { %1846 = vmatpush1.bf16.msra.mxu1 %v2510_v55  ;;  %1806 = vmatprep.subr.bf16.mxu0 %v2515_v56  ;;  %v2606_v55 = vld [vmem:[%s3510_s1 + $0x784] ss:$8 sps:$4 sm:$0xff]   ;;  %v2601_v56 = vld [vmem:[%s3510_s1 + $0x680] ss:$8 sps:$4 sm:$0xff]  }
  0xa9   :  { %1847 = vmatprep.subr.bf16.mxu1 %v2518_v57  ;;  %v2604_v57 = vld [vmem:[%s3510_s1 + $0x780] ss:$8 sps:$4 sm:$0xff]  }
  0xab   :  { %1807 = vmatpush1.bf16.msra.mxu0 %v2513_v58  ;;  %v2609_v58 = vld [vmem:[%s3510_s1 + $0x694] ss:$8 sps:$4 sm:$0xff]  }
  0xac   :  { %1848 = vmatpush1.bf16.msra.mxu1 %v2516_v59  ;;  %1808 = vmatprep.subr.bf16.mxu0 %v2521_v60  ;;  %v2612_v59 = vld [vmem:[%s3510_s1 + $0x794] ss:$8 sps:$4 sm:$0xff]   ;;  %v2607_v60 = vld [vmem:[%s3510_s1 + $0x690] ss:$8 sps:$4 sm:$0xff]  }
  0xad   :  { %1849 = vmatprep.subr.bf16.mxu1 %v2524_v61  ;;  %v2610_v61 = vld [vmem:[%s3510_s1 + $0x790] ss:$8 sps:$4 sm:$0xff]  }
  0xaf   :  { %1809 = vmatpush1.bf16.msra.mxu0 %v2519_v62  ;;  %v2615_v62 = vld [vmem:[%s3510_s1 + $0x6a4] ss:$8 sps:$4 sm:$0xff]  }
  0xb0   :  { %1850 = vmatpush1.bf16.msra.mxu1 %v2522_v63  ;;  %1810 = vmatprep.subr.bf16.mxu0 %v2527_v0  ;;  %v2618_v63 = vld [vmem:[%s3510_s1 + $0x7a4] ss:$8 sps:$4 sm:$0xff]   ;;  %v2613_v0 = vld [vmem:[%s3510_s1 + $0x6a0] ss:$8 sps:$4 sm:$0xff]  }
  0xb1   :  { %1851 = vmatprep.subr.bf16.mxu1 %v2530_v1  ;;  %v2616_v1 = vld [vmem:[%s3510_s1 + $0x7a0] ss:$8 sps:$4 sm:$0xff]  }
  0xb3   :  { %1811 = vmatpush1.bf16.msra.mxu0 %v2525_v2  ;;  %v2621_v2 = vld [vmem:[%s3510_s1 + $0x6b4] ss:$8 sps:$4 sm:$0xff]  }
  0xb4   :  { %1852 = vmatpush1.bf16.msra.mxu1 %v2528_v3  ;;  %1812 = vmatprep.subr.bf16.mxu0 %v2533_v4  ;;  %v2624_v3 = vld [vmem:[%s3510_s1 + $0x7b4] ss:$8 sps:$4 sm:$0xff]   ;;  %v2619_v4 = vld [vmem:[%s3510_s1 + $0x6b0] ss:$8 sps:$4 sm:$0xff]  }
  0xb5   :  { %1853 = vmatprep.subr.bf16.mxu1 %v2536_v5  ;;  %v2622_v5 = vld [vmem:[%s3510_s1 + $0x7b0] ss:$8 sps:$4 sm:$0xff]  }
  0xb7   :  { %1813 = vmatpush1.bf16.msra.mxu0 %v2531_v6  ;;  %v2627_v6 = vld [vmem:[%s3510_s1 + $0x6c4] ss:$8 sps:$4 sm:$0xff]  }
  0xb8   :  { %1854 = vmatpush1.bf16.msra.mxu1 %v2534_v7  ;;  %1814 = vmatprep.subr.bf16.mxu0 %v2539_v8  ;;  %v2630_v7 = vld [vmem:[%s3510_s1 + $0x7c4] ss:$8 sps:$4 sm:$0xff]   ;;  %v2625_v8 = vld [vmem:[%s3510_s1 + $0x6c0] ss:$8 sps:$4 sm:$0xff]  }
  0xb9   :  { %1855 = vmatprep.subr.bf16.mxu1 %v2542_v9  ;;  %v2628_v9 = vld [vmem:[%s3510_s1 + $0x7c0] ss:$8 sps:$4 sm:$0xff]  }
  0xbb   :  { %1815 = vmatpush1.bf16.msra.mxu0 %v2537_v10  ;;  %v2633_v10 = vld [vmem:[%s3510_s1 + $0x6d4] ss:$8 sps:$4 sm:$0xff]  }
  0xbc   :  { %1856 = vmatpush1.bf16.msra.mxu1 %v2540_v11  ;;  %1816 = vmatprep.subr.bf16.mxu0 %v2545_v12  ;;  %v2636_v11 = vld [vmem:[%s3510_s1 + $0x7d4] ss:$8 sps:$4 sm:$0xff]   ;;  %v2631_v12 = vld [vmem:[%s3510_s1 + $0x6d0] ss:$8 sps:$4 sm:$0xff]  }
  0xbd   :  { %1857 = vmatprep.subr.bf16.mxu1 %v2548_v13  ;;  %v2634_v13 = vld [vmem:[%s3510_s1 + $0x7d0] ss:$8 sps:$4 sm:$0xff]  }
  0xbf   :  { %1817 = vmatpush1.bf16.msra.mxu0 %v2543_v14  ;;  %v2639_v14 = vld [vmem:[%s3510_s1 + $0x6e4] ss:$8 sps:$4 sm:$0xff]  }
  0xc0   :  { %1858 = vmatpush1.bf16.msra.mxu1 %v2546_v15  ;;  %1868 = vmatprep.subr.bf16.mxu0 %v2555_v16  ;;  %v2642_v15 = vld [vmem:[%s3510_s1 + $0x7e4] ss:$8 sps:$4 sm:$0xff]   ;;  %v2637_v16 = vld [vmem:[%s3510_s1 + $0x6e0] ss:$8 sps:$4 sm:$0xff]  }
  0xc1   :  { %1909 = vmatprep.subr.bf16.mxu1 %v2558_v17  ;;  %v2640_v17 = vld [vmem:[%s3510_s1 + $0x7e0] ss:$8 sps:$4 sm:$0xff]  }
  0xc2   :  { %1819 = vmatmul.mubr.bf16.vlgmr.msra.gmra.mrb[8].mxu0 %v1989_v20  ;;  %v2645_v20 = vld [vmem:[%s3510_s1 + $0x6f4] ss:$8 sps:$4 sm:$0xff]  }
  0xc3   :  { %1860 = vmatmul.mubr.bf16.vlgmr.msra.gmra.mrb[8].mxu1 %v1991_v21  ;;  %1869 = vmatpush1.bf16.msra.mxu0 %v2553_v24  ;;  %v2648_v21 = vld [vmem:[%s3510_s1 + $0x7f4] ss:$8 sps:$4 sm:$0xff]   ;;  %v2643_v24 = vld [vmem:[%s3510_s1 + $0x6f0] ss:$8 sps:$4 sm:$0xff]  }
  0xc4   :  { %1910 = vmatpush1.bf16.msra.mxu1 %v2556_v18  ;;  %1870 = vmatprep.subr.bf16.mxu0 %v2561_v19  ;;  %v2646_v18 = vld [vmem:[%s3510_s1 + $0x7f0] ss:$8 sps:$4 sm:$0xff]   ;;  %v1993_v19 = vcombine.low %v3300_v22, %v3300_v22 }
  0xc5   :  { %1911 = vmatprep.subr.bf16.mxu1 %v2564_v25  ;;  %1900 = vmatprep.mubr.bf16.mxu0 %v1994_v26  ;;  %v1995_v25 = vcombine.low %v3305_v23, %v3305_v23 }
  0xc6   :  { %1941 = vmatprep.mubr.bf16.mxu1 %v1996_v27 }
  0xc7   :  { %1871 = vmatpush1.bf16.msra.mxu0 %v2559_v28 }
  0xc8   :  { %1912 = vmatpush1.bf16.msra.mxu1 %v2562_v29  ;;  %1872 = vmatprep.subr.bf16.mxu0 %v2567_v30 }
  0xc9   :  { %1913 = vmatprep.subr.bf16.mxu1 %v2570_v31 }
  0xcb   :  { %1873 = vmatpush1.bf16.msra.mxu0 %v2565_v32 }
  0xcc   :  { %1914 = vmatpush1.bf16.msra.mxu1 %v2568_v33  ;;  %1874 = vmatprep.subr.bf16.mxu0 %v2573_v34 }
  0xcd   :  { %1915 = vmatprep.subr.bf16.mxu1 %v2576_v35 }
  0xcf   :  { %1875 = vmatpush1.bf16.msra.mxu0 %v2571_v36 }
  0xd0   :  { %1916 = vmatpush1.bf16.msra.mxu1 %v2574_v37  ;;  %1876 = vmatprep.subr.bf16.mxu0 %v2579_v38 }
  0xd1   :  { %1917 = vmatprep.subr.bf16.mxu1 %v2582_v39 }
  0xd3   :  { %1877 = vmatpush1.bf16.msra.mxu0 %v2577_v40 }
  0xd4   :  { %1918 = vmatpush1.bf16.msra.mxu1 %v2580_v41  ;;  %1878 = vmatprep.subr.bf16.mxu0 %v2585_v42 }
  0xd5   :  { %1919 = vmatprep.subr.bf16.mxu1 %v2588_v43 }
  0xd7   :  { %1879 = vmatpush1.bf16.msra.mxu0 %v2583_v44 }
  0xd8   :  { %1920 = vmatpush1.bf16.msra.mxu1 %v2586_v45  ;;  %1880 = vmatprep.subr.bf16.mxu0 %v2591_v46 }
  0xd9   :  { %1921 = vmatprep.subr.bf16.mxu1 %v2594_v47 }
  0xdb   :  { %1881 = vmatpush1.bf16.msra.mxu0 %v2589_v48 }
  0xdc   :  { %1922 = vmatpush1.bf16.msra.mxu1 %v2592_v49  ;;  %1882 = vmatprep.subr.bf16.mxu0 %v2597_v50 }
  0xdd   :  { %1923 = vmatprep.subr.bf16.mxu1 %v2600_v51 }
  0xdf   :  { %1883 = vmatpush1.bf16.msra.mxu0 %v2595_v52 }
  0xe0   :  { %1924 = vmatpush1.bf16.msra.mxu1 %v2598_v53  ;;  %1884 = vmatprep.subr.bf16.mxu0 %v2603_v54 }
  0xe1   :  { %1925 = vmatprep.subr.bf16.mxu1 %v2606_v55 }
  0xe3   :  { %1885 = vmatpush1.bf16.msra.mxu0 %v2601_v56 }
  0xe4   :  { %1926 = vmatpush1.bf16.msra.mxu1 %v2604_v57  ;;  %1886 = vmatprep.subr.bf16.mxu0 %v2609_v58  ;;  %v1961_v58 = vlaneseq }
  0xe5   :  { %1927 = vmatprep.subr.bf16.mxu1 %v2612_v59 }
  0xe6   :  { %v1962_v59 = vshrl.u32 %v1961_v58, 7 }
  0xe7   :  { %1887 = vmatpush1.bf16.msra.mxu0 %v2607_v60 }
  0xe8   :  { %1928 = vmatpush1.bf16.msra.mxu1 %v2610_v61  ;;  %1888 = vmatprep.subr.bf16.mxu0 %v2615_v62  ;;  %v1963_v60 = vsub.s32 0, %v1962_v59  ;;  %v1959_v61 = vld [vmem:[%s3512_s2] sm:$0x3]  ;;  %v1967_v62 = vsub.s32 1, %v1962_v59 }
  0xe9   :  { %1929 = vmatprep.subr.bf16.mxu1 %v2618_v63 }
  0xeb   :  { %1889 = vmatpush1.bf16.msra.mxu0 %v2613_v0 }
  0xec   :  { %1930 = vmatpush1.bf16.msra.mxu1 %v2616_v1  ;;  %1890 = vmatprep.subr.bf16.mxu0 %v2621_v2  ;;  %v1964_v2 = vrot.slane %v1959_v61, %v1963_v60 }
  0xed   :  { %1931 = vmatprep.subr.bf16.mxu1 %v2624_v3 }
  0xef   :  { %1891 = vmatpush1.bf16.msra.mxu0 %v2619_v4 }
  0xf0   :  { %1932 = vmatpush1.bf16.msra.mxu1 %v2622_v5  ;;  %1892 = vmatprep.subr.bf16.mxu0 %v2627_v6  ;;  %v1968_v6 = vrot.slane %v1959_v61, %v1967_v62 }
  0xf1   :  { %1933 = vmatprep.subr.bf16.mxu1 %v2630_v7 }
  0xf3   :  { %1893 = vmatpush1.bf16.msra.mxu0 %v2625_v8 }
  0xf4   :  { %1934 = vmatpush1.bf16.msra.mxu1 %v2628_v9  ;;  %1894 = vmatprep.subr.bf16.mxu0 %v2633_v10 }
  0xf5   :  { %1935 = vmatprep.subr.bf16.mxu1 %v2636_v11 }
  0xf7   :  { %1895 = vmatpush1.bf16.msra.mxu0 %v2631_v12 }
  0xf8   :  { %1936 = vmatpush1.bf16.msra.mxu1 %v2634_v13  ;;  %1896 = vmatprep.subr.bf16.mxu0 %v2639_v14 }
  0xf9   :  { %1937 = vmatprep.subr.bf16.mxu1 %v2642_v15 }
  0xfb   :  { %1897 = vmatpush1.bf16.msra.mxu0 %v2637_v16 }
  0xfc   :  { %1938 = vmatpush1.bf16.msra.mxu1 %v2640_v17  ;;  %1898 = vmatprep.subr.bf16.mxu0 %v2645_v20 }
  0xfd   :  { %1939 = vmatprep.subr.bf16.mxu1 %v2648_v21 }
  0xff   :  { %1899 = vmatpush1.bf16.msra.mxu0 %v2643_v24 }
 0x100   :  { %1940 = vmatpush1.bf16.msra.mxu1 %v2646_v18 }
 0x102   :  { %1901 = vmatmul.mubr.bf16.vlgmr.msra.gmra.mrb[12].mxu0 %v1993_v19 }
 0x103   :  { %1942 = vmatmul.mubr.bf16.vlgmr.msra.gmra.mrb[12].mxu1 %v1995_v25 }
 0x115   :  { %v1656_v26 = vpop.f32.mrb[0].mxu0 }
 0x116   :  { %v1697_v27 = vpop.f32.mrb[0].mxu1  ;;  %v1658_v29 = vpop.f32.mrb[1].mxu0 }
 0x117   :  { %v1698_v28 = vadd.f32 %v1697_v27, %v1656_v26  ;;  %v1699_v30 = vpop.f32.mrb[1].mxu1  ;;  %v1660_v32 = vpop.f32.mrb[2].mxu0 }
 0x118   :  { %v1700_v31 = vadd.f32 %v1699_v30, %v1658_v29  ;;  %v1701_v33 = vpop.f32.mrb[2].mxu1  ;;  %v1661_v34 = vpop.f32.mrb[3].mxu0 }
 0x119   :  { %v1702_v35 = vpop.f32.mrb[3].mxu1 }
 0x155   :  { %v1738_v36 = vpop.f32.mrb[4].mxu0 }
 0x156   :  { %v1779_v37 = vpop.f32.mrb[4].mxu1  ;;  %v1739_v22 = vadd.f32 %v1738_v36, %v1698_v28  ;;  %v1740_v38 = vpop.f32.mrb[5].mxu0 }
 0x157   :  { %v1781_v39 = vpop.f32.mrb[5].mxu1  ;;  %v1741_v23 = vadd.f32 %v1740_v38, %v1700_v31  ;;  %v1742_v40 = vpop.f32.mrb[6].mxu0 }
 0x158   :  { %v1783_v41 = vpop.f32.mrb[6].mxu1  ;;  %v1780_v42 = vadd.f32 %v1779_v37, %v1739_v22  ;;  %v1743_v43 = vpop.f32.mrb[7].mxu0 }
 0x159   :  { %v1784_v44 = vpop.f32.mrb[7].mxu1  ;;  %v1782_v45 = vadd.f32 %v1781_v39, %v1741_v23 }
 0x195   :  { %v1820_v46 = vpop.f32.mrb[8].mxu0 }
 0x196   :  { %v1861_v47 = vpop.f32.mrb[8].mxu1  ;;  %v1821_v48 = vadd.f32 %v1820_v46, %v1780_v42  ;;  %v1822_v49 = vpop.f32.mrb[9].mxu0 }
 0x197   :  { %v1863_v50 = vpop.f32.mrb[9].mxu1  ;;  %v1823_v51 = vadd.f32 %v1822_v49, %v1782_v45  ;;  %v1824_v52 = vpop.f32.mrb[10].mxu0 }
 0x198   :  { %v1865_v53 = vpop.f32.mrb[10].mxu1  ;;  %v1862_v54 = vadd.f32 %v1861_v47, %v1821_v48  ;;  %v1825_v55 = vpop.f32.mrb[11].mxu0 }
 0x199   :  { %v1866_v56 = vpop.f32.mrb[11].mxu1  ;;  %v1864_v57 = vadd.f32 %v1863_v50, %v1823_v51 }
 0x1d5   :  { %v1902_v63 = vpop.f32.mrb[12].mxu0 }
 0x1d6   :  { %v1943_v0 = vpop.f32.mrb[12].mxu1  ;;  %v1903_v1 = vadd.f32 %v1902_v63, %v1862_v54  ;;  %v1904_v3 = vpop.f32.mrb[13].mxu0 }
 0x1d7   :  { %v1945_v4 = vpop.f32.mrb[13].mxu1  ;;  %v1905_v5 = vadd.f32 %v1904_v3, %v1864_v57  ;;  %v1906_v7 = vpop.f32.mrb[14].mxu0 }
 0x1d8   :  { %v1947_v8 = vpop.f32.mrb[14].mxu1  ;;  %v1944_v9 = vadd.f32 %v1943_v0, %v1903_v1  ;;  %v1907_v10 = vpop.f32.mrb[15].mxu0 }
 0x1d9   :  { %v1948_v11 = vpop.f32.mrb[15].mxu1  ;;  %v1946_v12 = vadd.f32 %v1945_v4, %v1905_v5 }
 0x1da   :  { %v1971_v13 = vadd.f32 %v1964_v2, %v1944_v9 }
 0x1db   :  { %v1972_v14 = vadd.f32 %v1968_v6, %v1946_v12 }
 0x1dc   :  { %v1973_v15 = vmax.f32 %v1971_v13, 0.0 }
 0x1dd   :  { %v1974_v16 = vmax.f32 %v1972_v14, 0.0 }
 0x1de   :  { %1975 = vst [vmem:[%s3513_s3] sm:$0xff] %v1973_v15 }
 0x1df   :  { %1976 = vst [vmem:[%s3513_s3 + $0x8] sm:$0xff] %v1974_v16 }

// kernel: vae_forward.15
= control target key start
LH: loop header
LB: loop body
LE: loop exit
PB: predicated region body
PF: predicated region fallthrough
CT: control target
= control target key end

     0   :  { %s802_s12 = smov 0   ;;  %s804_s13 = smov 0   ;;  %s891_s0 = inlined_call_operand.vmem [shape: bf16[8,128], index: 0, kind: input, shape index: {}]   ;;  %s892_s1 = inlined_call_operand.vmem [shape: bf16[128,1024], index: 1, kind: input, shape index: {}]   ;;  %s893_s2 = inlined_call_operand.vmem [shape: f32[1,1024], index: 2, kind: input, shape index: {}]   ;;  %s894_s3 = inlined_call_operand.vmem [shape: f32[8,1024], index: 3, kind: output, shape index: {}]  }
   0x1   :  { %s806_s14 = smov 0   ;;  %s808_s15 = smov 0  }
   0x2   :  { %s810_s16 = smov 0  }
   0x3 LB: > { %s28_s17 = sadd.s32 1, %s775_s15  ;;  %p76_p1 = scmp.ne.s32.totalorder %s767_s13, %s763_s12  ;;  %s779_s16 = sphi %s810_s16, %s13_s16   ;;  %s775_s15 = sphi %s808_s15, %s898_s15   ;;  %s771_s14 = sphi %s806_s14, %s897_s14   ;;  %s767_s13 = sphi %s804_s13, %s896_s13   ;;  %s763_s12 = sphi %s802_s12, %s895_s12  }
   0x4   : > { %p30_p0 = scmp.ge.s32.totalorder %s28_s17, 4  ;;  %p77_p2 = scmp.eq.s32.totalorder %s779_s16, 0 }
   0x5   : > { %s69_s19 = sadd.s32 1, %s767_s13  ;;  %p648_p5 = scmp.ge.s32.totalorder %s779_s16, 4 }
   0x6   : > { %s900_s17 = smov (%p30_p0, %s28_s17), 0  ;;  %p78_p3 = por %p77_p2, %p76_p1 }
   0x7   : > { %s65_s18 = ssub.s32 %s775_s15, %s900_s17  ;;  %166 = sbr.rel (%p648_p5) target bundleno = 34 (0x22), region = 20 }
   0x8   : > { %p67_p4 = scmp.eq.s32.totalorder %s65_s18, 0 }
   0xa   : > { %s837_s20 = scalar_select %p67_p4, %s767_s13, %s69_s19  }
   0xe   : > { %169 = sbr.rel (!%p78_p3) target bundleno = 34 (0x22), region = 24  ;;  %s171_s21 = sand.u32 (%p78_p3), 1, %s767_s13  }
   0xf   : > { %s675_s22 = sshll.u32 (%p78_p3), %s775_s15, 3  ;;  %s649_s23 = sshll.u32 (%p78_p3), %s171_s21, 7 }
  0x10   : > { %s845_s26 = scalar_lea.vmem (%p78_p3), %s892_s1, %s675_s22  ;;  %s173_s27 = scalar_lea.vmem (%p78_p3), [#allocation3], %s649_s23 }
  0x11   : > { %v237_v0 = vld [vmem:[%s845_s26] sm:$0xff] (%p78_p3) }
  0x12   : > { %v239_v1 = vld [vmem:[%s845_s26 + $0x20] sm:$0xff] (%p78_p3)  ;;  %238 = vst [vmem:[%s173_s27] sm:$0xff] (%p78_p3), %v237_v0 }
  0x13   : > { %v241_v2 = vld [vmem:[%s845_s26 + $0x40] sm:$0xff] (%p78_p3)  ;;  %240 = vst [vmem:[%s173_s27 + $0x8] sm:$0xff] (%p78_p3), %v239_v1 }
  0x14   : > { %242 = vst [vmem:[%s173_s27 + $0x10] sm:$0xff] (%p78_p3), %v241_v2  ;;  %v243_v3 = vld [vmem:[%s845_s26 + $0x60] sm:$0xff] (%p78_p3) }
  0x15   : > { %v245_v4 = vld [vmem:[%s845_s26 + $0x80] sm:$0xff]  ;;  %244 = vst [vmem:[%s173_s27 + $0x18] sm:$0xff] %v243_v3 }
  0x16   : > { %v247_v5 = vld [vmem:[%s845_s26 + $0xa0] sm:$0xff]  ;;  %246 = vst [vmem:[%s173_s27 + $0x20] sm:$0xff] %v245_v4 }
  0x17   : > { %248 = vst [vmem:[%s173_s27 + $0x28] sm:$0xff] %v247_v5  ;;  %v249_v6 = vld [vmem:[%s845_s26 + $0xc0] sm:$0xff] }
  0x18   : > { %v251_v7 = vld [vmem:[%s845_s26 + $0xe0] sm:$0xff]  ;;  %250 = vst [vmem:[%s173_s27 + $0x30] sm:$0xff] %v249_v6 }
  0x19   : > { %v253_v8 = vld [vmem:[%s845_s26 + $0x100] sm:$0xff]  ;;  %252 = vst [vmem:[%s173_s27 + $0x38] sm:$0xff] %v251_v7 }
  0x1a   : > { %254 = vst [vmem:[%s173_s27 + $0x40] sm:$0xff] %v253_v8  ;;  %v255_v9 = vld [vmem:[%s845_s26 + $0x120] sm:$0xff] }
  0x1b   : > { %v257_v10 = vld [vmem:[%s845_s26 + $0x140] sm:$0xff]  ;;  %256 = vst [vmem:[%s173_s27 + $0x48] sm:$0xff] %v255_v9 }
  0x1c   : > { %v259_v11 = vld [vmem:[%s845_s26 + $0x160] sm:$0xff]  ;;  %258 = vst [vmem:[%s173_s27 + $0x50] sm:$0xff] %v257_v10 }
  0x1d   : > { %260 = vst [vmem:[%s173_s27 + $0x58] sm:$0xff] %v259_v11  ;;  %v261_v12 = vld [vmem:[%s845_s26 + $0x180] sm:$0xff] }
  0x1e   : > { %v263_v13 = vld [vmem:[%s845_s26 + $0x1a0] sm:$0xff]  ;;  %262 = vst [vmem:[%s173_s27 + $0x60] sm:$0xff] %v261_v12 }
  0x1f   : > { %v265_v14 = vld [vmem:[%s845_s26 + $0x1c0] sm:$0xff]  ;;  %264 = vst [vmem:[%s173_s27 + $0x68] sm:$0xff] %v263_v13 }
  0x20   : > { %266 = vst [vmem:[%s173_s27 + $0x70] sm:$0xff] %v265_v14  ;;  %v267_v15 = vld [vmem:[%s845_s26 + $0x1e0] sm:$0xff] }
  0x21   : > { %268 = vst [vmem:[%s173_s27 + $0x78] sm:$0xff] %v267_v15 }
  0x22 PF: > { %p652_p6 = scmp.ge.s32.totalorder %s779_s16, 1  ;;  %p281_p7 = scmp.lt.s32.totalorder %s779_s16, 5 }
  0x24   : > { %p282_p8 = pnand %p652_p6, %p281_p7 }
  0x25   : > { %s288_s28 = sand.u32 (!%p282_p8), 1, %s763_s12   ;;  %v781_v16 = vmov (!%p282_p8), 0   ;;  %v359_v33 = vld [vmem:[%s891_s0] sm:$0xf] (!%p282_p8)  ;;  %s654_s6 = sshll.u32 (!%p282_p8), %s771_s14, 1  ;;  %v508_v34 = vlaneseq (!%p282_p8) }
  0x26   : > { %285 = sbr.rel (%p282_p8) target bundleno = 291 (0x123), region = 66  ;;  %s653_s29 = sshll.u32 (!%p282_p8), %s288_s28, 7  ;;  %488 = vmatprep.mubr.bf16.mxu0 (!%p282_p8), %v781_v16 }
  0x27   : > { %s290_s30 = scalar_lea.vmem (!%p282_p8), [#allocation3], %s653_s29  ;;  %p336_p9 = scmp.lt.s32.totalorder (!%p282_p8), %s654_s6, 7  ;;  %v509_v35 = vshrl.u32 (!%p282_p8), %v508_v34, 7 }
  0x28   : > { %v717_v17 = vld [vmem:[%s290_s30 + $0x4] ss:$8 sps:$4 sm:$0xff] (!%p282_p8)   ;;  %v719_v18 = vld [vmem:[%s290_s30] ss:$8 sps:$4 sm:$0xff] (!%p282_p8)   ;;  %v720_v19 = vld [vmem:[%s290_s30 + $0x14] ss:$8 sps:$4 sm:$0xff] (!%p282_p8)  }
  0x29   : > { %456 = vmatprep.subr.bf16.mxu0 (!%p282_p8), %v717_v17  ;;  %v722_v20 = vld [vmem:[%s290_s30 + $0x10] ss:$8 sps:$4 sm:$0xff] (!%p282_p8)   ;;  %v723_v21 = vld [vmem:[%s290_s30 + $0x24] ss:$8 sps:$4 sm:$0xff] (!%p282_p8)   ;;  %v725_v22 = vld [vmem:[%s290_s30 + $0x20] ss:$8 sps:$4 sm:$0xff] (!%p282_p8)  }
  0x2a   : > { %457 = vmatpush1.bf16.msra.mxu0 (!%p282_p8), %v719_v18  ;;  %v726_v23 = vld [vmem:[%s290_s30 + $0x34] ss:$8 sps:$4 sm:$0xff] (!%p282_p8)   ;;  %v728_v24 = vld [vmem:[%s290_s30 + $0x30] ss:$8 sps:$4 sm:$0xff] (!%p282_p8)   ;;  %v729_v25 = vld [vmem:[%s290_s30 + $0x44] ss:$8 sps:$4 sm:$0xff] (!%p282_p8)  }
  0x2b   : > { %458 = vmatprep.subr.bf16.mxu0 (!%p282_p8), %v720_v19  ;;  %v731_v26 = vld [vmem:[%s290_s30 + $0x40] ss:$8 sps:$4 sm:$0xff] (!%p282_p8)   ;;  %v732_v27 = vld [vmem:[%s290_s30 + $0x54] ss:$8 sps:$4 sm:$0xff] (!%p282_p8)   ;;  %v734_v28 = vld [vmem:[%s290_s30 + $0x50] ss:$8 sps:$4 sm:$0xff] (!%p282_p8)  }
  0x2c   : > { %v735_v29 = vld [vmem:[%s290_s30 + $0x64] ss:$8 sps:$4 sm:$0xff] (!%p282_p8)   ;;  %v737_v30 = vld [vmem:[%s290_s30 + $0x60] ss:$8 sps:$4 sm:$0xff] (!%p282_p8)   ;;  %v738_v31 = vld [vmem:[%s290_s30 + $0x74] ss:$8 sps:$4 sm:$0xff] (!%p282_p8)  }
  0x2d   : > { %v740_v32 = vld [vmem:[%s290_s30 + $0x70] ss:$8 sps:$4 sm:$0xff]   ;;  %s902_s6 = smov (!%p336_p9, %s654_s6), 7  ;;  %v510_v36 = vsub.s32 0, %v509_v35  ;;  %v514_v38 = vsub.s32 1, %v509_v35 }
  0x2e   : > { %459 = vmatpush1.bf16.msra.mxu0 %v722_v20  ;;  %s338_s9 = scalar_lea.vmem %s893_s2, %s902_s6  ;;  %s656_s10 = sshll.u32 %s902_s6, 3 }
  0x2f   : > { %460 = vmatprep.subr.bf16.mxu0 %v723_v21  ;;  %v506_v37 = vld [vmem:[%s338_s9] sm:$0x3]  ;;  %s348_s14 = scalar_lea.vmem %s894_s3, %s656_s10 }
  0x30   : > { %v511_v39 = vrot.slane %v506_v37, %v510_v36  ;;  %v515_v40 = vrot.slane %v506_v37, %v514_v38 }
  0x32   : > { %461 = vmatpush1.bf16.msra.mxu0 %v725_v22 }
  0x33   : > { %462 = vmatprep.subr.bf16.mxu0 %v726_v23 }
  0x36   : > { %463 = vmatpush1.bf16.msra.mxu0 %v728_v24 }
  0x37   : > { %464 = vmatprep.subr.bf16.mxu0 %v729_v25 }
  0x3a   : > { %465 = vmatpush1.bf16.msra.mxu0 %v731_v26 }
  0x3b   : > { %466 = vmatprep.subr.bf16.mxu0 %v732_v27 }
  0x3e   : > { %467 = vmatpush1.bf16.msra.mxu0 %v734_v28 }
  0x3f   : > { %468 = vmatprep.subr.bf16.mxu0 %v735_v29 }
  0x42   : > { %469 = vmatpush1.bf16.msra.mxu0 %v737_v30 }
  0x43   : > { %470 = vmatprep.subr.bf16.mxu0 %v738_v31 }
  0x46   : > { %471 = vmatpush1.bf16.msra.mxu0 %v740_v32 }
  0x49   : > { %489 = vmatmul.mubr.bf16.vlgmr.msra.gmra.mrb[0].mxu0 %v359_v33 }
 0x11c   : > { %v490_v41 = vpop.f32.mrb[0].mxu0 }
 0x11d   : > { %v518_v42 = vadd.f32 %v511_v39, %v490_v41  ;;  %v492_v43 = vpop.f32.mrb[1].mxu0 }
 0x11e   : > { %v519_v44 = vadd.f32 %v515_v40, %v492_v43  ;;  %v494_v45 = vpop.f32.mrb[2].mxu0 }
 0x11f   : > { %v520_v46 = vmax.f32 %v518_v42, 0.0  ;;  %v495_v47 = vpop.f32.mrb[3].mxu0 }
 0x120   : > { %v521_v48 = vmax.f32 %v519_v44, 0.0 }
 0x121   : > { %522 = vst [vmem:[%s348_s14] sm:$0xff] %v520_v46 }
 0x122   : > { %523 = vst [vmem:[%s348_s14 + $0x8] sm:$0xff] %v521_v48 }
 0x123 PF: > { %s13_s16 = sadd.s32 1, %s779_s16   ;;  %s895_s12 = smov %s767_s13 }
 0x124   : > { %p10_p10 = scmp.ge.s32.totalorder %s13_s16, 6   ;;  %s896_s13 = smov %s837_s20 }
 0x125   : > { %s897_s14 = smov %s775_s15  ;;  %s898_s15 = smov %s900_s17 }
 0x126   :  { %12 = sbr.rel (!%p10_p10) target bundleno = 3 (0x3), region = 119 }

// kernel: vae_forward.16
= control target key start
LH: loop header
LB: loop body
LE: loop exit
PB: predicated region body
PF: predicated region fallthrough
CT: control target
= control target key end

     0   :  { %s1994_s12 = smov 0   ;;  %s1996_s13 = smov 0   ;;  %s2425_s0 = inlined_call_operand.vmem [shape: bf16[8,1024], index: 0, kind: input, shape index: {}]   ;;  %s2426_s1 = inlined_call_operand.vmem [shape: bf16[1024,3200], index: 1, kind: input, shape index: {}]   ;;  %s2427_s2 = inlined_call_operand.vmem [shape: f32[1,3200], index: 2, kind: input, shape index: {}]   ;;  %s2428_s3 = inlined_call_operand.vmem [shape: f32[8,3200], index: 3, kind: output, shape index: {}]  }
   0x1   :  { %s1998_s14 = smov 0   ;;  %s2000_s15 = smov 0  }
   0x2   :  { %s2002_s16 = smov 0  }
   0x3 LB: > { %s28_s17 = sadd.s32 1, %s1968_s15  ;;  %p76_p1 = scmp.ne.s32.totalorder %s1960_s13, %s1956_s12  ;;  %s1972_s16 = sphi %s2002_s16, %s13_s16   ;;  %s1968_s15 = sphi %s2000_s15, %s2432_s15   ;;  %s1964_s14 = sphi %s1998_s14, %s2431_s14   ;;  %s1960_s13 = sphi %s1996_s13, %s2430_s13   ;;  %s1956_s12 = sphi %s1994_s12, %s2429_s12  }
   0x4   : > { %p30_p0 = scmp.ge.s32.totalorder %s28_s17, 25  ;;  %p77_p2 = scmp.eq.s32.totalorder %s1972_s16, 0 }
   0x5   : > { %s69_s19 = sadd.s32 1, %s1960_s13  ;;  %p1653_p5 = scmp.ge.s32.totalorder %s1972_s16, 25 }
   0x6   : > { %s2434_s17 = smov (%p30_p0, %s28_s17), 0  ;;  %p78_p3 = por %p77_p2, %p76_p1 }
   0x7   : > { %s65_s18 = ssub.s32 %s1968_s15, %s2434_s17  ;;  %169 = sbr.rel (%p1653_p5) target bundleno = 103 (0x67), region = 20 }
   0x8   : > { %p67_p4 = scmp.eq.s32.totalorder %s65_s18, 0 }
   0xa   : > { %s2029_s20 = scalar_select %p67_p4, %s1960_s13, %s69_s19  }
   0xe   : > { %172 = sbr.rel (!%p78_p3) target bundleno = 103 (0x67), region = 24  ;;  %s174_s21 = sand.u32 (%p78_p3), 1, %s1960_s13  }
   0xf   : > { %s1655_s22 = sshll.u32 (%p78_p3), %s1968_s15, 2  ;;  %s1654_s23 = sshll.u32 (%p78_p3), %s174_s21, 9 }
  0x10   : > { %s2037_s26 = scalar_lea.vmem (%p78_p3), %s2426_s1, %s1655_s22  ;;  %s2041_s27 = scalar_lea.vmem (%p78_p3), [#allocation3], %s1654_s23 }
  0x11   : > { %v197_v0 = vld [vmem:[%s2037_s26] sm:$0xf] (%p78_p3)  ;;  %v199_v1 = vld [vmem:[%s2037_s26 + $0x64] sm:$0xf] (%p78_p3)  ;;  %v201_v2 = vld [vmem:[%s2037_s26 + $0xc8] sm:$0xf] (%p78_p3) }
  0x12   : > { %198 = vst [vmem:[%s2041_s27] sm:$0xf] (%p78_p3), %v197_v0  ;;  %200 = vst [vmem:[%s2041_s27 + $0x4] sm:$0xf] (%p78_p3), %v199_v1  ;;  %v203_v3 = vld [vmem:[%s2037_s26 + $0x12c] sm:$0xf] (%p78_p3) }
  0x13   : > { %v205_v4 = vld [vmem:[%s2037_s26 + $0x190] sm:$0xf] (%p78_p3)  ;;  %202 = vst [vmem:[%s2041_s27 + $0x8] sm:$0xf] (%p78_p3), %v201_v2  ;;  %204 = vst [vmem:[%s2041_s27 + $0xc] sm:$0xf] (%p78_p3), %v203_v3 }
  0x14   : > { %206 = vst [vmem:[%s2041_s27 + $0x10] sm:$0xf] (%p78_p3), %v205_v4  ;;  %v207_v5 = vld [vmem:[%s2037_s26 + $0x1f4] sm:$0xf] (%p78_p3)  ;;  %v209_v6 = vld [vmem:[%s2037_s26 + $0x258] sm:$0xf] (%p78_p3) }
  0x15   : > { %v211_v7 = vld [vmem:[%s2037_s26 + $0x2bc] sm:$0xf]  ;;  %208 = vst [vmem:[%s2041_s27 + $0x14] sm:$0xf] %v207_v5  ;;  %210 = vst [vmem:[%s2041_s27 + $0x18] sm:$0xf] %v209_v6 }
  0x16   : > { %212 = vst [vmem:[%s2041_s27 + $0x1c] sm:$0xf] %v211_v7  ;;  %v213_v8 = vld [vmem:[%s2037_s26 + $0x320] sm:$0xf]  ;;  %v215_v9 = vld [vmem:[%s2037_s26 + $0x384] sm:$0xf] }
  0x17   : > { %v217_v10 = vld [vmem:[%s2037_s26 + $0x3e8] sm:$0xf]  ;;  %214 = vst [vmem:[%s2041_s27 + $0x20] sm:$0xf] %v213_v8  ;;  %216 = vst [vmem:[%s2041_s27 + $0x24] sm:$0xf] %v215_v9 }
  0x18   : > { %218 = vst [vmem:[%s2041_s27 + $0x28] sm:$0xf] %v217_v10  ;;  %v219_v11 = vld [vmem:[%s2037_s26 + $0x44c] sm:$0xf]  ;;  %v221_v12 = vld [vmem:[%s2037_s26 + $0x4b0] sm:$0xf] }
  0x19   : > { %v223_v13 = vld [vmem:[%s2037_s26 + $0x514] sm:$0xf]  ;;  %220 = vst [vmem:[%s2041_s27 + $0x2c] sm:$0xf] %v219_v11  ;;  %222 = vst [vmem:[%s2041_s27 + $0x30] sm:$0xf] %v221_v12 }
  0x1a   : > { %224 = vst [vmem:[%s2041_s27 + $0x34] sm:$0xf] %v223_v13  ;;  %v225_v14 = vld [vmem:[%s2037_s26 + $0x578] sm:$0xf]  ;;  %v227_v15 = vld [vmem:[%s2037_s26 + $0x5dc] sm:$0xf] }
  0x1b   : > { %v229_v16 = vld [vmem:[%s2037_s26 + $0x640] sm:$0xf]  ;;  %226 = vst [vmem:[%s2041_s27 + $0x38] sm:$0xf] %v225_v14  ;;  %228 = vst [vmem:[%s2041_s27 + $0x3c] sm:$0xf] %v227_v15 }
  0x1c   : > { %230 = vst [vmem:[%s2041_s27 + $0x40] sm:$0xf] %v229_v16  ;;  %v231_v17 = vld [vmem:[%s2037_s26 + $0x6a4] sm:$0xf]  ;;  %v233_v18 = vld [vmem:[%s2037_s26 + $0x708] sm:$0xf] }
  0x1d   : > { %v235_v19 = vld [vmem:[%s2037_s26 + $0x76c] sm:$0xf]  ;;  %232 = vst [vmem:[%s2041_s27 + $0x44] sm:$0xf] %v231_v17  ;;  %234 = vst [vmem:[%s2041_s27 + $0x48] sm:$0xf] %v233_v18 }
  0x1e   : > { %236 = vst [vmem:[%s2041_s27 + $0x4c] sm:$0xf] %v235_v19  ;;  %v237_v20 = vld [vmem:[%s2037_s26 + $0x7d0] sm:$0xf]  ;;  %v239_v21 = vld [vmem:[%s2037_s26 + $0x834] sm:$0xf] }
  0x1f   : > { %v241_v22 = vld [vmem:[%s2037_s26 + $0x898] sm:$0xf]  ;;  %238 = vst [vmem:[%s2041_s27 + $0x50] sm:$0xf] %v237_v20  ;;  %240 = vst [vmem:[%s2041_s27 + $0x54] sm:$0xf] %v239_v21 }
  0x20   : > { %242 = vst [vmem:[%s2041_s27 + $0x58] sm:$0xf] %v241_v22  ;;  %v243_v23 = vld [vmem:[%s2037_s26 + $0x8fc] sm:$0xf]  ;;  %v245_v24 = vld [vmem:[%s2037_s26 + $0x960] sm:$0xf] }
  0x21   : > { %v247_v25 = vld [vmem:[%s2037_s26 + $0x9c4] sm:$0xf]  ;;  %244 = vst [vmem:[%s2041_s27 + $0x5c] sm:$0xf] %v243_v23  ;;  %246 = vst [vmem:[%s2041_s27 + $0x60] sm:$0xf] %v245_v24 }
  0x22   : > { %248 = vst [vmem:[%s2041_s27 + $0x64] sm:$0xf] %v247_v25  ;;  %v249_v26 = vld [vmem:[%s2037_s26 + $0xa28] sm:$0xf]  ;;  %v251_v27 = vld [vmem:[%s2037_s26 + $0xa8c] sm:$0xf] }
  0x23   : > { %v253_v28 = vld [vmem:[%s2037_s26 + $0xaf0] sm:$0xf]  ;;  %250 = vst [vmem:[%s2041_s27 + $0x68] sm:$0xf] %v249_v26  ;;  %252 = vst [vmem:[%s2041_s27 + $0x6c] sm:$0xf] %v251_v27 }
  0x24   : > { %254 = vst [vmem:[%s2041_s27 + $0x70] sm:$0xf] %v253_v28  ;;  %v255_v29 = vld [vmem:[%s2037_s26 + $0xb54] sm:$0xf]  ;;  %v257_v30 = vld [vmem:[%s2037_s26 + $0xbb8] sm:$0xf] }
  0x25   : > { %v259_v31 = vld [vmem:[%s2037_s26 + $0xc1c] sm:$0xf]  ;;  %256 = vst [vmem:[%s2041_s27 + $0x74] sm:$0xf] %v255_v29  ;;  %258 = vst [vmem:[%s2041_s27 + $0x78] sm:$0xf] %v257_v30 }
  0x26   : > { %260 = vst [vmem:[%s2041_s27 + $0x7c] sm:$0xf] %v259_v31  ;;  %v261_v32 = vld [vmem:[%s2037_s26 + $0xc80] sm:$0xf]  ;;  %v263_v33 = vld [vmem:[%s2037_s26 + $0xce4] sm:$0xf] }
  0x27   : > { %v265_v34 = vld [vmem:[%s2037_s26 + $0xd48] sm:$0xf]  ;;  %262 = vst [vmem:[%s2041_s27 + $0x80] sm:$0xf] %v261_v32  ;;  %264 = vst [vmem:[%s2041_s27 + $0x84] sm:$0xf] %v263_v33 }
  0x28   : > { %266 = vst [vmem:[%s2041_s27 + $0x88] sm:$0xf] %v265_v34  ;;  %v267_v35 = vld [vmem:[%s2037_s26 + $0xdac] sm:$0xf]  ;;  %v269_v36 = vld [vmem:[%s2037_s26 + $0xe10] sm:$0xf] }
  0x29   : > { %v271_v37 = vld [vmem:[%s2037_s26 + $0xe74] sm:$0xf]  ;;  %268 = vst [vmem:[%s2041_s27 + $0x8c] sm:$0xf] %v267_v35  ;;  %270 = vst [vmem:[%s2041_s27 + $0x90] sm:$0xf] %v269_v36 }
  0x2a   : > { %272 = vst [vmem:[%s2041_s27 + $0x94] sm:$0xf] %v271_v37  ;;  %v273_v38 = vld [vmem:[%s2037_s26 + $0xed8] sm:$0xf]  ;;  %v275_v39 = vld [vmem:[%s2037_s26 + $0xf3c] sm:$0xf] }
  0x2b   : > { %v277_v40 = vld [vmem:[%s2037_s26 + $0xfa0] sm:$0xf]  ;;  %274 = vst [vmem:[%s2041_s27 + $0x98] sm:$0xf] %v273_v38  ;;  %276 = vst [vmem:[%s2041_s27 + $0x9c] sm:$0xf] %v275_v39 }
  0x2c   : > { %278 = vst [vmem:[%s2041_s27 + $0xa0] sm:$0xf] %v277_v40  ;;  %v279_v41 = vld [vmem:[%s2037_s26 + $0x1004] sm:$0xf]  ;;  %v281_v42 = vld [vmem:[%s2037_s26 + $0x1068] sm:$0xf] }
  0x2d   : > { %v283_v43 = vld [vmem:[%s2037_s26 + $0x10cc] sm:$0xf]  ;;  %280 = vst [vmem:[%s2041_s27 + $0xa4] sm:$0xf] %v279_v41  ;;  %282 = vst [vmem:[%s2041_s27 + $0xa8] sm:$0xf] %v281_v42 }
  0x2e   : > { %284 = vst [vmem:[%s2041_s27 + $0xac] sm:$0xf] %v283_v43  ;;  %v285_v44 = vld [vmem:[%s2037_s26 + $0x1130] sm:$0xf]  ;;  %v287_v45 = vld [vmem:[%s2037_s26 + $0x1194] sm:$0xf] }
  0x2f   : > { %v289_v46 = vld [vmem:[%s2037_s26 + $0x11f8] sm:$0xf]  ;;  %286 = vst [vmem:[%s2041_s27 + $0xb0] sm:$0xf] %v285_v44  ;;  %288 = vst [vmem:[%s2041_s27 + $0xb4] sm:$0xf] %v287_v45 }
  0x30   : > { %290 = vst [vmem:[%s2041_s27 + $0xb8] sm:$0xf] %v289_v46  ;;  %v291_v47 = vld [vmem:[%s2037_s26 + $0x125c] sm:$0xf]  ;;  %v293_v48 = vld [vmem:[%s2037_s26 + $0x12c0] sm:$0xf] }
  0x31   : > { %v295_v49 = vld [vmem:[%s2037_s26 + $0x1324] sm:$0xf]  ;;  %292 = vst [vmem:[%s2041_s27 + $0xbc] sm:$0xf] %v291_v47  ;;  %294 = vst [vmem:[%s2041_s27 + $0xc0] sm:$0xf] %v293_v48 }
  0x32   : > { %296 = vst [vmem:[%s2041_s27 + $0xc4] sm:$0xf] %v295_v49  ;;  %v297_v50 = vld [vmem:[%s2037_s26 + $0x1388] sm:$0xf]  ;;  %v299_v51 = vld [vmem:[%s2037_s26 + $0x13ec] sm:$0xf] }
  0x33   : > { %v301_v52 = vld [vmem:[%s2037_s26 + $0x1450] sm:$0xf]  ;;  %298 = vst [vmem:[%s2041_s27 + $0xc8] sm:$0xf] %v297_v50  ;;  %300 = vst [vmem:[%s2041_s27 + $0xcc] sm:$0xf] %v299_v51 }
  0x34   : > { %302 = vst [vmem:[%s2041_s27 + $0xd0] sm:$0xf] %v301_v52  ;;  %v303_v53 = vld [vmem:[%s2037_s26 + $0x14b4] sm:$0xf]  ;;  %v305_v54 = vld [vmem:[%s2037_s26 + $0x1518] sm:$0xf] }
  0x35   : > { %v307_v55 = vld [vmem:[%s2037_s26 + $0x157c] sm:$0xf]  ;;  %304 = vst [vmem:[%s2041_s27 + $0xd4] sm:$0xf] %v303_v53  ;;  %306 = vst [vmem:[%s2041_s27 + $0xd8] sm:$0xf] %v305_v54 }
  0x36   : > { %308 = vst [vmem:[%s2041_s27 + $0xdc] sm:$0xf] %v307_v55  ;;  %v309_v56 = vld [vmem:[%s2037_s26 + $0x15e0] sm:$0xf]  ;;  %v311_v57 = vld [vmem:[%s2037_s26 + $0x1644] sm:$0xf] }
  0x37   : > { %v313_v58 = vld [vmem:[%s2037_s26 + $0x16a8] sm:$0xf]  ;;  %310 = vst [vmem:[%s2041_s27 + $0xe0] sm:$0xf] %v309_v56  ;;  %312 = vst [vmem:[%s2041_s27 + $0xe4] sm:$0xf] %v311_v57 }
  0x38   : > { %314 = vst [vmem:[%s2041_s27 + $0xe8] sm:$0xf] %v313_v58  ;;  %v315_v59 = vld [vmem:[%s2037_s26 + $0x170c] sm:$0xf]  ;;  %v317_v60 = vld [vmem:[%s2037_s26 + $0x1770] sm:$0xf] }
  0x39   : > { %v319_v61 = vld [vmem:[%s2037_s26 + $0x17d4] sm:$0xf]  ;;  %316 = vst [vmem:[%s2041_s27 + $0xec] sm:$0xf] %v315_v59  ;;  %318 = vst [vmem:[%s2041_s27 + $0xf0] sm:$0xf] %v317_v60 }
  0x3a   : > { %320 = vst [vmem:[%s2041_s27 + $0xf4] sm:$0xf] %v319_v61  ;;  %v321_v62 = vld [vmem:[%s2037_s26 + $0x1838] sm:$0xf]  ;;  %v323_v63 = vld [vmem:[%s2037_s26 + $0x189c] sm:$0xf] }
  0x3b   : > { %v325_v0 = vld [vmem:[%s2037_s26 + $0x1900] sm:$0xf]  ;;  %322 = vst [vmem:[%s2041_s27 + $0xf8] sm:$0xf] %v321_v62  ;;  %324 = vst [vmem:[%s2041_s27 + $0xfc] sm:$0xf] %v323_v63 }
  0x3c   : > { %326 = vst [vmem:[%s2041_s27 + $0x100] sm:$0xf] %v325_v0  ;;  %v327_v1 = vld [vmem:[%s2037_s26 + $0x1964] sm:$0xf]  ;;  %v329_v2 = vld [vmem:[%s2037_s26 + $0x19c8] sm:$0xf] }
  0x3d   : > { %v331_v3 = vld [vmem:[%s2037_s26 + $0x1a2c] sm:$0xf]  ;;  %328 = vst [vmem:[%s2041_s27 + $0x104] sm:$0xf] %v327_v1  ;;  %330 = vst [vmem:[%s2041_s27 + $0x108] sm:$0xf] %v329_v2 }
  0x3e   : > { %332 = vst [vmem:[%s2041_s27 + $0x10c] sm:$0xf] %v331_v3  ;;  %v333_v4 = vld [vmem:[%s2037_s26 + $0x1a90] sm:$0xf]  ;;  %v335_v5 = vld [vmem:[%s2037_s26 + $0x1af4] sm:$0xf] }
  0x3f   : > { %v337_v6 = vld [vmem:[%s2037_s26 + $0x1b58] sm:$0xf]  ;;  %334 = vst [vmem:[%s2041_s27 + $0x110] sm:$0xf] %v333_v4  ;;  %336 = vst [vmem:[%s2041_s27 + $0x114] sm:$0xf] %v335_v5 }
  0x40   : > { %338 = vst [vmem:[%s2041_s27 + $0x118] sm:$0xf] %v337_v6  ;;  %v339_v7 = vld [vmem:[%s2037_s26 + $0x1bbc] sm:$0xf]  ;;  %v341_v8 = vld [vmem:[%s2037_s26 + $0x1c20] sm:$0xf] }
  0x41   : > { %v343_v9 = vld [vmem:[%s2037_s26 + $0x1c84] sm:$0xf]  ;;  %340 = vst [vmem:[%s2041_s27 + $0x11c] sm:$0xf] %v339_v7  ;;  %342 = vst [vmem:[%s2041_s27 + $0x120] sm:$0xf] %v341_v8 }
  0x42   : > { %344 = vst [vmem:[%s2041_s27 + $0x124] sm:$0xf] %v343_v9  ;;  %v345_v10 = vld [vmem:[%s2037_s26 + $0x1ce8] sm:$0xf]  ;;  %v347_v11 = vld [vmem:[%s2037_s26 + $0x1d4c] sm:$0xf] }
  0x43   : > { %v349_v12 = vld [vmem:[%s2037_s26 + $0x1db0] sm:$0xf]  ;;  %346 = vst [vmem:[%s2041_s27 + $0x128] sm:$0xf] %v345_v10  ;;  %348 = vst [vmem:[%s2041_s27 + $0x12c] sm:$0xf] %v347_v11 }
  0x44   : > { %350 = vst [vmem:[%s2041_s27 + $0x130] sm:$0xf] %v349_v12  ;;  %v351_v13 = vld [vmem:[%s2037_s26 + $0x1e14] sm:$0xf]  ;;  %v353_v14 = vld [vmem:[%s2037_s26 + $0x1e78] sm:$0xf] }
  0x45   : > { %v355_v15 = vld [vmem:[%s2037_s26 + $0x1edc] sm:$0xf]  ;;  %352 = vst [vmem:[%s2041_s27 + $0x134] sm:$0xf] %v351_v13  ;;  %354 = vst [vmem:[%s2041_s27 + $0x138] sm:$0xf] %v353_v14 }
  0x46   : > { %356 = vst [vmem:[%s2041_s27 + $0x13c] sm:$0xf] %v355_v15  ;;  %v357_v16 = vld [vmem:[%s2037_s26 + $0x1f40] sm:$0xf]  ;;  %v359_v17 = vld [vmem:[%s2037_s26 + $0x1fa4] sm:$0xf] }
  0x47   : > { %v361_v18 = vld [vmem:[%s2037_s26 + $0x2008] sm:$0xf]  ;;  %358 = vst [vmem:[%s2041_s27 + $0x140] sm:$0xf] %v357_v16  ;;  %360 = vst [vmem:[%s2041_s27 + $0x144] sm:$0xf] %v359_v17 }
  0x48   : > { %362 = vst [vmem:[%s2041_s27 + $0x148] sm:$0xf] %v361_v18  ;;  %v363_v19 = vld [vmem:[%s2037_s26 + $0x206c] sm:$0xf]  ;;  %v365_v20 = vld [vmem:[%s2037_s26 + $0x20d0] sm:$0xf] }
  0x49   : > { %v367_v21 = vld [vmem:[%s2037_s26 + $0x2134] sm:$0xf]  ;;  %364 = vst [vmem:[%s2041_s27 + $0x14c] sm:$0xf] %v363_v19  ;;  %366 = vst [vmem:[%s2041_s27 + $0x150] sm:$0xf] %v365_v20 }
  0x4a   : > { %368 = vst [vmem:[%s2041_s27 + $0x154] sm:$0xf] %v367_v21  ;;  %v369_v22 = vld [vmem:[%s2037_s26 + $0x2198] sm:$0xf]  ;;  %v371_v23 = vld [vmem:[%s2037_s26 + $0x21fc] sm:$0xf] }
  0x4b   : > { %v373_v24 = vld [vmem:[%s2037_s26 + $0x2260] sm:$0xf]  ;;  %370 = vst [vmem:[%s2041_s27 + $0x158] sm:$0xf] %v369_v22  ;;  %372 = vst [vmem:[%s2041_s27 + $0x15c] sm:$0xf] %v371_v23 }
  0x4c   : > { %374 = vst [vmem:[%s2041_s27 + $0x160] sm:$0xf] %v373_v24  ;;  %v375_v25 = vld [vmem:[%s2037_s26 + $0x22c4] sm:$0xf]  ;;  %v377_v26 = vld [vmem:[%s2037_s26 + $0x2328] sm:$0xf] }
  0x4d   : > { %v379_v27 = vld [vmem:[%s2037_s26 + $0x238c] sm:$0xf]  ;;  %376 = vst [vmem:[%s2041_s27 + $0x164] sm:$0xf] %v375_v25  ;;  %378 = vst [vmem:[%s2041_s27 + $0x168] sm:$0xf] %v377_v26 }
  0x4e   : > { %380 = vst [vmem:[%s2041_s27 + $0x16c] sm:$0xf] %v379_v27  ;;  %v381_v28 = vld [vmem:[%s2037_s26 + $0x23f0] sm:$0xf]  ;;  %v383_v29 = vld [vmem:[%s2037_s26 + $0x2454] sm:$0xf] }
  0x4f   : > { %v385_v30 = vld [vmem:[%s2037_s26 + $0x24b8] sm:$0xf]  ;;  %382 = vst [vmem:[%s2041_s27 + $0x170] sm:$0xf] %v381_v28  ;;  %384 = vst [vmem:[%s2041_s27 + $0x174] sm:$0xf] %v383_v29 }
  0x50   : > { %386 = vst [vmem:[%s2041_s27 + $0x178] sm:$0xf] %v385_v30  ;;  %v387_v31 = vld [vmem:[%s2037_s26 + $0x251c] sm:$0xf]  ;;  %v389_v32 = vld [vmem:[%s2037_s26 + $0x2580] sm:$0xf] }
  0x51   : > { %v391_v33 = vld [vmem:[%s2037_s26 + $0x25e4] sm:$0xf]  ;;  %388 = vst [vmem:[%s2041_s27 + $0x17c] sm:$0xf] %v387_v31  ;;  %390 = vst [vmem:[%s2041_s27 + $0x180] sm:$0xf] %v389_v32 }
  0x52   : > { %392 = vst [vmem:[%s2041_s27 + $0x184] sm:$0xf] %v391_v33  ;;  %v393_v34 = vld [vmem:[%s2037_s26 + $0x2648] sm:$0xf]  ;;  %v395_v35 = vld [vmem:[%s2037_s26 + $0x26ac] sm:$0xf] }
  0x53   : > { %v397_v36 = vld [vmem:[%s2037_s26 + $0x2710] sm:$0xf]  ;;  %394 = vst [vmem:[%s2041_s27 + $0x188] sm:$0xf] %v393_v34  ;;  %396 = vst [vmem:[%s2041_s27 + $0x18c] sm:$0xf] %v395_v35 }
  0x54   : > { %398 = vst [vmem:[%s2041_s27 + $0x190] sm:$0xf] %v397_v36  ;;  %v399_v37 = vld [vmem:[%s2037_s26 + $0x2774] sm:$0xf]  ;;  %v401_v38 = vld [vmem:[%s2037_s26 + $0x27d8] sm:$0xf] }
  0x55   : > { %v403_v39 = vld [vmem:[%s2037_s26 + $0x283c] sm:$0xf]  ;;  %400 = vst [vmem:[%s2041_s27 + $0x194] sm:$0xf] %v399_v37  ;;  %402 = vst [vmem:[%s2041_s27 + $0x198] sm:$0xf] %v401_v38 }
  0x56   : > { %404 = vst [vmem:[%s2041_s27 + $0x19c] sm:$0xf] %v403_v39  ;;  %v405_v40 = vld [vmem:[%s2037_s26 + $0x28a0] sm:$0xf]  ;;  %v407_v41 = vld [vmem:[%s2037_s26 + $0x2904] sm:$0xf] }
  0x57   : > { %v409_v42 = vld [vmem:[%s2037_s26 + $0x2968] sm:$0xf]  ;;  %406 = vst [vmem:[%s2041_s27 + $0x1a0] sm:$0xf] %v405_v40  ;;  %408 = vst [vmem:[%s2041_s27 + $0x1a4] sm:$0xf] %v407_v41 }
  0x58   : > { %410 = vst [vmem:[%s2041_s27 + $0x1a8] sm:$0xf] %v409_v42  ;;  %v411_v43 = vld [vmem:[%s2037_s26 + $0x29cc] sm:$0xf]  ;;  %v413_v44 = vld [vmem:[%s2037_s26 + $0x2a30] sm:$0xf] }
  0x59   : > { %v415_v45 = vld [vmem:[%s2037_s26 + $0x2a94] sm:$0xf]  ;;  %412 = vst [vmem:[%s2041_s27 + $0x1ac] sm:$0xf] %v411_v43  ;;  %414 = vst [vmem:[%s2041_s27 + $0x1b0] sm:$0xf] %v413_v44 }
  0x5a   : > { %416 = vst [vmem:[%s2041_s27 + $0x1b4] sm:$0xf] %v415_v45  ;;  %v417_v46 = vld [vmem:[%s2037_s26 + $0x2af8] sm:$0xf]  ;;  %v419_v47 = vld [vmem:[%s2037_s26 + $0x2b5c] sm:$0xf] }
  0x5b   : > { %v421_v48 = vld [vmem:[%s2037_s26 + $0x2bc0] sm:$0xf]  ;;  %418 = vst [vmem:[%s2041_s27 + $0x1b8] sm:$0xf] %v417_v46  ;;  %420 = vst [vmem:[%s2041_s27 + $0x1bc] sm:$0xf] %v419_v47 }
  0x5c   : > { %422 = vst [vmem:[%s2041_s27 + $0x1c0] sm:$0xf] %v421_v48  ;;  %v423_v49 = vld [vmem:[%s2037_s26 + $0x2c24] sm:$0xf]  ;;  %v425_v50 = vld [vmem:[%s2037_s26 + $0x2c88] sm:$0xf] }
  0x5d   : > { %v427_v51 = vld [vmem:[%s2037_s26 + $0x2cec] sm:$0xf]  ;;  %424 = vst [vmem:[%s2041_s27 + $0x1c4] sm:$0xf] %v423_v49  ;;  %426 = vst [vmem:[%s2041_s27 + $0x1c8] sm:$0xf] %v425_v50 }
  0x5e   : > { %428 = vst [vmem:[%s2041_s27 + $0x1cc] sm:$0xf] %v427_v51  ;;  %v429_v52 = vld [vmem:[%s2037_s26 + $0x2d50] sm:$0xf]  ;;  %v431_v53 = vld [vmem:[%s2037_s26 + $0x2db4] sm:$0xf] }
  0x5f   : > { %v433_v54 = vld [vmem:[%s2037_s26 + $0x2e18] sm:$0xf]  ;;  %430 = vst [vmem:[%s2041_s27 + $0x1d0] sm:$0xf] %v429_v52  ;;  %432 = vst [vmem:[%s2041_s27 + $0x1d4] sm:$0xf] %v431_v53 }
  0x60   : > { %434 = vst [vmem:[%s2041_s27 + $0x1d8] sm:$0xf] %v433_v54  ;;  %v435_v55 = vld [vmem:[%s2037_s26 + $0x2e7c] sm:$0xf]  ;;  %v437_v56 = vld [vmem:[%s2037_s26 + $0x2ee0] sm:$0xf] }
  0x61   : > { %v439_v57 = vld [vmem:[%s2037_s26 + $0x2f44] sm:$0xf]  ;;  %436 = vst [vmem:[%s2041_s27 + $0x1dc] sm:$0xf] %v435_v55  ;;  %438 = vst [vmem:[%s2041_s27 + $0x1e0] sm:$0xf] %v437_v56 }
  0x62   : > { %440 = vst [vmem:[%s2041_s27 + $0x1e4] sm:$0xf] %v439_v57  ;;  %v441_v58 = vld [vmem:[%s2037_s26 + $0x2fa8] sm:$0xf]  ;;  %v443_v59 = vld [vmem:[%s2037_s26 + $0x300c] sm:$0xf] }
  0x63   : > { %v445_v60 = vld [vmem:[%s2037_s26 + $0x3070] sm:$0xf]  ;;  %442 = vst [vmem:[%s2041_s27 + $0x1e8] sm:$0xf] %v441_v58  ;;  %444 = vst [vmem:[%s2041_s27 + $0x1ec] sm:$0xf] %v443_v59 }
  0x64   : > { %446 = vst [vmem:[%s2041_s27 + $0x1f0] sm:$0xf] %v445_v60  ;;  %v447_v61 = vld [vmem:[%s2037_s26 + $0x30d4] sm:$0xf]  ;;  %v449_v62 = vld [vmem:[%s2037_s26 + $0x3138] sm:$0xf] }
  0x65   : > { %v451_v63 = vld [vmem:[%s2037_s26 + $0x319c] sm:$0xf]  ;;  %448 = vst [vmem:[%s2041_s27 + $0x1f4] sm:$0xf] %v447_v61  ;;  %450 = vst [vmem:[%s2041_s27 + $0x1f8] sm:$0xf] %v449_v62 }
  0x66   : > { %452 = vst [vmem:[%s2041_s27 + $0x1fc] sm:$0xf] %v451_v63 }
  0x67 PF: > { %p1656_p6 = scmp.ge.s32.totalorder %s1972_s16, 1  ;;  %p736_p7 = scmp.lt.s32.totalorder %s1972_s16, 26 }
  0x69   : > { %p737_p8 = pnand %p1656_p6, %p736_p7 }
  0x6a   : > { %s743_s28 = sand.u32 (!%p737_p8), 1, %s1956_s12   ;;  %v2303_v0 = vld [vmem:[%s2425_s0] sm:$0xff] (!%p737_p8)  ;;  %v2308_v1 = vld [vmem:[%s2425_s0 + $0x8] sm:$0xff] (!%p737_p8)  ;;  %v2348_v33 = vld [vmem:[%s2425_s0 + $0x10] sm:$0xff] (!%p737_p8)  ;;  %p792_p9 = scmp.lt.s32.totalorder (!%p737_p8), %s1964_s14, 24 }
  0x6b   : > { %740 = sbr.rel (%p737_p8) target bundleno = 399 (0x18f), region = 69  ;;  %s1657_s6 = sshll.u32 (!%p737_p8), %s743_s28, 9  ;;  %v1660_v2 = vcombine.high (!%p737_p8), %v2303_v0, %v2303_v0  ;;  %v1662_v3 = vcombine.high (!%p737_p8), %v2308_v1, %v2308_v1  ;;  %v2354_v35 = vld [vmem:[%s2425_s0 + $0x18] sm:$0xff] (!%p737_p8)  ;;  %v1659_v38 = vcombine.low (!%p737_p8), %v2303_v0, %v2303_v0  ;;  %v1661_v39 = vcombine.low (!%p737_p8), %v2308_v1, %v2308_v1 }
  0x6c   : > { %s2314_s7 = scalar_lea.vmem (!%p737_p8), [#allocation3], %s1657_s6  ;;  %v1664_v42 = vcombine.high (!%p737_p8), %v2348_v33, %v2348_v33  ;;  %v1666_v44 = vcombine.high (!%p737_p8), %v2354_v35, %v2354_v35 }
  0x6d   : > { %v1862_v4 = vld [vmem:[%s2314_s7 + $0x40] sm:$0xff] (!%p737_p8)   ;;  %1386 = vmatprep.mubr.bf16.mxu0 (!%p737_p8), %v1660_v2  ;;  %1426 = vmatprep.mubr.bf16.mxu1 (!%p737_p8), %v1662_v3  ;;  %v1866_v8 = vld [vmem:[%s2314_s7 + $0x48] sm:$0xff] (!%p737_p8)   ;;  %v1870_v12 = vld [vmem:[%s2314_s7 + $0x50] sm:$0xff] (!%p737_p8)  }
  0x6e   : > { %v1863_v5 = vld [vmem:[%s2314_s7 + $0xc0] sm:$0xff] (!%p737_p8)   ;;  %1734 = vmatprep.subr.bf16.mxu0 (!%p737_p8), %v1862_v4  ;;  %v1867_v9 = vld [vmem:[%s2314_s7 + $0xc8] sm:$0xff] (!%p737_p8)   ;;  %v1871_v13 = vld [vmem:[%s2314_s7 + $0xd0] sm:$0xff] (!%p737_p8)  }
  0x6f   : > { %v1864_v6 = vld [vmem:[%s2314_s7] sm:$0xff] (!%p737_p8)   ;;  %1756 = vmatprep.subr.bf16.mxu1 (!%p737_p8), %v1863_v5  ;;  %v1868_v10 = vld [vmem:[%s2314_s7 + $0x8] sm:$0xff] (!%p737_p8)   ;;  %v1872_v14 = vld [vmem:[%s2314_s7 + $0x10] sm:$0xff] (!%p737_p8)  }
  0x70   : > { %v1865_v7 = vld [vmem:[%s2314_s7 + $0x80] sm:$0xff] (!%p737_p8)   ;;  %1735 = vmatpush3.bf16.msra.mxu0 (!%p737_p8), %v1864_v6  ;;  %v1869_v11 = vld [vmem:[%s2314_s7 + $0x88] sm:$0xff] (!%p737_p8)   ;;  %v1873_v15 = vld [vmem:[%s2314_s7 + $0x90] sm:$0xff] (!%p737_p8)  }
  0x71   : > { %1757 = vmatpush3.bf16.msra.mxu1 (!%p737_p8), %v1865_v7  ;;  %1736 = vmatprep.subr.bf16.mxu0 (!%p737_p8), %v1866_v8  ;;  %v1874_v16 = vld [vmem:[%s2314_s7 + $0x58] sm:$0xff] (!%p737_p8)   ;;  %v1878_v20 = vld [vmem:[%s2314_s7 + $0x60] sm:$0xff] (!%p737_p8)   ;;  %v1882_v24 = vld [vmem:[%s2314_s7 + $0x68] sm:$0xff] (!%p737_p8)  }
  0x72   : > { %1758 = vmatprep.subr.bf16.mxu1 %v1867_v9  ;;  %v1875_v17 = vld [vmem:[%s2314_s7 + $0xd8] sm:$0xff]   ;;  %v1879_v21 = vld [vmem:[%s2314_s7 + $0xe0] sm:$0xff]   ;;  %v1883_v25 = vld [vmem:[%s2314_s7 + $0xe8] sm:$0xff]   ;;  %s2436_s14 = smov (!%p792_p9, %s1964_s14), 24 }
  0x73   : > { %v1876_v18 = vld [vmem:[%s2314_s7 + $0x18] sm:$0xff]   ;;  %v1880_v22 = vld [vmem:[%s2314_s7 + $0x20] sm:$0xff]   ;;  %v1884_v26 = vld [vmem:[%s2314_s7 + $0x28] sm:$0xff]   ;;  %s794_s19 = scalar_lea.vmem %s2427_s2, %s2436_s14  ;;  %s1658_s21 = sshll.u32 %s2436_s14, 3 }
  0x74   : > { %1737 = vmatpush3.bf16.msra.mxu0 %v1868_v10  ;;  %v1877_v19 = vld [vmem:[%s2314_s7 + $0x98] sm:$0xff]   ;;  %v1881_v23 = vld [vmem:[%s2314_s7 + $0xa0] sm:$0xff]   ;;  %v1885_v27 = vld [vmem:[%s2314_s7 + $0xa8] sm:$0xff]   ;;  %v1663_v10 = vcombine.low %v2348_v33, %v2348_v33  ;;  %s802_s24 = scalar_lea.vmem %s2428_s3, %s1658_s21 }
  0x75   : > { %1759 = vmatpush3.bf16.msra.mxu1 %v1869_v11  ;;  %1738 = vmatprep.subr.bf16.mxu0 %v1870_v12  ;;  %v1886_v28 = vld [vmem:[%s2314_s7 + $0x70] sm:$0xff]   ;;  %v1890_v32 = vld [vmem:[%s2314_s7 + $0x78] sm:$0xff]   ;;  %v1898_v40 = vld [vmem:[%s2314_s7 + $0x140] sm:$0xff]   ;;  %v1665_v11 = vcombine.low %v2354_v35, %v2354_v35 }
  0x76   : > { %1760 = vmatprep.subr.bf16.mxu1 %v1871_v13  ;;  %v1887_v29 = vld [vmem:[%s2314_s7 + $0xf0] sm:$0xff]   ;;  %v1891_v34 = vld [vmem:[%s2314_s7 + $0xf8] sm:$0xff]   ;;  %v1899_v41 = vld [vmem:[%s2314_s7 + $0x1c0] sm:$0xff]  }
  0x77   : > { %v1888_v30 = vld [vmem:[%s2314_s7 + $0x30] sm:$0xff]   ;;  %v1892_v36 = vld [vmem:[%s2314_s7 + $0x38] sm:$0xff]   ;;  %v1900_v43 = vld [vmem:[%s2314_s7 + $0x100] sm:$0xff]  }
  0x78   : > { %1739 = vmatpush3.bf16.msra.mxu0 %v1872_v14  ;;  %v1889_v31 = vld [vmem:[%s2314_s7 + $0xb0] sm:$0xff]   ;;  %v1893_v37 = vld [vmem:[%s2314_s7 + $0xb8] sm:$0xff]   ;;  %v1901_v45 = vld [vmem:[%s2314_s7 + $0x180] sm:$0xff]  }
  0x79   : > { %1761 = vmatpush3.bf16.msra.mxu1 %v1873_v15  ;;  %1740 = vmatprep.subr.bf16.mxu0 %v1874_v16  ;;  %v1902_v46 = vld [vmem:[%s2314_s7 + $0x148] sm:$0xff]   ;;  %v1906_v50 = vld [vmem:[%s2314_s7 + $0x150] sm:$0xff]   ;;  %v1910_v54 = vld [vmem:[%s2314_s7 + $0x158] sm:$0xff]  }
  0x7a   : > { %1762 = vmatprep.subr.bf16.mxu1 %v1875_v17  ;;  %v1903_v47 = vld [vmem:[%s2314_s7 + $0x1c8] sm:$0xff]   ;;  %v1907_v51 = vld [vmem:[%s2314_s7 + $0x1d0] sm:$0xff]   ;;  %v1911_v55 = vld [vmem:[%s2314_s7 + $0x1d8] sm:$0xff]  }
  0x7b   : > { %v1904_v48 = vld [vmem:[%s2314_s7 + $0x108] sm:$0xff]   ;;  %v1908_v52 = vld [vmem:[%s2314_s7 + $0x110] sm:$0xff]   ;;  %v1912_v56 = vld [vmem:[%s2314_s7 + $0x118] sm:$0xff]  }
  0x7c   : > { %1741 = vmatpush3.bf16.msra.mxu0 %v1876_v18  ;;  %v1905_v49 = vld [vmem:[%s2314_s7 + $0x188] sm:$0xff]   ;;  %v1909_v53 = vld [vmem:[%s2314_s7 + $0x190] sm:$0xff]   ;;  %v1913_v57 = vld [vmem:[%s2314_s7 + $0x198] sm:$0xff]  }
  0x7d   : > { %1763 = vmatpush3.bf16.msra.mxu1 %v1877_v19  ;;  %1742 = vmatprep.subr.bf16.mxu0 %v1878_v20  ;;  %v1914_v58 = vld [vmem:[%s2314_s7 + $0x160] sm:$0xff]   ;;  %v1918_v62 = vld [vmem:[%s2314_s7 + $0x168] sm:$0xff]   ;;  %v1922_v2 = vld [vmem:[%s2314_s7 + $0x170] sm:$0xff]  }
  0x7e   : > { %1764 = vmatprep.subr.bf16.mxu1 %v1879_v21  ;;  %v1915_v59 = vld [vmem:[%s2314_s7 + $0x1e0] sm:$0xff]   ;;  %v1919_v63 = vld [vmem:[%s2314_s7 + $0x1e8] sm:$0xff]   ;;  %v1923_v3 = vld [vmem:[%s2314_s7 + $0x1f0] sm:$0xff]  }
  0x7f   : > { %v1916_v60 = vld [vmem:[%s2314_s7 + $0x120] sm:$0xff]   ;;  %v1920_v0 = vld [vmem:[%s2314_s7 + $0x128] sm:$0xff]   ;;  %v1924_v4 = vld [vmem:[%s2314_s7 + $0x130] sm:$0xff]  }
  0x80   : > { %1743 = vmatpush3.bf16.msra.mxu0 %v1880_v22  ;;  %v1917_v61 = vld [vmem:[%s2314_s7 + $0x1a0] sm:$0xff]   ;;  %v1921_v1 = vld [vmem:[%s2314_s7 + $0x1a8] sm:$0xff]   ;;  %v1925_v5 = vld [vmem:[%s2314_s7 + $0x1b0] sm:$0xff]  }
  0x81   : > { %1765 = vmatpush3.bf16.msra.mxu1 %v1881_v23  ;;  %1744 = vmatprep.subr.bf16.mxu0 %v1882_v24  ;;  %v1926_v6 = vld [vmem:[%s2314_s7 + $0x178] sm:$0xff]  }
  0x82   : > { %1766 = vmatprep.subr.bf16.mxu1 %v1883_v25  ;;  %v1927_v7 = vld [vmem:[%s2314_s7 + $0x1f8] sm:$0xff]  }
  0x83   : > { %v1928_v8 = vld [vmem:[%s2314_s7 + $0x138] sm:$0xff]  }
  0x84   : > { %1745 = vmatpush3.bf16.msra.mxu0 %v1884_v26  ;;  %v1929_v9 = vld [vmem:[%s2314_s7 + $0x1b8] sm:$0xff]  }
  0x85   : > { %1767 = vmatpush3.bf16.msra.mxu1 %v1885_v27  ;;  %1746 = vmatprep.subr.bf16.mxu0 %v1886_v28 }
  0x86   : > { %1768 = vmatprep.subr.bf16.mxu1 %v1887_v29 }
  0x88   : > { %1747 = vmatpush3.bf16.msra.mxu0 %v1888_v30 }
  0x89   : > { %1769 = vmatpush3.bf16.msra.mxu1 %v1889_v31  ;;  %1748 = vmatprep.subr.bf16.mxu0 %v1890_v32 }
  0x8a   : > { %1770 = vmatprep.subr.bf16.mxu1 %v1891_v34  ;;  %v1731_v34 = vld [vmem:[%s794_s19] ss:$0 sm:$0xff] }
  0x8c   : > { %1749 = vmatpush3.bf16.msra.mxu0 %v1892_v36 }
  0x8d   : > { %1771 = vmatpush3.bf16.msra.mxu1 %v1893_v37  ;;  %1778 = vmatprep.subr.bf16.mxu0 %v1898_v40 }
  0x8e   : > { %1800 = vmatprep.subr.bf16.mxu1 %v1899_v41 }
  0x8f   : > { %1387 = vmatmul.mubr.bf16.vlgmr.msra.gmra.mrb[0].mxu0 %v1659_v38 }
  0x90   : > { %1427 = vmatmul.mubr.bf16.vlgmr.msra.gmra.mrb[0].mxu1 %v1661_v39  ;;  %1779 = vmatpush3.bf16.msra.mxu0 %v1900_v43 }
  0x91   : > { %1801 = vmatpush3.bf16.msra.mxu1 %v1901_v45  ;;  %1466 = vmatprep.mubr.bf16.mxu0 %v1664_v42 }
  0x92   : > { %1780 = vmatprep.subr.bf16.mxu0 %v1902_v46  ;;  %1506 = vmatprep.mubr.bf16.mxu1 %v1666_v44 }
  0x93   : > { %1802 = vmatprep.subr.bf16.mxu1 %v1903_v47 }
  0x94   : > { %1781 = vmatpush3.bf16.msra.mxu0 %v1904_v48 }
  0x95   : > { %1803 = vmatpush3.bf16.msra.mxu1 %v1905_v49  ;;  %1782 = vmatprep.subr.bf16.mxu0 %v1906_v50 }
  0x96   : > { %1804 = vmatprep.subr.bf16.mxu1 %v1907_v51 }
  0x98   : > { %1783 = vmatpush3.bf16.msra.mxu0 %v1908_v52 }
  0x99   : > { %1805 = vmatpush3.bf16.msra.mxu1 %v1909_v53  ;;  %1784 = vmatprep.subr.bf16.mxu0 %v1910_v54 }
  0x9a   : > { %1806 = vmatprep.subr.bf16.mxu1 %v1911_v55 }
  0x9c   : > { %1785 = vmatpush3.bf16.msra.mxu0 %v1912_v56 }
  0x9d   : > { %1807 = vmatpush3.bf16.msra.mxu1 %v1913_v57  ;;  %1786 = vmatprep.subr.bf16.mxu0 %v1914_v58 }
  0x9e   : > { %1808 = vmatprep.subr.bf16.mxu1 %v1915_v59 }
  0xa0   : > { %1787 = vmatpush3.bf16.msra.mxu0 %v1916_v60 }
  0xa1   : > { %1809 = vmatpush3.bf16.msra.mxu1 %v1917_v61  ;;  %1788 = vmatprep.subr.bf16.mxu0 %v1918_v62 }
  0xa2   : > { %1810 = vmatprep.subr.bf16.mxu1 %v1919_v63 }
  0xa4   : > { %1789 = vmatpush3.bf16.msra.mxu0 %v1920_v0 }
  0xa5   : > { %1811 = vmatpush3.bf16.msra.mxu1 %v1921_v1  ;;  %1790 = vmatprep.subr.bf16.mxu0 %v1922_v2 }
  0xa6   : > { %1812 = vmatprep.subr.bf16.mxu1 %v1923_v3 }
  0xa8   : > { %1791 = vmatpush3.bf16.msra.mxu0 %v1924_v4 }
  0xa9   : > { %1813 = vmatpush3.bf16.msra.mxu1 %v1925_v5  ;;  %1792 = vmatprep.subr.bf16.mxu0 %v1926_v6 }
  0xaa   : > { %1814 = vmatprep.subr.bf16.mxu1 %v1927_v7 }
  0xac   : > { %1793 = vmatpush3.bf16.msra.mxu0 %v1928_v8 }
  0xad   : > { %1815 = vmatpush3.bf16.msra.mxu1 %v1929_v9 }
  0xaf   : > { %1467 = vmatmul.mubr.bf16.vlgmr.msra.gmra.mrb[4].mxu0 %v1663_v10 }
  0xb0   : > { %1507 = vmatmul.mubr.bf16.vlgmr.msra.gmra.mrb[4].mxu1 %v1665_v11 }
 0x162   : > { %v1750_v12 = vpop.f32.mrb[0].mxu0 }
 0x163   : > { %v1772_v13 = vpop.f32.mrb[0].mxu1  ;;  %v1751_v14 = vpop.f32.mrb[1].mxu0 }
 0x164   : > { %v1752_v15 = vadd.f32 %v1751_v14, %v1750_v12  ;;  %v1773_v16 = vpop.f32.mrb[1].mxu1  ;;  %v1753_v17 = vpop.f32.mrb[2].mxu0 }
 0x165   : > { %v1774_v18 = vadd.f32 %v1773_v16, %v1772_v13  ;;  %v1775_v19 = vpop.f32.mrb[2].mxu1  ;;  %v1754_v20 = vpop.f32.mrb[3].mxu0 }
 0x166   : > { %v1776_v21 = vpop.f32.mrb[3].mxu1 }
 0x167   : > { %v1429_v22 = vadd.f32 %v1774_v18, %v1752_v15 }
 0x182   : > { %v1794_v23 = vpop.f32.mrb[4].mxu0 }
 0x183   : > { %v1816_v24 = vpop.f32.mrb[4].mxu1  ;;  %v1795_v25 = vpop.f32.mrb[5].mxu0 }
 0x184   : > { %v1796_v26 = vadd.f32 %v1795_v25, %v1794_v23  ;;  %v1817_v27 = vpop.f32.mrb[5].mxu1  ;;  %v1797_v28 = vpop.f32.mrb[6].mxu0 }
 0x185   : > { %v1818_v29 = vadd.f32 %v1817_v27, %v1816_v24  ;;  %v1819_v30 = vpop.f32.mrb[6].mxu1  ;;  %v1798_v31 = vpop.f32.mrb[7].mxu0 }
 0x186   : > { %v1469_v32 = vadd.f32 %v1796_v26, %v1429_v22  ;;  %v1820_v33 = vpop.f32.mrb[7].mxu1 }
 0x188   : > { %v1509_v35 = vadd.f32 %v1818_v29, %v1469_v32 }
 0x18a   : > { %v1527_v36 = vadd.f32 %v1731_v34, %v1509_v35 }
 0x18c   : > { %v1528_v37 = vmax.f32 %v1527_v36, 0.0 }
 0x18e   : > { %1529 = vst [vmem:[%s802_s24] sm:$0xff] %v1528_v37 }
 0x18f PF: > { %s13_s16 = sadd.s32 1, %s1972_s16   ;;  %s2429_s12 = smov %s1960_s13 }
 0x190   : > { %p10_p10 = scmp.ge.s32.totalorder %s13_s16, 27   ;;  %s2430_s13 = smov %s2029_s20 }
 0x191   : > { %s2431_s14 = smov %s1968_s15  ;;  %s2432_s15 = smov %s2434_s17 }
 0x192   :  { %12 = sbr.rel (!%p10_p10) target bundleno = 3 (0x3), region = 122 }

// kernel: vae_forward.17
= control target key start
LH: loop header
LB: loop body
LE: loop exit
PB: predicated region body
PF: predicated region fallthrough
CT: control target
= control target key end

     0   :  { %s919_s12 = smov 0   ;;  %s921_s13 = smov 0   ;;  %s1040_s0 = inlined_call_operand.vmem [shape: bf16[56,128], index: 0, kind: input, shape index: {}]   ;;  %s1041_s1 = inlined_call_operand.vmem [shape: bf16[128,1664], index: 1, kind: input, shape index: {}]   ;;  %s1042_s2 = inlined_call_operand.vmem [shape: f32[1,1664], index: 2, kind: input, shape index: {}]   ;;  %s1043_s3 = inlined_call_operand.vmem [shape: f32[56,1664], index: 3, kind: output, shape index: {}]  }
   0x1   :  { %s923_s14 = smov 0   ;;  %s925_s15 = smov 0  }
   0x2   :  { %s927_s16 = smov 0  }
   0x3 LB: > { %s28_s17 = sadd.s32 1, %s893_s15  ;;  %s729_s18 = sadd.s32 4294967295, %s897_s16   ;;  %s897_s16 = sphi %s927_s16, %s13_s16   ;;  %s893_s15 = sphi %s925_s15, %s1048_s15   ;;  %s889_s14 = sphi %s923_s14, %s1047_s14   ;;  %s885_s13 = sphi %s921_s13, %s1046_s13   ;;  %s881_s12 = sphi %s919_s12, %s1045_s12  }
   0x4   : > { %p30_p0 = scmp.ge.s32.totalorder %s28_s17, 13  ;;  %p76_p1 = scmp.ne.s32.totalorder %s885_s13, %s881_s12 }
   0x5   : > { %p77_p2 = scmp.eq.s32.totalorder %s897_s16, 0  ;;  %p134_p4 = scmp.eq.s32.totalorder %s729_s18, 12 }
   0x6   : > { %s1050_s17 = smov (%p30_p0, %s28_s17), 0  ;;  %s69_s20 = sadd.s32 1, %s885_s13 }
   0x7   : > { %p78_p3 = por %p77_p2, %p76_p1  ;;  %s65_s19 = ssub.s32 %s893_s15, %s1050_s17 }
   0x8   : > { %p67_p5 = scmp.eq.s32.totalorder %s65_s19, 0  ;;  %p954_p6 = por %p134_p4, %p76_p1 }
   0x9   : > { %p733_p7 = scmp.ge.s32.totalorder %s897_s16, 13 }
   0xa   : > { %s959_s22 = scalar_select %p67_p5, %s885_s13, %s69_s20  }
   0xb   : > { %168 = sbr.rel (%p733_p7) target bundleno = 32 (0x20), region = 20 }
  0x12   : > { %171 = sbr.rel (!%p78_p3) target bundleno = 32 (0x20), region = 24  ;;  %s173_s23 = sand.u32 (%p78_p3), 1, %s885_s13  }
  0x13   : > { %s735_s24 = sshll.u32 (%p78_p3), %s893_s15, 2  ;;  %s734_s25 = sshll.u32 (%p78_p3), %s173_s23, 6 }
  0x14   : > { %s967_s28 = scalar_lea.vmem (%p78_p3), %s1041_s1, %s735_s24  ;;  %s175_s29 = scalar_lea.vmem (%p78_p3), [#allocation3], %s734_s25 }
  0x15   : > { %v196_v0 = vld [vmem:[%s967_s28] sm:$0xf] (%p78_p3)  ;;  %v198_v1 = vld [vmem:[%s967_s28 + $0x34] sm:$0xf] (%p78_p3)  ;;  %v200_v2 = vld [vmem:[%s967_s28 + $0x68] sm:$0xf] (%p78_p3) }
  0x16   : > { %197 = vst [vmem:[%s175_s29] sm:$0xf] (%p78_p3), %v196_v0  ;;  %199 = vst [vmem:[%s175_s29 + $0x4] sm:$0xf] (%p78_p3), %v198_v1  ;;  %v202_v3 = vld [vmem:[%s967_s28 + $0x9c] sm:$0xf] (%p78_p3) }
  0x17   : > { %v204_v4 = vld [vmem:[%s967_s28 + $0xd0] sm:$0xf] (%p78_p3)  ;;  %201 = vst [vmem:[%s175_s29 + $0x8] sm:$0xf] (%p78_p3), %v200_v2  ;;  %203 = vst [vmem:[%s175_s29 + $0xc] sm:$0xf] (%p78_p3), %v202_v3 }
  0x18   : > { %205 = vst [vmem:[%s175_s29 + $0x10] sm:$0xf] (%p78_p3), %v204_v4  ;;  %v206_v5 = vld [vmem:[%s967_s28 + $0x104] sm:$0xf] (%p78_p3)  ;;  %v208_v6 = vld [vmem:[%s967_s28 + $0x138] sm:$0xf] (%p78_p3) }
  0x19   : > { %v210_v7 = vld [vmem:[%s967_s28 + $0x16c] sm:$0xf]  ;;  %207 = vst [vmem:[%s175_s29 + $0x14] sm:$0xf] %v206_v5  ;;  %209 = vst [vmem:[%s175_s29 + $0x18] sm:$0xf] %v208_v6 }
  0x1a   : > { %211 = vst [vmem:[%s175_s29 + $0x1c] sm:$0xf] %v210_v7  ;;  %v212_v8 = vld [vmem:[%s967_s28 + $0x1a0] sm:$0xf]  ;;  %v214_v9 = vld [vmem:[%s967_s28 + $0x1d4] sm:$0xf] }
  0x1b   : > { %v216_v10 = vld [vmem:[%s967_s28 + $0x208] sm:$0xf]  ;;  %213 = vst [vmem:[%s175_s29 + $0x20] sm:$0xf] %v212_v8  ;;  %215 = vst [vmem:[%s175_s29 + $0x24] sm:$0xf] %v214_v9 }
  0x1c   : > { %217 = vst [vmem:[%s175_s29 + $0x28] sm:$0xf] %v216_v10  ;;  %v218_v11 = vld [vmem:[%s967_s28 + $0x23c] sm:$0xf]  ;;  %v220_v12 = vld [vmem:[%s967_s28 + $0x270] sm:$0xf] }
  0x1d   : > { %v222_v13 = vld [vmem:[%s967_s28 + $0x2a4] sm:$0xf]  ;;  %219 = vst [vmem:[%s175_s29 + $0x2c] sm:$0xf] %v218_v11  ;;  %221 = vst [vmem:[%s175_s29 + $0x30] sm:$0xf] %v220_v12 }
  0x1e   : > { %223 = vst [vmem:[%s175_s29 + $0x34] sm:$0xf] %v222_v13  ;;  %v224_v14 = vld [vmem:[%s967_s28 + $0x2d8] sm:$0xf]  ;;  %v226_v15 = vld [vmem:[%s967_s28 + $0x30c] sm:$0xf] }
  0x1f   : > { %225 = vst [vmem:[%s175_s29 + $0x38] sm:$0xf] %v224_v14  ;;  %227 = vst [vmem:[%s175_s29 + $0x3c] sm:$0xf] %v226_v15 }
  0x20 PF: > { %p736_p8 = scmp.ge.s32.totalorder %s897_s16, 1  ;;  %p287_p9 = scmp.lt.s32.totalorder %s897_s16, 14 }
  0x22   : > { %p288_p10 = pnand %p736_p8, %p287_p9 }
  0x23   : > { %s294_s30 = sand.u32 (!%p288_p10), 1, %s881_s12   ;;  %v855_v16 = vld [vmem:[%s1040_s0] sm:$0xff] (!%p288_p10)   ;;  %v856_v17 = vld [vmem:[%s1040_s0 + $0x10] sm:$0xff] (!%p288_p10)   ;;  %v857_v26 = vld [vmem:[%s1040_s0 + $0x8] sm:$0xff] (!%p288_p10)   ;;  %p337_p11 = scmp.lt.s32.totalorder (!%p288_p10), %s889_s14, 12 }
  0x24   : > { %291 = sbr.rel (%p288_p10) target bundleno = 298 (0x12a), region = 69  ;;  %s737_s6 = sshll.u32 (!%p288_p10), %s294_s30, 6  ;;  %782 = vmatprep.mubr.bf16.mxu0 (!%p288_p10), %v855_v16  ;;  %786 = vmatprep.mubr.bf16.mxu1 (!%p288_p10), %v856_v17  ;;  %v858_v27 = vld [vmem:[%s1040_s0 + $0x18] ss:$0 sps:$4 sm:$0xff] (!%p288_p10)  }
  0x25   : > { %s996_s9 = scalar_lea.vmem (!%p288_p10), [#allocation3], %s737_s6  ;;  %s806_s26 = smul.u32 (!%p288_p10), 56, %s294_s30 }
  0x26   : > { %v847_v18 = vld [vmem:[%s996_s9] sm:$0xff] (!%p288_p10)   ;;  %v848_v19 = vld [vmem:[%s996_s9 + $0x8] sm:$0xff] (!%p288_p10)   ;;  %v849_v20 = vld [vmem:[%s996_s9 + $0x10] sm:$0xff] (!%p288_p10)  }
  0x27   : > { %766 = vmatprep.subr.bf16.mxu0 (!%p288_p10), %v847_v18  ;;  %790 = vmatprep.subr.bf16.mxu1 (!%p288_p10), %v847_v18  ;;  %v850_v21 = vld [vmem:[%s996_s9 + $0x18] sm:$0xff] (!%p288_p10)   ;;  %v851_v22 = vld [vmem:[%s996_s9 + $0x20] sm:$0xff] (!%p288_p10)   ;;  %v852_v23 = vld [vmem:[%s996_s9 + $0x28] sm:$0xff] (!%p288_p10)   ;;  %s326_s27 = scalar_lea.vmem (!%p288_p10), [#allocation4], %s806_s26 }
  0x28   : > { %767 = vmatpush3.bf16.msra.mxu0 (!%p288_p10), %v847_v18  ;;  %798 = vmatpush3.bf16.msra.mxu1 (!%p288_p10), %v847_v18  ;;  %v853_v24 = vld [vmem:[%s996_s9 + $0x30] sm:$0xff] (!%p288_p10)   ;;  %v854_v25 = vld [vmem:[%s996_s9 + $0x38] sm:$0xff] (!%p288_p10)  }
  0x29   : > { %768 = vmatprep.subr.bf16.mxu0 (!%p288_p10), %v848_v19  ;;  %791 = vmatprep.subr.bf16.mxu1 (!%p288_p10), %v848_v19 }
  0x2b   : > { %s338_s20 = scalar_select %p337_p11, %s889_s14, 12 }
  0x2c   : > { %769 = vmatpush3.bf16.msra.mxu0 %v848_v19  ;;  %799 = vmatpush3.bf16.msra.mxu1 %v848_v19  ;;  %s751_s12 = sshll.u32 (%p954_p6), %s889_s14, 3 }
  0x2d   : > { %770 = vmatprep.subr.bf16.mxu0 %v849_v20  ;;  %792 = vmatprep.subr.bf16.mxu1 %v849_v20  ;;  %s339_s25 = scalar_lea.vmem %s1042_s2, %s338_s20  ;;  %s573_s30 = scalar_lea.vmem (%p954_p6), %s1043_s3, %s751_s12 }
  0x2e   : > { %v750_v28 = vld [vmem:[%s339_s25] ss:$0 sm:$0xff] }
  0x30   : > { %771 = vmatpush3.bf16.msra.mxu0 %v849_v20  ;;  %800 = vmatpush3.bf16.msra.mxu1 %v849_v20 }
  0x31   : > { %772 = vmatprep.subr.bf16.mxu0 %v850_v21  ;;  %793 = vmatprep.subr.bf16.mxu1 %v850_v21 }
  0x34   : > { %773 = vmatpush3.bf16.msra.mxu0 %v850_v21  ;;  %801 = vmatpush3.bf16.msra.mxu1 %v850_v21 }
  0x35   : > { %774 = vmatprep.subr.bf16.mxu0 %v851_v22  ;;  %794 = vmatprep.subr.bf16.mxu1 %v851_v22 }
  0x38   : > { %775 = vmatpush3.bf16.msra.mxu0 %v851_v22  ;;  %802 = vmatpush3.bf16.msra.mxu1 %v851_v22 }
  0x39   : > { %776 = vmatprep.subr.bf16.mxu0 %v852_v23  ;;  %795 = vmatprep.subr.bf16.mxu1 %v852_v23 }
  0x3c   : > { %777 = vmatpush3.bf16.msra.mxu0 %v852_v23  ;;  %803 = vmatpush3.bf16.msra.mxu1 %v852_v23 }
  0x3d   : > { %778 = vmatprep.subr.bf16.mxu0 %v853_v24  ;;  %796 = vmatprep.subr.bf16.mxu1 %v853_v24 }
  0x40   : > { %779 = vmatpush3.bf16.msra.mxu0 %v853_v24  ;;  %804 = vmatpush3.bf16.msra.mxu1 %v853_v24 }
  0x41   : > { %780 = vmatprep.subr.bf16.mxu0 %v854_v25  ;;  %797 = vmatprep.subr.bf16.mxu1 %v854_v25 }
  0x44   : > { %781 = vmatpush3.bf16.msra.mxu0 %v854_v25  ;;  %805 = vmatpush3.bf16.msra.mxu1 %v854_v25 }
  0x47   : > { %783 = vmatmul.mubr.bf16.vlgmr.msra.gmra.mrb[0].mxu0 %v857_v26  ;;  %787 = vmatmul.mubr.bf16.vlgmr.msra.gmra.mrb[0].mxu1 %v858_v27 }
 0x11a   : > { %v784_v29 = vpop.f32.mrb[0].mxu0  ;;  %v788_v30 = vpop.f32.mrb[0].mxu1  ;;  %568 = sbr.rel (!%p954_p6) target bundleno = 298 (0x12a), region = 85 }
 0x11b   : > { %v550_v31 = vadd.f32 %v784_v29, %v750_v28  ;;  %v554_v32 = vadd.f32 %v788_v30, %v750_v28  ;;  %v487_v33 = vpop.f32.mrb[1].mxu0  ;;  %v503_v34 = vpop.f32.mrb[1].mxu1 }
 0x11c   : > { %v548_v35 = vadd.f32 %v750_v28, %v487_v33  ;;  %v552_v36 = vadd.f32 %v750_v28, %v503_v34  ;;  %v785_v37 = vpop.f32.mrb[2].mxu0  ;;  %v789_v38 = vpop.f32.mrb[2].mxu1 }
 0x11d   : > { %557 = vst [vmem:[%s326_s27 + $0x10] sm:$0xff] %v550_v31  ;;  %561 = vst [vmem:[%s326_s27 + $0x30] sm:$0xff] %v554_v32  ;;  %v551_v39 = vadd.f32 %v785_v37, %v750_v28  ;;  %v490_v40 = vpop.f32.mrb[3].mxu0  ;;  %v506_v41 = vpop.f32.mrb[3].mxu1 }
 0x11e   : > { %555 = vst [vmem:[%s326_s27] sm:$0xff] %v548_v35  ;;  %559 = vst [vmem:[%s326_s27 + $0x20] sm:$0xff] %v552_v36  ;;  %v549_v42 = vadd.f32 %v750_v28, %v490_v40  ;;  %v553_v43 = vadd.f32 %v750_v28, %v506_v41 }
 0x11f   : > { %558 = vst [vmem:[%s326_s27 + $0x18] sm:$0xff] %v551_v39 }
 0x120   : > { %556 = vst [vmem:[%s326_s27 + $0x8] sm:$0xff] %v549_v42  ;;  %560 = vst [vmem:[%s326_s27 + $0x28] sm:$0xff] %v553_v43 }
 0x124   : > { %v617_v46 = vld [vmem:[%s326_s27 + $0x10] sm:$0xff] }
 0x125   : > { %v613_v44 = vld [vmem:[%s326_s27] sm:$0xff]  ;;  %618 = vst [vmem:[%s573_s30 + $0xd0] sm:$0xff] %v617_v46  ;;  %v625_v50 = vld [vmem:[%s326_s27 + $0x30] sm:$0xff] }
 0x126   : > { %v619_v47 = vld [vmem:[%s326_s27 + $0x18] sm:$0xff]  ;;  %v621_v48 = vld [vmem:[%s326_s27 + $0x20] sm:$0xff]  ;;  %614 = vst [vmem:[%s573_s30] sm:$0xff] %v613_v44  ;;  %626 = vst [vmem:[%s573_s30 + $0x270] sm:$0xff] %v625_v50 }
 0x127   : > { %v615_v45 = vld [vmem:[%s326_s27 + $0x8] sm:$0xff]  ;;  %620 = vst [vmem:[%s573_s30 + $0x138] sm:$0xff] %v619_v47  ;;  %622 = vst [vmem:[%s573_s30 + $0x1a0] sm:$0xff] %v621_v48 }
 0x128   : > { %v623_v49 = vld [vmem:[%s326_s27 + $0x28] sm:$0xff]  ;;  %616 = vst [vmem:[%s573_s30 + $0x68] sm:$0xff] %v615_v45 }
 0x129   : > { %624 = vst [vmem:[%s573_s30 + $0x208] sm:$0xff] %v623_v49 }
 0x12a PF: > { %s13_s16 = sadd.s32 1, %s897_s16   ;;  %s1045_s12 = smov %s885_s13 }
 0x12b   : > { %p10_p12 = scmp.ge.s32.totalorder %s13_s16, 15   ;;  %s1046_s13 = smov %s959_s22 }
 0x12c   : > { %s1047_s14 = smov %s893_s15  ;;  %s1048_s15 = smov %s1050_s17 }
 0x12d   :  { %12 = sbr.rel (!%p10_p12) target bundleno = 3 (0x3), region = 160 }

// kernel: vae_forward.18
= control target key start
LH: loop header
LB: loop body
LE: loop exit
PB: predicated region body
PF: predicated region fallthrough
CT: control target
= control target key end

     0   :  { %s1175_s12 = smov 0   ;;  %s1177_s13 = smov 0   ;;  %s1374_s0 = inlined_call_operand.vmem [shape: bf16[384,128], index: 0, kind: input, shape index: {}]   ;;  %s1375_s1 = inlined_call_operand.vmem [shape: bf16[128,1152], index: 1, kind: input, shape index: {}]   ;;  %s1376_s2 = inlined_call_operand.vmem [shape: f32[1,1152], index: 2, kind: input, shape index: {}]   ;;  %s1377_s3 = inlined_call_operand.vmem [shape: f32[384,1152], index: 3, kind: output, shape index: {}]  }
   0x1   :  { %s1179_s14 = smov 0   ;;  %s1181_s15 = smov 0  }
   0x2   :  { %s1183_s16 = smov 0   ;;  %s1185_s17 = smov 0  }
   0x3   :  { %s1187_s18 = smov 0   ;;  %s1189_s19 = smov 0  }
   0x4   :  { %s1191_s20 = smov 0  }
   0x5 LB: > { %s896_s21 = sadd.s32 4294967295, %s1153_s20   ;;  %s28_s22 = sadd.s32 1, %s1145_s18  ;;  %s1153_s20 = sphi %s1191_s20, %s13_s20   ;;  %s1149_s19 = sphi %s1189_s19, %s1386_s19   ;;  %s1145_s18 = sphi %s1187_s18, %s1385_s18   ;;  %s1141_s17 = sphi %s1185_s17, %s1384_s17   ;;  %s1137_s16 = sphi %s1183_s16, %s1383_s16   ;;  %s1133_s15 = sphi %s1181_s15, %s1382_s15   ;;  %s1129_s14 = sphi %s1179_s14, %s1381_s14   ;;  %s1125_s13 = sphi %s1177_s13, %s1380_s13   ;;  %s1121_s12 = sphi %s1175_s12, %s1379_s12  }
   0x6   : > { %p30_p0 = scmp.ge.s32.totalorder %s28_s22, 9  ;;  %s32_s23 = sadd.s32 1, %s1149_s19 }
   0x7   : > { %s69_s24 = sadd.s32 1, %s1133_s15  ;;  %p76_p1 = scmp.ne.s32.totalorder %s1133_s15, %s1129_s14 }
   0x8   : > { %s1388_s22 = smov (%p30_p0, %s28_s22), 0  ;;  %s1390_s23 = smov (!%p30_p0, %s32_s23), %s1149_s19 }
   0x9   : > { %s65_s25 = ssub.s32 %s1145_s18, %s1388_s22  ;;  %p77_p2 = scmp.eq.s32.totalorder %s1153_s20, 0 }
   0xa   : > { %p34_p3 = scmp.ge.s32.totalorder %s1390_s23, 3  ;;  %p67_p4 = scmp.eq.s32.totalorder %s65_s25, 0 }
   0xb   : > { %p78_p5 = por %p77_p2, %p76_p1  ;;  %s123_s26 = sadd.s32 1, %s1125_s13 }
   0xc   : > { %s1392_s23 = smov (%p34_p3, %s1390_s23), 0  ;;  %p133_p6 = scmp.ne.s32.totalorder %s1125_s13, %s1121_s12 }
   0xd   : > { %s1236_s27 = scalar_select %p67_p4, %s1133_s15, %s69_s24  }
   0xe   : > { %s118_s28 = ssub.s32 %s1149_s19, %s1392_s23  ;;  %p134_p7 = scmp.eq.s32.totalorder %s896_s21, 26 }
   0xf   : > { %s120_s29 = sor.u32 %s118_s28, %s65_s25  ;;  %p899_p10 = scmp.ge.s32.totalorder %s1153_s20, 27 }
  0x10   : > { %p121_p8 = scmp.eq.s32.totalorder %s120_s29, 0  ;;  %p1242_p9 = por %p134_p7, %p133_p6 }
  0x11   : > { %156 = sbr.rel (%p899_p10) target bundleno = 38 (0x26), region = 16 }
  0x12   : > { %s1247_s4 = scalar_select %p121_p8, %s1125_s13, %s123_s26  }
  0x18   : > { %171 = sbr.rel (!%p78_p5) target bundleno = 38 (0x26), region = 24  ;;  %s173_s5 = sand.u32 (%p78_p5), 1, %s1133_s15  }
  0x19   : > { %s901_s6 = sshll.u32 (%p78_p5), %s1145_s18, 2  ;;  %s900_s7 = sshll.u32 (%p78_p5), %s173_s5, 6 }
  0x1a   : > { %s1255_s10 = scalar_lea.vmem (%p78_p5), %s1375_s1, %s901_s6  ;;  %s175_s11 = scalar_lea.vmem (%p78_p5), [#allocation3], %s900_s7 }
  0x1b   : > { %v196_v0 = vld [vmem:[%s1255_s10] sm:$0xf] (%p78_p5)  ;;  %v198_v1 = vld [vmem:[%s1255_s10 + $0x24] sm:$0xf] (%p78_p5)  ;;  %v200_v2 = vld [vmem:[%s1255_s10 + $0x48] sm:$0xf] (%p78_p5) }
  0x1c   : > { %197 = vst [vmem:[%s175_s11] sm:$0xf] (%p78_p5), %v196_v0  ;;  %199 = vst [vmem:[%s175_s11 + $0x4] sm:$0xf] (%p78_p5), %v198_v1  ;;  %v202_v3 = vld [vmem:[%s1255_s10 + $0x6c] sm:$0xf] (%p78_p5) }
  0x1d   : > { %v204_v4 = vld [vmem:[%s1255_s10 + $0x90] sm:$0xf] (%p78_p5)  ;;  %201 = vst [vmem:[%s175_s11 + $0x8] sm:$0xf] (%p78_p5), %v200_v2  ;;  %203 = vst [vmem:[%s175_s11 + $0xc] sm:$0xf] (%p78_p5), %v202_v3 }
  0x1e   : > { %205 = vst [vmem:[%s175_s11 + $0x10] sm:$0xf] (%p78_p5), %v204_v4  ;;  %v206_v5 = vld [vmem:[%s1255_s10 + $0xb4] sm:$0xf] (%p78_p5)  ;;  %v208_v6 = vld [vmem:[%s1255_s10 + $0xd8] sm:$0xf] (%p78_p5) }
  0x1f   : > { %v210_v7 = vld [vmem:[%s1255_s10 + $0xfc] sm:$0xf]  ;;  %207 = vst [vmem:[%s175_s11 + $0x14] sm:$0xf] %v206_v5  ;;  %209 = vst [vmem:[%s175_s11 + $0x18] sm:$0xf] %v208_v6 }
  0x20   : > { %211 = vst [vmem:[%s175_s11 + $0x1c] sm:$0xf] %v210_v7  ;;  %v212_v8 = vld [vmem:[%s1255_s10 + $0x120] sm:$0xf]  ;;  %v214_v9 = vld [vmem:[%s1255_s10 + $0x144] sm:$0xf] }
  0x21   : > { %v216_v10 = vld [vmem:[%s1255_s10 + $0x168] sm:$0xf]  ;;  %213 = vst [vmem:[%s175_s11 + $0x20] sm:$0xf] %v212_v8  ;;  %215 = vst [vmem:[%s175_s11 + $0x24] sm:$0xf] %v214_v9 }
  0x22   : > { %217 = vst [vmem:[%s175_s11 + $0x28] sm:$0xf] %v216_v10  ;;  %v218_v11 = vld [vmem:[%s1255_s10 + $0x18c] sm:$0xf]  ;;  %v220_v12 = vld [vmem:[%s1255_s10 + $0x1b0] sm:$0xf] }
  0x23   : > { %v222_v13 = vld [vmem:[%s1255_s10 + $0x1d4] sm:$0xf]  ;;  %219 = vst [vmem:[%s175_s11 + $0x2c] sm:$0xf] %v218_v11  ;;  %221 = vst [vmem:[%s175_s11 + $0x30] sm:$0xf] %v220_v12 }
  0x24   : > { %223 = vst [vmem:[%s175_s11 + $0x34] sm:$0xf] %v222_v13  ;;  %v224_v14 = vld [vmem:[%s1255_s10 + $0x1f8] sm:$0xf]  ;;  %v226_v15 = vld [vmem:[%s1255_s10 + $0x21c] sm:$0xf] }
  0x25   : > { %225 = vst [vmem:[%s175_s11 + $0x38] sm:$0xf] %v224_v14  ;;  %227 = vst [vmem:[%s175_s11 + $0x3c] sm:$0xf] %v226_v15 }
  0x26 PF: > { %p902_p11 = scmp.ge.s32.totalorder %s1153_s20, 1  ;;  %p287_p12 = scmp.lt.s32.totalorder %s1153_s20, 28 }
  0x28   : > { %p288_p13 = pnand %p902_p11, %p287_p12 }
  0x29   : > { %s294_s21 = sand.u32 (!%p288_p13), 1, %s1129_s14   ;;  %s905_s24 = sshll.u32 (!%p288_p13), %s1141_s17, 4 }
  0x2a   : > { %291 = sbr.rel (%p288_p13) target bundleno = 312 (0x138), region = 69  ;;  %s903_s25 = sshll.u32 (!%p288_p13), %s294_s21, 6 }
  0x2b   : > { %p328_p0 = scmp.lt.s32.totalorder (!%p288_p13), %s905_s24, 47  ;;  %s1277_s26 = scalar_lea.vmem (!%p288_p13), [#allocation3], %s903_s25 }
  0x2c   : > { %v1067_v16 = vld [vmem:[%s1277_s26] sm:$0xff] (!%p288_p13)   ;;  %v1068_v17 = vld [vmem:[%s1277_s26 + $0x8] sm:$0xff] (!%p288_p13)   ;;  %v1069_v18 = vld [vmem:[%s1277_s26 + $0x10] sm:$0xff] (!%p288_p13)   ;;  %p337_p1 = scmp.lt.s32.totalorder (!%p288_p13), %s1137_s16, 8  ;;  %s324_s7 = sand.u32 (!%p288_p13), 1, %s1121_s12  }
  0x2d   : > { %946 = vmatprep.subr.bf16.mxu0 (!%p288_p13), %v1067_v16  ;;  %978 = vmatprep.subr.bf16.mxu1 (!%p288_p13), %v1067_v16  ;;  %v1070_v19 = vld [vmem:[%s1277_s26 + $0x18] sm:$0xff] (!%p288_p13)   ;;  %v1071_v22 = vld [vmem:[%s1277_s26 + $0x20] sm:$0xff] (!%p288_p13)   ;;  %v1072_v23 = vld [vmem:[%s1277_s26 + $0x28] sm:$0xff] (!%p288_p13)   ;;  %s904_s11 = sshll.u32 (!%p288_p13), %s324_s7, 7 }
  0x2e   : > { %947 = vmatpush3.bf16.msra.mxu0 (!%p288_p13), %v1067_v16  ;;  %986 = vmatpush3.bf16.msra.mxu1 (!%p288_p13), %v1067_v16  ;;  %v1073_v24 = vld [vmem:[%s1277_s26 + $0x30] sm:$0xff] (!%p288_p13)   ;;  %v1074_v25 = vld [vmem:[%s1277_s26 + $0x38] sm:$0xff] (!%p288_p13)   ;;  %s1306_s21 = scalar_lea.vmem (!%p288_p13), [#allocation4], %s904_s11 }
  0x2f   : > { %948 = vmatprep.subr.bf16.mxu0 (!%p288_p13), %v1068_v17  ;;  %979 = vmatprep.subr.bf16.mxu1 (!%p288_p13), %v1068_v17 }
  0x31   : > { %s1394_s24 = smov (!%p328_p0, %s905_s24), 47  ;;  %s994_s12 = smul.u32 (%p1242_p9), 144, %s1141_s17 }
  0x32   : > { %s906_s28 = sshll.u32 %s1394_s24, 2  ;;  %949 = vmatpush3.bf16.msra.mxu0 %v1068_v17  ;;  %987 = vmatpush3.bf16.msra.mxu1 %v1068_v17 }
  0x33   : > { %s1285_s5 = scalar_lea.vmem %s1374_s0, %s906_s28  ;;  %950 = vmatprep.subr.bf16.mxu0 %v1069_v18  ;;  %980 = vmatprep.subr.bf16.mxu1 %v1069_v18  ;;  %s702_s30 = sadd.s32 (%p1242_p9), %s1137_s16, %s994_s12 }
  0x34   : > { %v1075_v20 = vld [vmem:[%s1285_s5] sm:$0xff]   ;;  %v1077_v26 = vld [vmem:[%s1285_s5 + $0x8] sm:$0xff]   ;;  %v1079_v28 = vld [vmem:[%s1285_s5 + $0x10] sm:$0xff]   ;;  %s338_s6 = scalar_select %p337_p1, %s1137_s16, 8 }
  0x35   : > { %v1076_v21 = vld [vmem:[%s1285_s5 + $0x20] sm:$0xff]   ;;  %962 = vmatprep.mubr.bf16.mxu0 %v1075_v20  ;;  %v1078_v27 = vld [vmem:[%s1285_s5 + $0x28] sm:$0xff]   ;;  %v1080_v29 = vld [vmem:[%s1285_s5 + $0x30] sm:$0xff]   ;;  %s927_s24 = sshll.u32 (%p1242_p9), %s702_s30, 3 }
  0x36   : > { %951 = vmatpush3.bf16.msra.mxu0 %v1069_v18  ;;  %988 = vmatpush3.bf16.msra.mxu1 %v1069_v18  ;;  %v1081_v30 = vld [vmem:[%s1285_s5 + $0x18] sm:$0xff]   ;;  %s339_s10 = scalar_lea.vmem %s1376_s2, %s338_s6  ;;  %s704_s17 = scalar_lea.vmem (%p1242_p9), %s1377_s3, %s927_s24 }
  0x37   : > { %952 = vmatprep.subr.bf16.mxu0 %v1070_v19  ;;  %981 = vmatprep.subr.bf16.mxu1 %v1070_v19  ;;  %v1082_v31 = vld [vmem:[%s1285_s5 + $0x38] sm:$0xff]   ;;  %v923_v32 = vld [vmem:[%s339_s10] ss:$0 sm:$0xff] }
  0x38   : > { %970 = vmatprep.mubr.bf16.mxu1 %v1076_v21 }
  0x3a   : > { %953 = vmatpush3.bf16.msra.mxu0 %v1070_v19  ;;  %989 = vmatpush3.bf16.msra.mxu1 %v1070_v19 }
  0x3b   : > { %954 = vmatprep.subr.bf16.mxu0 %v1071_v22  ;;  %982 = vmatprep.subr.bf16.mxu1 %v1071_v22 }
  0x3e   : > { %955 = vmatpush3.bf16.msra.mxu0 %v1071_v22  ;;  %990 = vmatpush3.bf16.msra.mxu1 %v1071_v22 }
  0x3f   : > { %956 = vmatprep.subr.bf16.mxu0 %v1072_v23  ;;  %983 = vmatprep.subr.bf16.mxu1 %v1072_v23 }
  0x42   : > { %957 = vmatpush3.bf16.msra.mxu0 %v1072_v23  ;;  %991 = vmatpush3.bf16.msra.mxu1 %v1072_v23 }
  0x43   : > { %958 = vmatprep.subr.bf16.mxu0 %v1073_v24  ;;  %984 = vmatprep.subr.bf16.mxu1 %v1073_v24 }
  0x46   : > { %959 = vmatpush3.bf16.msra.mxu0 %v1073_v24  ;;  %992 = vmatpush3.bf16.msra.mxu1 %v1073_v24 }
  0x47   : > { %960 = vmatprep.subr.bf16.mxu0 %v1074_v25  ;;  %985 = vmatprep.subr.bf16.mxu1 %v1074_v25 }
  0x4a   : > { %961 = vmatpush3.bf16.msra.mxu0 %v1074_v25  ;;  %993 = vmatpush3.bf16.msra.mxu1 %v1074_v25 }
  0x4d   : > { %963 = vmatmul.mubr.bf16.vlgmr.msra.gmra.mrb[0].mxu0 %v1077_v26  ;;  %971 = vmatmul.mubr.bf16.vlgmr.msra.gmra.mrb[0].mxu1 %v1078_v27 }
  0x4e   : > { %966 = vmatprep.mubr.bf16.mxu0 %v1079_v28  ;;  %974 = vmatprep.mubr.bf16.mxu1 %v1080_v29 }
  0x55   : > { %967 = vmatmul.mubr.bf16.gmra.mrb[4].mxu0 %v1081_v30  ;;  %975 = vmatmul.mubr.bf16.gmra.mrb[4].mxu1 %v1082_v31 }
 0x120   : > { %v964_v33 = vpop.f32.mrb[0].mxu0  ;;  %v972_v34 = vpop.f32.mrb[0].mxu1 }
 0x121   : > { %v663_v35 = vadd.f32 %v964_v33, %v923_v32  ;;  %v671_v36 = vadd.f32 %v972_v34, %v923_v32  ;;  %v540_v37 = vpop.f32.mrb[1].mxu0  ;;  %v572_v38 = vpop.f32.mrb[1].mxu1 }
 0x122   : > { %v661_v39 = vadd.f32 %v923_v32, %v540_v37  ;;  %v669_v40 = vadd.f32 %v923_v32, %v572_v38  ;;  %v965_v41 = vpop.f32.mrb[2].mxu0  ;;  %v973_v42 = vpop.f32.mrb[2].mxu1 }
 0x123   : > { %679 = vst [vmem:[%s1306_s21 + $0x10] sm:$0xff] %v663_v35  ;;  %687 = vst [vmem:[%s1306_s21 + $0x50] sm:$0xff] %v671_v36  ;;  %v664_v43 = vadd.f32 %v965_v41, %v923_v32  ;;  %v672_v44 = vadd.f32 %v973_v42, %v923_v32  ;;  %v543_v45 = vpop.f32.mrb[3].mxu0  ;;  %v575_v46 = vpop.f32.mrb[3].mxu1 }
 0x124   : > { %677 = vst [vmem:[%s1306_s21] sm:$0xff] %v661_v39  ;;  %685 = vst [vmem:[%s1306_s21 + $0x40] sm:$0xff] %v669_v40  ;;  %v662_v47 = vadd.f32 %v923_v32, %v543_v45  ;;  %v670_v48 = vadd.f32 %v923_v32, %v575_v46 }
 0x125   : > { %680 = vst [vmem:[%s1306_s21 + $0x18] sm:$0xff] %v664_v43  ;;  %688 = vst [vmem:[%s1306_s21 + $0x58] sm:$0xff] %v672_v44 }
 0x126   : > { %678 = vst [vmem:[%s1306_s21 + $0x8] sm:$0xff] %v662_v47  ;;  %686 = vst [vmem:[%s1306_s21 + $0x48] sm:$0xff] %v670_v48 }
 0x128   : > { %v968_v49 = vpop.f32.mrb[4].mxu0  ;;  %v976_v50 = vpop.f32.mrb[4].mxu1  ;;  %699 = sbr.rel (!%p1242_p9) target bundleno = 312 (0x138), region = 85 }
 0x129   : > { %v667_v51 = vadd.f32 %v968_v49, %v923_v32  ;;  %v675_v52 = vadd.f32 %v976_v50, %v923_v32  ;;  %v556_v53 = vpop.f32.mrb[5].mxu0  ;;  %v588_v54 = vpop.f32.mrb[5].mxu1 }
 0x12a   : > { %v665_v55 = vadd.f32 %v923_v32, %v556_v53  ;;  %v673_v56 = vadd.f32 %v923_v32, %v588_v54  ;;  %v969_v57 = vpop.f32.mrb[6].mxu0  ;;  %v977_v58 = vpop.f32.mrb[6].mxu1  ;;  %v766_v3 = vld [vmem:[%s1306_s21 + $0x10] sm:$0xff] (%p1242_p9) }
 0x12b   : > { %683 = vst [vmem:[%s1306_s21 + $0x30] sm:$0xff] %v667_v51  ;;  %691 = vst [vmem:[%s1306_s21 + $0x70] sm:$0xff] %v675_v52  ;;  %v668_v59 = vadd.f32 %v969_v57, %v923_v32  ;;  %v676_v60 = vadd.f32 %v977_v58, %v923_v32  ;;  %v559_v61 = vpop.f32.mrb[7].mxu0  ;;  %v591_v62 = vpop.f32.mrb[7].mxu1  ;;  %v762_v1 = vld [vmem:[%s1306_s21] sm:$0xff] (%p1242_p9)  ;;  %v782_v11 = vld [vmem:[%s1306_s21 + $0x50] sm:$0xff] (%p1242_p9) }
 0x12c   : > { %681 = vst [vmem:[%s1306_s21 + $0x20] sm:$0xff] %v665_v55  ;;  %689 = vst [vmem:[%s1306_s21 + $0x60] sm:$0xff] %v673_v56  ;;  %v666_v63 = vadd.f32 %v923_v32, %v559_v61  ;;  %v674_v0 = vadd.f32 %v923_v32, %v591_v62  ;;  %v768_v4 = vld [vmem:[%s1306_s21 + $0x18] sm:$0xff] (%p1242_p9)  ;;  %v778_v9 = vld [vmem:[%s1306_s21 + $0x40] sm:$0xff] (%p1242_p9) }
 0x12d   : > { %684 = vst [vmem:[%s1306_s21 + $0x38] sm:$0xff] %v668_v59  ;;  %692 = vst [vmem:[%s1306_s21 + $0x78] sm:$0xff] %v676_v60  ;;  %v764_v2 = vld [vmem:[%s1306_s21 + $0x8] sm:$0xff] (%p1242_p9)  ;;  %v784_v12 = vld [vmem:[%s1306_s21 + $0x58] sm:$0xff] (%p1242_p9) }
 0x12e   : > { %682 = vst [vmem:[%s1306_s21 + $0x28] sm:$0xff] %v666_v63  ;;  %690 = vst [vmem:[%s1306_s21 + $0x68] sm:$0xff] %v674_v0  ;;  %v780_v10 = vld [vmem:[%s1306_s21 + $0x48] sm:$0xff] (%p1242_p9) }
 0x12f   : > { %763 = vst [vmem:[%s704_s17] sm:$0xff] %v762_v1  ;;  %765 = vst [vmem:[%s704_s17 + $0x48] sm:$0xff] %v764_v2 }
 0x130   : > { %767 = vst [vmem:[%s704_s17 + $0x90] sm:$0xff] %v766_v3  ;;  %769 = vst [vmem:[%s704_s17 + $0xd8] sm:$0xff] %v768_v4 }
 0x131   : > { %779 = vst [vmem:[%s704_s17 + $0x240] sm:$0xff] %v778_v9  ;;  %781 = vst [vmem:[%s704_s17 + $0x288] sm:$0xff] %v780_v10 }
 0x132   : > { %v774_v7 = vld [vmem:[%s1306_s21 + $0x30] sm:$0xff]  ;;  %783 = vst [vmem:[%s704_s17 + $0x2d0] sm:$0xff] %v782_v11  ;;  %785 = vst [vmem:[%s704_s17 + $0x318] sm:$0xff] %v784_v12 }
 0x133   : > { %v770_v5 = vld [vmem:[%s1306_s21 + $0x20] sm:$0xff]  ;;  %v790_v15 = vld [vmem:[%s1306_s21 + $0x70] sm:$0xff]  ;;  %775 = vst [vmem:[%s704_s17 + $0x1b0] sm:$0xff] %v774_v7 }
 0x134   : > { %v776_v8 = vld [vmem:[%s1306_s21 + $0x38] sm:$0xff]  ;;  %v786_v13 = vld [vmem:[%s1306_s21 + $0x60] sm:$0xff]  ;;  %771 = vst [vmem:[%s704_s17 + $0x120] sm:$0xff] %v770_v5  ;;  %791 = vst [vmem:[%s704_s17 + $0x3f0] sm:$0xff] %v790_v15 }
 0x135   : > { %v772_v6 = vld [vmem:[%s1306_s21 + $0x28] sm:$0xff]  ;;  %777 = vst [vmem:[%s704_s17 + $0x1f8] sm:$0xff] %v776_v8  ;;  %787 = vst [vmem:[%s704_s17 + $0x360] sm:$0xff] %v786_v13  ;;  %v792_v16 = vld [vmem:[%s1306_s21 + $0x78] sm:$0xff] }
 0x136   : > { %v788_v14 = vld [vmem:[%s1306_s21 + $0x68] sm:$0xff]  ;;  %773 = vst [vmem:[%s704_s17 + $0x168] sm:$0xff] %v772_v6  ;;  %793 = vst [vmem:[%s704_s17 + $0x438] sm:$0xff] %v792_v16 }
 0x137   : > { %789 = vst [vmem:[%s704_s17 + $0x3a8] sm:$0xff] %v788_v14 }
 0x138 PF: > { %s13_s20 = sadd.s32 1, %s1153_s20   ;;  %s1379_s12 = smov %s1125_s13 }
 0x139   : > { %p10_p2 = scmp.ge.s32.totalorder %s13_s20, 29   ;;  %s1380_s13 = smov %s1247_s4 }
 0x13a   : > { %s1381_s14 = smov %s1133_s15  ;;  %s1382_s15 = smov %s1236_s27 }
 0x13b   : > { %s1383_s16 = smov %s1145_s18  ;;  %s1384_s17 = smov %s1149_s19 }
 0x13c   : > { %s1385_s18 = smov %s1388_s22  ;;  %s1386_s19 = smov %s1392_s23 }
 0x13d   :  { %12 = sbr.rel (!%p10_p2) target bundleno = 5 (0x5), region = 160 }

// kernel: vae_forward.19
= control target key start
LH: loop header
LB: loop body
LE: loop exit
PB: predicated region body
PF: predicated region fallthrough
CT: control target
= control target key end

     0   :  { %s900_s12 = smov 0   ;;  %s902_s13 = smov 0   ;;  %s992_s0 = inlined_call_operand.vmem [shape: bf16[1920,128], index: 0, kind: input, shape index: {}]   ;;  %s993_s1 = inlined_call_operand.vmem [shape: bf16[128,128], index: 1, kind: input, shape index: {}]   ;;  %s994_s2 = inlined_call_operand.vmem [shape: f32[1,128], index: 2, kind: input, shape index: {}]   ;;  %s995_s3 = inlined_call_operand.vmem [shape: f32[1920,128], index: 3, kind: output, shape index: {}]  }
   0x1   :  { %s904_s14 = smov 0  }
   0x2 LB: > { %s32_s15 = sadd.s32 1, %s874_s13  ;;  %p728_p0 = scmp.ge.s32.totalorder %s878_s14, 1  ;;  %s878_s14 = sphi %s904_s14, %s13_s14   ;;  %s874_s13 = sphi %s902_s13, %s997_s13   ;;  %s870_s12 = sphi %s900_s12, %s996_s12  }
   0x3   : > { %p34_p1 = scmp.ge.s32.totalorder %s32_s15, 15  ;;  %p188_p2 = scmp.lt.s32.totalorder %s878_s14, 16 }
   0x5   : > { %s999_s15 = smov (%p34_p1, %s32_s15), 0  ;;  %p189_p3 = pnand %p728_p0, %p188_p2 }
   0x6   : > { %v840_v0 = vld [vmem:[%s993_s1] sm:$0xff] (!%p189_p3)   ;;  %s729_s18 = sshll.u32 (!%p189_p3), %s870_s12, 4  ;;  %v841_v1 = vld [vmem:[%s993_s1 + $0x8] sm:$0xff] (!%p189_p3)   ;;  %v842_v2 = vld [vmem:[%s993_s1 + $0x10] sm:$0xff] (!%p189_p3)  }
   0x7   : > { %192 = sbr.rel (%p189_p3) target bundleno = 265 (0x109), region = 32  ;;  %p230_p4 = scmp.lt.s32.totalorder (!%p189_p3), %s729_s18, 239  ;;  %768 = vmatprep.subr.bf16.mxu0 (!%p189_p3), %v840_v0  ;;  %800 = vmatprep.subr.bf16.mxu1 (!%p189_p3), %v840_v0  ;;  %v843_v3 = vld [vmem:[%s993_s1 + $0x18] sm:$0xff] (!%p189_p3)   ;;  %v844_v6 = vld [vmem:[%s993_s1 + $0x20] sm:$0xff] (!%p189_p3)   ;;  %v845_v7 = vld [vmem:[%s993_s1 + $0x28] sm:$0xff] (!%p189_p3)  }
   0x8   : > { %769 = vmatpush3.bf16.msra.mxu0 (!%p189_p3), %v840_v0  ;;  %808 = vmatpush3.bf16.msra.mxu1 (!%p189_p3), %v840_v0  ;;  %v846_v8 = vld [vmem:[%s993_s1 + $0x30] sm:$0xff] (!%p189_p3)   ;;  %v847_v9 = vld [vmem:[%s993_s1 + $0x38] sm:$0xff] (!%p189_p3)   ;;  %v749_v16 = vld [vmem:[%s994_s2] ss:$0 sm:$0xff] (!%p189_p3) }
   0x9   : > { %770 = vmatprep.subr.bf16.mxu0 (!%p189_p3), %v841_v1  ;;  %801 = vmatprep.subr.bf16.mxu1 (!%p189_p3), %v841_v1 }
   0xc   : > { %771 = vmatpush3.bf16.msra.mxu0 (!%p189_p3), %v841_v1  ;;  %809 = vmatpush3.bf16.msra.mxu1 (!%p189_p3), %v841_v1 }
   0xd   : > { %772 = vmatprep.subr.bf16.mxu0 (!%p189_p3), %v842_v2  ;;  %802 = vmatprep.subr.bf16.mxu1 (!%p189_p3), %v842_v2 }
   0xe   : > { %s1001_s18 = smov (!%p230_p4, %s729_s18), 239 }
   0xf   : > { %s730_s23 = sshll.u32 %s1001_s18, 2  ;;  %s732_s10 = sshll.u32 %s1001_s18, 3 }
  0x10   : > { %s933_s26 = scalar_lea.vmem %s992_s0, %s730_s23  ;;  %773 = vmatpush3.bf16.msra.mxu0 %v842_v2  ;;  %810 = vmatpush3.bf16.msra.mxu1 %v842_v2  ;;  %s965_s19 = scalar_lea.vmem %s995_s3, %s732_s10 }
  0x11   : > { %v848_v4 = vld [vmem:[%s933_s26] sm:$0xff]   ;;  %774 = vmatprep.subr.bf16.mxu0 %v843_v3  ;;  %803 = vmatprep.subr.bf16.mxu1 %v843_v3  ;;  %v850_v10 = vld [vmem:[%s933_s26 + $0x8] sm:$0xff]   ;;  %v852_v12 = vld [vmem:[%s933_s26 + $0x10] sm:$0xff]  }
  0x12   : > { %v849_v5 = vld [vmem:[%s933_s26 + $0x20] sm:$0xff]   ;;  %784 = vmatprep.mubr.bf16.mxu0 %v848_v4  ;;  %v851_v11 = vld [vmem:[%s933_s26 + $0x28] sm:$0xff]   ;;  %v853_v13 = vld [vmem:[%s933_s26 + $0x30] sm:$0xff]  }
  0x13   : > { %792 = vmatprep.mubr.bf16.mxu1 %v849_v5  ;;  %v854_v14 = vld [vmem:[%s933_s26 + $0x18] sm:$0xff]  }
  0x14   : > { %775 = vmatpush3.bf16.msra.mxu0 %v843_v3  ;;  %811 = vmatpush3.bf16.msra.mxu1 %v843_v3  ;;  %v855_v15 = vld [vmem:[%s933_s26 + $0x38] sm:$0xff]  }
  0x15   : > { %776 = vmatprep.subr.bf16.mxu0 %v844_v6  ;;  %804 = vmatprep.subr.bf16.mxu1 %v844_v6 }
  0x18   : > { %777 = vmatpush3.bf16.msra.mxu0 %v844_v6  ;;  %812 = vmatpush3.bf16.msra.mxu1 %v844_v6 }
  0x19   : > { %778 = vmatprep.subr.bf16.mxu0 %v845_v7  ;;  %805 = vmatprep.subr.bf16.mxu1 %v845_v7 }
  0x1c   : > { %779 = vmatpush3.bf16.msra.mxu0 %v845_v7  ;;  %813 = vmatpush3.bf16.msra.mxu1 %v845_v7 }
  0x1d   : > { %780 = vmatprep.subr.bf16.mxu0 %v846_v8  ;;  %806 = vmatprep.subr.bf16.mxu1 %v846_v8 }
  0x20   : > { %781 = vmatpush3.bf16.msra.mxu0 %v846_v8  ;;  %814 = vmatpush3.bf16.msra.mxu1 %v846_v8 }
  0x21   : > { %782 = vmatprep.subr.bf16.mxu0 %v847_v9  ;;  %807 = vmatprep.subr.bf16.mxu1 %v847_v9 }
  0x24   : > { %783 = vmatpush3.bf16.msra.mxu0 %v847_v9  ;;  %815 = vmatpush3.bf16.msra.mxu1 %v847_v9 }
  0x27   : > { %785 = vmatmul.mubr.bf16.vlgmr.msra.gmra.mrb[0].mxu0 %v850_v10  ;;  %793 = vmatmul.mubr.bf16.vlgmr.msra.gmra.mrb[0].mxu1 %v851_v11 }
  0x28   : > { %788 = vmatprep.mubr.bf16.mxu0 %v852_v12  ;;  %796 = vmatprep.mubr.bf16.mxu1 %v853_v13 }
  0x2f   : > { %789 = vmatmul.mubr.bf16.gmra.mrb[4].mxu0 %v854_v14  ;;  %797 = vmatmul.mubr.bf16.gmra.mrb[4].mxu1 %v855_v15 }
  0xfa   : > { %v786_v17 = vpop.f32.mrb[0].mxu0  ;;  %v794_v18 = vpop.f32.mrb[0].mxu1 }
  0xfb   : > { %v581_v19 = vadd.f32 %v786_v17, %v749_v16  ;;  %v589_v20 = vadd.f32 %v794_v18, %v749_v16  ;;  %v458_v21 = vpop.f32.mrb[1].mxu0  ;;  %v490_v22 = vpop.f32.mrb[1].mxu1 }
  0xfc   : > { %v579_v23 = vadd.f32 %v749_v16, %v458_v21  ;;  %v587_v24 = vadd.f32 %v749_v16, %v490_v22  ;;  %v787_v25 = vpop.f32.mrb[2].mxu0  ;;  %v795_v26 = vpop.f32.mrb[2].mxu1 }
  0xfd   : > { %597 = vst [vmem:[%s965_s19 + $0x10] sm:$0xff] %v581_v19  ;;  %605 = vst [vmem:[%s965_s19 + $0x50] sm:$0xff] %v589_v20  ;;  %v582_v27 = vadd.f32 %v787_v25, %v749_v16  ;;  %v590_v28 = vadd.f32 %v795_v26, %v749_v16  ;;  %v461_v29 = vpop.f32.mrb[3].mxu0  ;;  %v493_v30 = vpop.f32.mrb[3].mxu1 }
  0xfe   : > { %595 = vst [vmem:[%s965_s19] sm:$0xff] %v579_v23  ;;  %603 = vst [vmem:[%s965_s19 + $0x40] sm:$0xff] %v587_v24  ;;  %v580_v31 = vadd.f32 %v749_v16, %v461_v29  ;;  %v588_v32 = vadd.f32 %v749_v16, %v493_v30 }
  0xff   : > { %598 = vst [vmem:[%s965_s19 + $0x18] sm:$0xff] %v582_v27  ;;  %606 = vst [vmem:[%s965_s19 + $0x58] sm:$0xff] %v590_v28 }
 0x100   : > { %596 = vst [vmem:[%s965_s19 + $0x8] sm:$0xff] %v580_v31  ;;  %604 = vst [vmem:[%s965_s19 + $0x48] sm:$0xff] %v588_v32 }
 0x102   : > { %v790_v33 = vpop.f32.mrb[4].mxu0  ;;  %v798_v34 = vpop.f32.mrb[4].mxu1 }
 0x103   : > { %v585_v35 = vadd.f32 %v790_v33, %v749_v16  ;;  %v593_v36 = vadd.f32 %v798_v34, %v749_v16  ;;  %v474_v37 = vpop.f32.mrb[5].mxu0  ;;  %v506_v38 = vpop.f32.mrb[5].mxu1 }
 0x104   : > { %v583_v39 = vadd.f32 %v749_v16, %v474_v37  ;;  %v591_v40 = vadd.f32 %v749_v16, %v506_v38  ;;  %v791_v41 = vpop.f32.mrb[6].mxu0  ;;  %v799_v42 = vpop.f32.mrb[6].mxu1 }
 0x105   : > { %601 = vst [vmem:[%s965_s19 + $0x30] sm:$0xff] %v585_v35  ;;  %609 = vst [vmem:[%s965_s19 + $0x70] sm:$0xff] %v593_v36  ;;  %v586_v43 = vadd.f32 %v791_v41, %v749_v16  ;;  %v594_v44 = vadd.f32 %v799_v42, %v749_v16  ;;  %v477_v45 = vpop.f32.mrb[7].mxu0  ;;  %v509_v46 = vpop.f32.mrb[7].mxu1 }
 0x106   : > { %599 = vst [vmem:[%s965_s19 + $0x20] sm:$0xff] %v583_v39  ;;  %607 = vst [vmem:[%s965_s19 + $0x60] sm:$0xff] %v591_v40  ;;  %v584_v47 = vadd.f32 %v749_v16, %v477_v45  ;;  %v592_v48 = vadd.f32 %v749_v16, %v509_v46 }
 0x107   : > { %602 = vst [vmem:[%s965_s19 + $0x38] sm:$0xff] %v586_v43  ;;  %610 = vst [vmem:[%s965_s19 + $0x78] sm:$0xff] %v594_v44 }
 0x108   : > { %600 = vst [vmem:[%s965_s19 + $0x28] sm:$0xff] %v584_v47  ;;  %608 = vst [vmem:[%s965_s19 + $0x68] sm:$0xff] %v592_v48 }
 0x109 PF: > { %s13_s14 = sadd.s32 1, %s878_s14   ;;  %s996_s12 = smov %s874_s13 }
 0x10a   : > { %p10_p5 = scmp.ge.s32.totalorder %s13_s14, 17   ;;  %s997_s13 = smov %s999_s15 }
 0x10c   :  { %12 = sbr.rel (!%p10_p5) target bundleno = 2 (0x2), region = 76 }

</bundles_post_ra>
